<compile_context>
chip_gen: v6e
topology: v6e:2x2x1
jax: 0.10.0
libtpu: 0.0.40
codegen_flags: <defaults>
</compile_context>

<pallas_src>
import jax
import jax.numpy as jnp
from jax.experimental import pallas as pl
from jax.experimental.pallas import tpu as pltpu  # noqa: F401  (TPU backend)

# ---------------- sizes (small demo shapes) ----------------
B = 2          # batch
T = 6          # TrgSeqLen
S = 8          # SrcSeqLen
E = 16         # emb_size
HD = 8         # edit_representation_size  (edit encoder bi-dir -> 2*HD)
HE = 16        # hidden_size_encoder       (src encoder bi-dir  -> 2*HE)
H = 32         # decoder hidden_size
L = 2          # num_layers (kernel hard-codes the 2-layer LSTM)

NEG = -1e30    # plain Python float (stands in for -inf; exp underflows to 0)
PACK = 128     # lane width of the packed per-step output slab
F32 = jnp.float32
BF16 = jnp.bfloat16


def _lstm_activate(gates, c):
    """Full-vreg LSTM activation (gate order i, f, g, o; 4H == 128 lanes)."""
    sg = jax.nn.sigmoid(gates)          # one EUP pass over the full 128-lane vreg
    tg = jnp.tanh(gates)                # one EUP pass over the full 128-lane vreg
    i = sg[:, 0:H]
    f = sg[:, H:2 * H]
    g = tg[:, 2 * H:3 * H]
    o = sg[:, 3 * H:4 * H]
    c_new = f * c + i * g
    h_new = o * jnp.tanh(c_new)
    return h_new, c_new


# ---------------- Pallas kernel (single invocation, no grid) ----------------
def decoder_kernel(
    # data
    trg_ref,        # (T, B, E)          f32  time-major target embeddings
    enc_out_ref,    # (B, S, 2HE)        f32  encoder_output
    mask_ref,       # (B, S, 1)          f32  1.0 valid / 0.0 pad
    bridge_in_ref,  # (2L, B, 2HE+2HD)   f32  [enc|edit] rows: hidden layers, then cell
    edit_last_ref,  # (B, 2HD)           f32  edit_hidden[-1]
    # weights (pre-split / pre-fused in the wrapper; bf16 unless noted)
    w_bridge_ref,   # (2HE+2HD, H)
    b_bridge_ref,   # (1, H)             f32
    w_key_ref,      # (2HE, H)
    w_energy_ref,   # (1, 1, H)          f32
    w_h1_ref,       # (H, 4H+H+H+1)           [w_hh1 | w_query | w_po_out]
    w_ctx_h0_ref,   # (2HE+H, 4H+H+1)         [[w_ih0_ctx, w_po_ctx], [w_hh0, 0]]
    w_edit_ref,     # (2HD, 4H)
    b0_ref,         # (1, 4H)            f32
    w_ih1_ref,      # (H, 4H)
    b1_ref,         # (1, 4H)            f32
    b_po_ref,       # (1, H+1)           f32  [0 | b_pg]
    w_prefix_ref,   # (E, 4H+H+1)             [w_ih0_prev | w_po_prev]
    # outputs
    out_ref,        # (T, B, PACK)       f32  [dec(H) | pre(H) | p_gen(1) | pad]
    attn_ref,       # (T, B, S, 1)       f32
    state_ref,      # (B, 4H)            f32  [h0 | h1 | c0 | c1]
):
    # ----- init: bridge of (hidden, cell) for both layers in ONE matmul -----
    hc = jnp.tanh(
        jnp.dot(bridge_in_ref[...].reshape(2 * L * B, 2 * HE + 2 * HD).astype(BF16),
                w_bridge_ref[...], preferred_element_type=F32)
        + b_bridge_ref[...])                                       # (2L*B, H)
    h0 = hc[0:B]
    h1 = hc[B:2 * B]
    c0 = hc[L * B:L * B + B]
    c1 = hc[L * B + B:L * B + 2 * B]

    # ----- projection_key = key_layer(encoder_output): one (B*S, 2HE) matmul -----
    enc_out = enc_out_ref[...]                                     # (B, S, 2HE) f32
    projkey = jnp.dot(enc_out.reshape(B * S, 2 * HE).astype(BF16), w_key_ref[...],
                      preferred_element_type=F32).reshape(B, S, H)

    # ----- teacher forcing: prev-embed contributions to the layer-0 gates and
    # the fused pre-output / p_gen projection, hoisted into ONE matmul -----
    prev_all = jnp.dot(trg_ref[...].reshape(T * B, E).astype(BF16), w_prefix_ref[...],
                       preferred_element_type=F32)                 # (T*B, 4H + H+1)

    # ----- time-invariant edit-representation contribution to layer-0 gates -----
    gate_bias0 = (jnp.dot(edit_last_ref[...].astype(BF16), w_edit_ref[...],
                          preferred_element_type=F32) + b0_ref[...])   # (B, 4H)

    # ----- loop invariants, loaded / built once -----
    wen = w_energy_ref[...]                                        # (1, 1, H)
    w_h1 = w_h1_ref[...]
    w_ctx_h0 = w_ctx_h0_ref[...]
    w_ih1 = w_ih1_ref[...]
    b1w = b1_ref[...]
    bpo = b_po_ref[...]
    score_bias = jnp.where(mask_ref[...] == 0.0, NEG, 0.0)         # (B, S, 1)

    # fused [w_hh1 | w_query | w_po_out] projection of the bridged h1
    m_h1 = jnp.dot(h1.astype(BF16), w_h1, preferred_element_type=F32)  # (B, 6H+1)

    dec_list, po_list, attn_list = [], [], []

    # ----- fully unrolled T-step recurrence (T is small & static) -----
    for t in range(T):
        hh1 = m_h1[:, 0:4 * H]            # h1_prev @ w_hh1
        qproj = m_h1[:, 4 * H:5 * H]      # h1_prev @ w_query

        # --- Bahdanau attention, sublane-major (B,S,1); no MXU on this path ---
        energy = jnp.tanh(qproj[:, None, :] + projkey)                       # (B,S,H)
        scores = jnp.sum(energy * wen, axis=-1, keepdims=True) + score_bias  # (B,S,1)
        mx = jnp.max(scores, axis=1, keepdims=True)
        ex = jnp.exp(scores - mx)
        alphas = ex * pl.reciprocal(jnp.sum(ex, axis=1, keepdims=True), approx=True)
        context = jnp.sum(alphas * enc_out, axis=1)                          # (B, 2HE)

        # --- fused [context | h0_prev] matmul: layer-0 gates + pre-output ctx term
        m_ctx = jnp.dot(jnp.concatenate([context, h0], axis=-1).astype(BF16),
                        w_ctx_h0, preferred_element_type=F32)                # (B, 4H+H+1)

        gates0 = prev_all[t * B:(t + 1) * B, 0:4 * H] + m_ctx[:, 0:4 * H] + gate_bias0
        h0, c0 = _lstm_activate(gates0, c0)

        gates1 = (jnp.dot(h0.astype(BF16), w_ih1, preferred_element_type=F32)
                  + hh1 + b1w)
        h1, c1 = _lstm_activate(gates1, c1)

        # --- h1_new drives the NEXT step's query / recurrence AND this step's
        # pre-output + p_gen columns, all in one matmul ---
        m_h1 = jnp.dot(h1.astype(BF16), w_h1, preferred_element_type=F32)
        po = (prev_all[t * B:(t + 1) * B, 4 * H:] + m_ctx[:, 4 * H:]
              + m_h1[:, 5 * H:] + bpo)                                       # (B, H+1)

        dec_list.append(h1)
        po_list.append(po)
        attn_list.append(alphas)

    # ----- single end-of-kernel stores (lane-dense packed slab) -----
    dec_all = jnp.stack(dec_list)                            # (T, B, H)
    po_all = jnp.stack(po_list)                              # (T, B, H+1)
    pgen_all = jax.nn.sigmoid(po_all[:, :, H:H + 1])         # (T, B, 1)
    pad = jnp.zeros((T, B, PACK - (2 * H + 1)), F32)
    out_ref[...] = jnp.concatenate([dec_all, po_all[:, :, 0:H], pgen_all, pad],
                                   axis=-1)
    attn_ref[...] = jnp.stack(attn_list)                     # (T, B, S, 1)
    state_ref[...] = jnp.concatenate([h0, h1, c0, c1], axis=-1)


# ---------------- wrapper ----------------
def _prepare_weights(p):
    """Split / fuse the original module weights (wrapper-side layout plumbing)."""
    w_ih0 = p["w_ih0"]                    # rows: [prev (E) | ctx (2HE) | edit (2HD)]
    w_ih0_prev = w_ih0[:E]
    w_ih0_ctx = w_ih0[E:E + 2 * HE]
    w_ih0_edit = w_ih0[E + 2 * HE:]

    w_pre = p["w_pre"]                    # rows: [prev (E) | out (H) | ctx (2HE)]
    w_pg = p["w_pg"]                      # rows: [ctx (2HE) | out (H) | prev (E)]

    # fused pre-output (cols 0..H-1) + p_gen logit (col H)
    w_po_prev = jnp.concatenate([w_pre[:E], w_pg[2 * HE + H:]], axis=1)            # (E, H+1)
    w_po_out = jnp.concatenate([w_pre[E:E + H], w_pg[2 * HE:2 * HE + H]], axis=1)  # (H, H+1)
    w_po_ctx = jnp.concatenate([w_pre[E + H:], w_pg[:2 * HE]], axis=1)             # (2HE, H+1)
    b_po = jnp.concatenate([jnp.zeros((1, H), F32), p["b_pg"]], axis=1)            # (1, H+1)

    # h1-driven fusion: [w_hh1 | w_query | w_po_out]            (H, 4H+H+H+1)
    w_h1 = jnp.concatenate([p["w_hh1"], p["w_query"], w_po_out], axis=1)

    # [context | h0_prev] fusion: [[w_ih0_ctx, w_po_ctx], [w_hh0, 0]]  (2HE+H, 4H+H+1)
    w_ctx_h0 = jnp.concatenate([
        jnp.concatenate([w_ih0_ctx, w_po_ctx], axis=1),
        jnp.concatenate([p["w_hh0"], jnp.zeros((H, H + 1), F32)], axis=1),
    ], axis=0)

    # teacher-forcing prefix: [w_ih0_prev | w_po_prev]          (E, 4H+H+1)
    w_prefix = jnp.concatenate([w_ih0_prev, w_po_prev], axis=1)

    w_energy_r = p["w_energy"].T.reshape(1, 1, H)   # lane-major energy vector (f32, VPU)

    return (p["w_bridge"].astype(BF16), p["b_bridge"], p["w_key"].astype(BF16),
            w_energy_r, w_h1.astype(BF16), w_ctx_h0.astype(BF16),
            w_ih0_edit.astype(BF16), p["b0"], p["w_ih1"].astype(BF16), p["b1"],
            b_po, w_prefix.astype(BF16))


def decoder_forward(params, trg_embed, edit_final, encoder_output, encoder_final, src_mask):
    """Mirrors Decoder.forward (teacher forcing, states_to_initialize=None)."""
    edit_h, edit_c = edit_final
    enc_h, enc_c = encoder_final

    trg_tbe = jnp.transpose(trg_embed, (1, 0, 2))            # (T, B, E) time-major
    mask3d = src_mask[:, 0, :, None]                         # (B, S, 1)
    bridge_in = jnp.concatenate(
        [jnp.concatenate([enc_h, edit_h], axis=-1),
         jnp.concatenate([enc_c, edit_c], axis=-1)], axis=0)  # (2L, B, 2HE+2HD)
    edit_last = edit_h[-1]                                    # (B, 2HD)

    weights = _prepare_weights(params)
    inputs = (trg_tbe, encoder_output, mask3d, bridge_in, edit_last) + weights

    out_shape = (
        jax.ShapeDtypeStruct((T, B, PACK), F32),      # packed [dec | pre | p_gen | pad]
        jax.ShapeDtypeStruct((T, B, S, 1), F32),      # attention probs
        jax.ShapeDtypeStruct((B, 4 * H), F32),        # packed [h0 | h1 | c0 | c1]
    )

    # Single invocation: everything (a few KB) lives in VMEM; the whole T-step
    # recurrence runs inside one kernel — no per-step pipeline overhead.
    # TODO(synk): for production batch sizes on v7x, split B over a "parallel"
    # grid axis to use both TensorCores; at B=2 it is not worth it.
    packed, attn4, state = pl.pallas_call(decoder_kernel, out_shape=out_shape)(*inputs)

    dec = packed[:, :, 0:H]
    pre = packed[:, :, H:2 * H]
    pgen = packed[:, :, 2 * H]

    decoder_states = jnp.transpose(dec, (1, 0, 2))             # (B, T, H)
    pre_output_vectors = jnp.transpose(pre, (1, 0, 2))         # (B, T, H)
    p_gen_probs = jnp.transpose(pgen, (1, 0))                  # (B, T)
    attn_probs = jnp.transpose(attn4[:, :, :, 0], (1, 0, 2))   # (B, T, S)
    hfin = jnp.stack([state[:, 0:H], state[:, H:2 * H]])
    cfin = jnp.stack([state[:, 2 * H:3 * H], state[:, 3 * H:4 * H]])
    return decoder_states, (hfin, cfin), pre_output_vectors, p_gen_probs, attn_probs


# ---------------- pure-JAX reference (same semantics as the PyTorch module) ----------------
def _lstm_cell_ref(x, h, c, w_ih, w_hh, b):
    hi = jax.lax.Precision.HIGHEST
    gates = (jnp.dot(x, w_ih, precision=hi, preferred_element_type=F32)
             + jnp.dot(h, w_hh, precision=hi, preferred_element_type=F32) + b)
    i, f, g, o = jnp.split(gates, 4, axis=-1)
    c_new = jax.nn.sigmoid(f) * c + jax.nn.sigmoid(i) * jnp.tanh(g)
    h_new = jax.nn.sigmoid(o) * jnp.tanh(c_new)
    return h_new, c_new


def decoder_reference(p, trg_embed, edit_final, encoder_output, encoder_final, src_mask):
    hi = jax.lax.Precision.HIGHEST
    edit_h, edit_c = edit_final
    enc_h, enc_c = encoder_final
    hidden = jnp.tanh(jnp.einsum('lbk,kh->lbh', jnp.concatenate([enc_h, edit_h], -1),
                                 p['w_bridge'], precision=hi) + p['b_bridge'])
    cell = jnp.tanh(jnp.einsum('lbk,kh->lbh', jnp.concatenate([enc_c, edit_c], -1),
                               p['w_bridge'], precision=hi) + p['b_bridge'])
    projkey = jnp.einsum('bsk,kh->bsh', encoder_output, p['w_key'], precision=hi)
    mask = src_mask[:, 0, :]
    dec, pre, pg, att = [], [], [], []
    for t in range(T):
        prev = trg_embed[:, t]
        query = hidden[-1]
        qproj = jnp.dot(query, p['w_query'], precision=hi)
        energy = jnp.tanh(qproj[:, None, :] + projkey)
        scores = jnp.einsum('bsh,ho->bs', energy, p['w_energy'], precision=hi)
        scores = jnp.where(mask == 0.0, NEG, scores)
        alphas = jax.nn.softmax(scores, axis=-1)
        context = jnp.einsum('bs,bsk->bk', alphas, encoder_output, precision=hi)
        rnn_in = jnp.concatenate([prev, context, edit_h[-1]], -1)
        h0, c0 = _lstm_cell_ref(rnn_in, hidden[0], cell[0], p['w_ih0'], p['w_hh0'], p['b0'])
        h1, c1 = _lstm_cell_ref(h0, hidden[1], cell[1], p['w_ih1'], p['w_hh1'], p['b1'])
        hidden = jnp.stack([h0, h1])
        cell = jnp.stack([c0, c1])
        output = h1
        pre_o = jnp.dot(jnp.concatenate([prev, output, context], -1), p['w_pre'],
                        precision=hi)
        pgen = jax.nn.sigmoid(jnp.dot(jnp.concatenate([context, output, prev], -1),
                                      p['w_pg'], precision=hi) + p['b_pg'])
        dec.append(output); pre.append(pre_o); pg.append(pgen[:, 0]); att.append(alphas)
    return (jnp.stack(dec, 1), (hidden, cell), jnp.stack(pre, 1),
            jnp.stack(pg, 1), jnp.stack(att, 1))


# ---------------- main ----------------
if __name__ == "__main__":
    key = jax.random.PRNGKey(0)
    ks = jax.random.split(key, 24)
    sc = 0.1

    params = {
        "w_bridge": jax.random.normal(ks[0], (2 * HE + 2 * HD, H), F32) * sc,
        "b_bridge": jax.random.normal(ks[1], (1, H), F32) * sc,
        "w_key":    jax.random.normal(ks[2], (2 * HE, H), F32) * sc,
        "w_query":  jax.random.normal(ks[3], (H, H), F32) * sc,
        "w_energy": jax.random.normal(ks[4], (H, 1), F32) * sc,
        "w_ih0":    jax.random.normal(ks[5], (E + 2 * HE + 2 * HD, 4 * H), F32) * sc,
        "w_hh0":    jax.random.normal(ks[6], (H, 4 * H), F32) * sc,
        "b0":       jax.random.normal(ks[7], (1, 4 * H), F32) * sc,
        "w_ih1":    jax.random.normal(ks[8], (H, 4 * H), F32) * sc,
        "w_hh1":    jax.random.normal(ks[9], (H, 4 * H), F32) * sc,
        "b1":       jax.random.normal(ks[10], (1, 4 * H), F32) * sc,
        "w_pre":    jax.random.normal(ks[11], (E + H + 2 * HE, H), F32) * sc,
        "w_pg":     jax.random.normal(ks[12], (2 * HE + H + E, 1), F32) * sc,
        "b_pg":     jax.random.normal(ks[13], (1, 1), F32) * sc,
    }

    trg_embed = jax.random.normal(ks[14], (B, T, E), F32)
    encoder_output = jax.random.normal(ks[15], (B, S, 2 * HE), F32)
    edit_h = jax.random.normal(ks[16], (L, B, 2 * HD), F32)
    edit_c = jax.random.normal(ks[17], (L, B, 2 * HD), F32)
    enc_h = jax.random.normal(ks[18], (L, B, 2 * HE), F32)
    enc_c = jax.random.normal(ks[19], (L, B, 2 * HE), F32)
    lengths = jnp.array([S, S - 3], dtype=jnp.int32)
    src_mask = (jnp.arange(S)[None, :] < lengths[:, None]).astype(F32)[:, None, :]

    outs = decoder_forward(params, trg_embed, (edit_h, edit_c), encoder_output,
                           (enc_h, enc_c), src_mask)
    outs = jax.block_until_ready(outs)

    ref = decoder_reference(params, trg_embed, (edit_h, edit_c), encoder_output,
                            (enc_h, enc_c), src_mask)

    dec_k, (h_k, c_k), pre_k, pg_k, att_k = outs
    dec_r, (h_r, c_r), pre_r, pg_r, att_r = ref

    # Kernel uses bf16 MXU operands (f32 accumulate) vs. an f32-HIGHEST
    # reference; 3e-2 absorbs the operand-rounding drift over the T=6
    # recurrence while still catching any structural error (O(0.1..1)).
    def close(a, b):
        return bool(jnp.allclose(a, b, atol=3e-2, rtol=3e-2))

    ok = (close(dec_k, dec_r) and close(h_k, h_r) and close(c_k, c_r)
          and close(pre_k, pre_r) and close(pg_k, pg_r) and close(att_k, att_r))
    assert ok, "Pallas decoder kernel does not match JAX reference"
    print("KERNEL_OK")
</pallas_src>

<mosaic_0001>
module attributes {stable_mosaic.version = 11 : i64} {
  func.func @decoder_kernel(%arg0: memref<6x2x16xf32, #tpu.memory_space<vmem>>, %arg1: memref<2x8x32xf32, #tpu.memory_space<vmem>>, %arg2: memref<2x8x1xf32, #tpu.memory_space<vmem>>, %arg3: memref<4x2x48xf32, #tpu.memory_space<vmem>>, %arg4: memref<2x16xf32, #tpu.memory_space<vmem>>, %arg5: memref<48x32xbf16, #tpu.memory_space<vmem>>, %arg6: memref<1x32xf32, #tpu.memory_space<vmem>>, %arg7: memref<32x32xbf16, #tpu.memory_space<vmem>>, %arg8: memref<1x1x32xf32, #tpu.memory_space<vmem>>, %arg9: memref<32x193xbf16, #tpu.memory_space<vmem>>, %arg10: memref<64x161xbf16, #tpu.memory_space<vmem>>, %arg11: memref<16x128xbf16, #tpu.memory_space<vmem>>, %arg12: memref<1x128xf32, #tpu.memory_space<vmem>>, %arg13: memref<32x128xbf16, #tpu.memory_space<vmem>>, %arg14: memref<1x128xf32, #tpu.memory_space<vmem>>, %arg15: memref<1x33xf32, #tpu.memory_space<vmem>>, %arg16: memref<16x161xbf16, #tpu.memory_space<vmem>>, %arg17: memref<6x2x128xf32, #tpu.memory_space<vmem>>, %arg18: memref<6x2x8x1xf32, #tpu.memory_space<vmem>>, %arg19: memref<2x128xf32, #tpu.memory_space<vmem>>) attributes {dimension_semantics = [], scalar_prefetch = 0 : i64, scratch_operands = 0 : i64, tpu.core_type = #tpu.core_type<tc>} {
    %c0 = arith.constant 0 : index
    %c0_0 = arith.constant 0 : index
    %c0_1 = arith.constant 0 : index
    %0 = vector.load %arg3[%c0, %c0_0, %c0_1] : memref<4x2x48xf32, #tpu.memory_space<vmem>>, vector<4x2x48xf32>
    %1 = vector.shape_cast %0 : vector<4x2x48xf32> to vector<8x48xf32>
    %2 = arith.truncf %1 : vector<8x48xf32> to vector<8x48xbf16>
    %c0_2 = arith.constant 0 : index
    %c0_3 = arith.constant 0 : index
    %3 = vector.load %arg5[%c0_2, %c0_3] : memref<48x32xbf16, #tpu.memory_space<vmem>>, vector<48x32xbf16>
    %cst = arith.constant dense<0.000000e+00> : vector<8x32xf32>
    %4 = tpu.matmul %2, %3, %cst {dimension_numbers = #tpu.dot_dimension_numbers<[1], [0], [0], [1], [0, 0, 1, 1], [], []>} : vector<8x48xbf16>, vector<48x32xbf16>, vector<8x32xf32> -> vector<8x32xf32>
    %c0_4 = arith.constant 0 : index
    %c0_5 = arith.constant 0 : index
    %5 = vector.load %arg6[%c0_4, %c0_5] : memref<1x32xf32, #tpu.memory_space<vmem>>, vector<1x32xf32>
    %6 = vector.broadcast %5 : vector<1x32xf32> to vector<8x32xf32>
    %7 = arith.addf %4, %6 : vector<8x32xf32>
    %8 = math.tanh %7 : vector<8x32xf32>
    %9 = vector.extract_strided_slice %8 {offsets = [0, 0], sizes = [2, 32], strides = [1, 1]} : vector<8x32xf32> to vector<2x32xf32>
    %10 = vector.extract_strided_slice %8 {offsets = [2, 0], sizes = [2, 32], strides = [1, 1]} : vector<8x32xf32> to vector<2x32xf32>
    %11 = vector.extract_strided_slice %8 {offsets = [4, 0], sizes = [2, 32], strides = [1, 1]} : vector<8x32xf32> to vector<2x32xf32>
    %12 = vector.extract_strided_slice %8 {offsets = [6, 0], sizes = [2, 32], strides = [1, 1]} : vector<8x32xf32> to vector<2x32xf32>
    %c0_6 = arith.constant 0 : index
    %c0_7 = arith.constant 0 : index
    %c0_8 = arith.constant 0 : index
    %13 = vector.load %arg1[%c0_6, %c0_7, %c0_8] : memref<2x8x32xf32, #tpu.memory_space<vmem>>, vector<2x8x32xf32>
    %14 = vector.shape_cast %13 : vector<2x8x32xf32> to vector<16x32xf32>
    %15 = arith.truncf %14 : vector<16x32xf32> to vector<16x32xbf16>
    %c0_9 = arith.constant 0 : index
    %c0_10 = arith.constant 0 : index
    %16 = vector.load %arg7[%c0_9, %c0_10] : memref<32x32xbf16, #tpu.memory_space<vmem>>, vector<32x32xbf16>
    %cst_11 = arith.constant dense<0.000000e+00> : vector<16x32xf32>
    %17 = tpu.matmul %15, %16, %cst_11 {dimension_numbers = #tpu.dot_dimension_numbers<[1], [0], [0], [1], [0, 0, 1, 1], [], []>} : vector<16x32xbf16>, vector<32x32xbf16>, vector<16x32xf32> -> vector<16x32xf32>
    %18 = vector.shape_cast %17 : vector<16x32xf32> to vector<2x8x32xf32>
    %c0_12 = arith.constant 0 : index
    %c0_13 = arith.constant 0 : index
    %c0_14 = arith.constant 0 : index
    %19 = vector.load %arg0[%c0_12, %c0_13, %c0_14] : memref<6x2x16xf32, #tpu.memory_space<vmem>>, vector<6x2x16xf32>
    %20 = vector.shape_cast %19 : vector<6x2x16xf32> to vector<12x16xf32>
    %21 = arith.truncf %20 : vector<12x16xf32> to vector<12x16xbf16>
    %c0_15 = arith.constant 0 : index
    %c0_16 = arith.constant 0 : index
    %22 = vector.load %arg16[%c0_15, %c0_16] : memref<16x161xbf16, #tpu.memory_space<vmem>>, vector<16x161xbf16>
    %cst_17 = arith.constant dense<0.000000e+00> : vector<12x161xf32>
    %23 = tpu.matmul %21, %22, %cst_17 {dimension_numbers = #tpu.dot_dimension_numbers<[1], [0], [0], [1], [0, 0, 1, 1], [], []>} : vector<12x16xbf16>, vector<16x161xbf16>, vector<12x161xf32> -> vector<12x161xf32>
    %c0_18 = arith.constant 0 : index
    %c0_19 = arith.constant 0 : index
    %24 = vector.load %arg4[%c0_18, %c0_19] : memref<2x16xf32, #tpu.memory_space<vmem>>, vector<2x16xf32>
    %25 = arith.truncf %24 : vector<2x16xf32> to vector<2x16xbf16>
    %c0_20 = arith.constant 0 : index
    %c0_21 = arith.constant 0 : index
    %26 = vector.load %arg11[%c0_20, %c0_21] : memref<16x128xbf16, #tpu.memory_space<vmem>>, vector<16x128xbf16>
    %cst_22 = arith.constant dense<0.000000e+00> : vector<2x128xf32>
    %27 = tpu.matmul %25, %26, %cst_22 {dimension_numbers = #tpu.dot_dimension_numbers<[1], [0], [0], [1], [0, 0, 1, 1], [], []>} : vector<2x16xbf16>, vector<16x128xbf16>, vector<2x128xf32> -> vector<2x128xf32>
    %c0_23 = arith.constant 0 : index
    %c0_24 = arith.constant 0 : index
    %28 = vector.load %arg12[%c0_23, %c0_24] : memref<1x128xf32, #tpu.memory_space<vmem>>, vector<1x128xf32>
    %29 = vector.broadcast %28 : vector<1x128xf32> to vector<2x128xf32>
    %30 = arith.addf %27, %29 : vector<2x128xf32>
    %c0_25 = arith.constant 0 : index
    %c0_26 = arith.constant 0 : index
    %c0_27 = arith.constant 0 : index
    %31 = vector.load %arg8[%c0_25, %c0_26, %c0_27] : memref<1x1x32xf32, #tpu.memory_space<vmem>>, vector<1x1x32xf32>
    %c0_28 = arith.constant 0 : index
    %c0_29 = arith.constant 0 : index
    %32 = vector.load %arg9[%c0_28, %c0_29] : memref<32x193xbf16, #tpu.memory_space<vmem>>, vector<32x193xbf16>
    %c0_30 = arith.constant 0 : index
    %c0_31 = arith.constant 0 : index
    %33 = vector.load %arg10[%c0_30, %c0_31] : memref<64x161xbf16, #tpu.memory_space<vmem>>, vector<64x161xbf16>
    %c0_32 = arith.constant 0 : index
    %c0_33 = arith.constant 0 : index
    %34 = vector.load %arg13[%c0_32, %c0_33] : memref<32x128xbf16, #tpu.memory_space<vmem>>, vector<32x128xbf16>
    %c0_34 = arith.constant 0 : index
    %c0_35 = arith.constant 0 : index
    %35 = vector.load %arg14[%c0_34, %c0_35] : memref<1x128xf32, #tpu.memory_space<vmem>>, vector<1x128xf32>
    %c0_36 = arith.constant 0 : index
    %c0_37 = arith.constant 0 : index
    %36 = vector.load %arg15[%c0_36, %c0_37] : memref<1x33xf32, #tpu.memory_space<vmem>>, vector<1x33xf32>
    %c0_38 = arith.constant 0 : index
    %c0_39 = arith.constant 0 : index
    %c0_40 = arith.constant 0 : index
    %37 = vector.load %arg2[%c0_38, %c0_39, %c0_40] : memref<2x8x1xf32, #tpu.memory_space<vmem>>, vector<2x8x1xf32>
    %cst_41 = arith.constant 0.000000e+00 : f32
    %38 = vector.broadcast %cst_41 : f32 to vector<2x8x1xf32>
    %39 = arith.cmpf oeq, %37, %38 : vector<2x8x1xf32>
    %cst_42 = arith.constant -1.000000e+30 : f32
    %cst_43 = arith.constant 0.000000e+00 : f32
    %40 = vector.broadcast %cst_42 : f32 to vector<2x8x1xf32>
    %41 = vector.broadcast %cst_43 : f32 to vector<2x8x1xf32>
    %42 = arith.select %39, %40, %41 : vector<2x8x1xi1>, vector<2x8x1xf32>
    %43 = arith.truncf %10 : vector<2x32xf32> to vector<2x32xbf16>
    %cst_44 = arith.constant dense<0.000000e+00> : vector<2x193xf32>
    %44 = tpu.matmul %43, %32, %cst_44 {dimension_numbers = #tpu.dot_dimension_numbers<[1], [0], [0], [1], [0, 0, 1, 1], [], []>} : vector<2x32xbf16>, vector<32x193xbf16>, vector<2x193xf32> -> vector<2x193xf32>
    %45 = vector.extract_strided_slice %44 {offsets = [0, 0], sizes = [2, 128], strides = [1, 1]} : vector<2x193xf32> to vector<2x128xf32>
    %46 = vector.extract_strided_slice %44 {offsets = [0, 128], sizes = [2, 32], strides = [1, 1]} : vector<2x193xf32> to vector<2x32xf32>
    %47 = vector.shape_cast %46 : vector<2x32xf32> to vector<2x1x32xf32>
    %48 = vector.broadcast %47 : vector<2x1x32xf32> to vector<2x8x32xf32>
    %49 = arith.addf %48, %18 : vector<2x8x32xf32>
    %50 = math.tanh %49 : vector<2x8x32xf32>
    %51 = vector.broadcast %31 : vector<1x1x32xf32> to vector<2x8x32xf32>
    %52 = arith.mulf %50, %51 : vector<2x8x32xf32>
    %cst_45 = arith.constant dense<0.000000e+00> : vector<2x8xf32>
    %53 = vector.multi_reduction <add>, %52, %cst_45 [2] : vector<2x8x32xf32> to vector<2x8xf32>
    %54 = vector.shape_cast %53 : vector<2x8xf32> to vector<2x8x1xf32>
    %55 = arith.addf %54, %42 : vector<2x8x1xf32>
    %cst_46 = arith.constant dense<0xFF800000> : vector<2x1xf32>
    %56 = vector.multi_reduction <maximumf>, %55, %cst_46 [1] : vector<2x8x1xf32> to vector<2x1xf32>
    %57 = vector.shape_cast %56 : vector<2x1xf32> to vector<2x1x1xf32>
    %58 = vector.broadcast %57 : vector<2x1x1xf32> to vector<2x8x1xf32>
    %59 = arith.subf %55, %58 : vector<2x8x1xf32>
    %60 = math.exp %59 : vector<2x8x1xf32>
    %cst_47 = arith.constant dense<0.000000e+00> : vector<2x1xf32>
    %61 = vector.multi_reduction <add>, %60, %cst_47 [1] : vector<2x8x1xf32> to vector<2x1xf32>
    %62 = vector.shape_cast %61 : vector<2x1xf32> to vector<2x1x1xf32>
    %63 = tpu.reciprocal %62 {approx = true} : vector<2x1x1xf32> -> vector<2x1x1xf32>
    %64 = vector.broadcast %63 : vector<2x1x1xf32> to vector<2x8x1xf32>
    %65 = arith.mulf %60, %64 : vector<2x8x1xf32>
    %66 = vector.broadcast %65 : vector<2x8x1xf32> to vector<2x8x32xf32>
    %67 = arith.mulf %66, %13 : vector<2x8x32xf32>
    %cst_48 = arith.constant dense<0.000000e+00> : vector<2x32xf32>
    %68 = vector.multi_reduction <add>, %67, %cst_48 [1] : vector<2x8x32xf32> to vector<2x32xf32>
    %69 = tpu.concatenate %68, %9 in 1 : vector<2x32xf32>, vector<2x32xf32> -> vector<2x64xf32>
    %70 = arith.truncf %69 : vector<2x64xf32> to vector<2x64xbf16>
    %cst_49 = arith.constant dense<0.000000e+00> : vector<2x161xf32>
    %71 = tpu.matmul %70, %33, %cst_49 {dimension_numbers = #tpu.dot_dimension_numbers<[1], [0], [0], [1], [0, 0, 1, 1], [], []>} : vector<2x64xbf16>, vector<64x161xbf16>, vector<2x161xf32> -> vector<2x161xf32>
    %72 = vector.extract_strided_slice %23 {offsets = [0, 0], sizes = [2, 128], strides = [1, 1]} : vector<12x161xf32> to vector<2x128xf32>
    %73 = vector.extract_strided_slice %71 {offsets = [0, 0], sizes = [2, 128], strides = [1, 1]} : vector<2x161xf32> to vector<2x128xf32>
    %74 = arith.addf %72, %73 : vector<2x128xf32>
    %75 = arith.addf %74, %30 : vector<2x128xf32>
    %76 = arith.negf %75 : vector<2x128xf32>
    %77 = math.exp %76 : vector<2x128xf32>
    %cst_50 = arith.constant 1.000000e+00 : f32
    %78 = vector.broadcast %cst_50 : f32 to vector<2x128xf32>
    %79 = arith.addf %78, %77 : vector<2x128xf32>
    %80 = arith.divf %78, %79 : vector<2x128xf32>
    %81 = math.tanh %75 : vector<2x128xf32>
    %82 = vector.extract_strided_slice %80 {offsets = [0, 0], sizes = [2, 32], strides = [1, 1]} : vector<2x128xf32> to vector<2x32xf32>
    %83 = vector.extract_strided_slice %80 {offsets = [0, 32], sizes = [2, 32], strides = [1, 1]} : vector<2x128xf32> to vector<2x32xf32>
    %84 = vector.extract_strided_slice %81 {offsets = [0, 64], sizes = [2, 32], strides = [1, 1]} : vector<2x128xf32> to vector<2x32xf32>
    %85 = vector.extract_strided_slice %80 {offsets = [0, 96], sizes = [2, 32], strides = [1, 1]} : vector<2x128xf32> to vector<2x32xf32>
    %86 = arith.mulf %83, %11 : vector<2x32xf32>
    %87 = arith.mulf %82, %84 : vector<2x32xf32>
    %88 = arith.addf %86, %87 : vector<2x32xf32>
    %89 = math.tanh %88 : vector<2x32xf32>
    %90 = arith.mulf %85, %89 : vector<2x32xf32>
    %91 = arith.truncf %90 : vector<2x32xf32> to vector<2x32xbf16>
    %cst_51 = arith.constant dense<0.000000e+00> : vector<2x128xf32>
    %92 = tpu.matmul %91, %34, %cst_51 {dimension_numbers = #tpu.dot_dimension_numbers<[1], [0], [0], [1], [0, 0, 1, 1], [], []>} : vector<2x32xbf16>, vector<32x128xbf16>, vector<2x128xf32> -> vector<2x128xf32>
    %93 = arith.addf %92, %45 : vector<2x128xf32>
    %94 = vector.broadcast %35 : vector<1x128xf32> to vector<2x128xf32>
    %95 = arith.addf %93, %94 : vector<2x128xf32>
    %96 = arith.negf %95 : vector<2x128xf32>
    %97 = math.exp %96 : vector<2x128xf32>
    %cst_52 = arith.constant 1.000000e+00 : f32
    %98 = vector.broadcast %cst_52 : f32 to vector<2x128xf32>
    %99 = arith.addf %98, %97 : vector<2x128xf32>
    %100 = arith.divf %98, %99 : vector<2x128xf32>
    %101 = math.tanh %95 : vector<2x128xf32>
    %102 = vector.extract_strided_slice %100 {offsets = [0, 0], sizes = [2, 32], strides = [1, 1]} : vector<2x128xf32> to vector<2x32xf32>
    %103 = vector.extract_strided_slice %100 {offsets = [0, 32], sizes = [2, 32], strides = [1, 1]} : vector<2x128xf32> to vector<2x32xf32>
    %104 = vector.extract_strided_slice %101 {offsets = [0, 64], sizes = [2, 32], strides = [1, 1]} : vector<2x128xf32> to vector<2x32xf32>
    %105 = vector.extract_strided_slice %100 {offsets = [0, 96], sizes = [2, 32], strides = [1, 1]} : vector<2x128xf32> to vector<2x32xf32>
    %106 = arith.mulf %103, %12 : vector<2x32xf32>
    %107 = arith.mulf %102, %104 : vector<2x32xf32>
    %108 = arith.addf %106, %107 : vector<2x32xf32>
    %109 = math.tanh %108 : vector<2x32xf32>
    %110 = arith.mulf %105, %109 : vector<2x32xf32>
    %111 = arith.truncf %110 : vector<2x32xf32> to vector<2x32xbf16>
    %cst_53 = arith.constant dense<0.000000e+00> : vector<2x193xf32>
    %112 = tpu.matmul %111, %32, %cst_53 {dimension_numbers = #tpu.dot_dimension_numbers<[1], [0], [0], [1], [0, 0, 1, 1], [], []>} : vector<2x32xbf16>, vector<32x193xbf16>, vector<2x193xf32> -> vector<2x193xf32>
    %113 = vector.extract_strided_slice %23 {offsets = [0, 128], sizes = [2, 33], strides = [1, 1]} : vector<12x161xf32> to vector<2x33xf32>
    %114 = vector.extract_strided_slice %71 {offsets = [0, 128], sizes = [2, 33], strides = [1, 1]} : vector<2x161xf32> to vector<2x33xf32>
    %115 = arith.addf %113, %114 : vector<2x33xf32>
    %116 = vector.extract_strided_slice %112 {offsets = [0, 160], sizes = [2, 33], strides = [1, 1]} : vector<2x193xf32> to vector<2x33xf32>
    %117 = arith.addf %115, %116 : vector<2x33xf32>
    %118 = vector.broadcast %36 : vector<1x33xf32> to vector<2x33xf32>
    %119 = arith.addf %117, %118 : vector<2x33xf32>
    %120 = vector.extract_strided_slice %112 {offsets = [0, 0], sizes = [2, 128], strides = [1, 1]} : vector<2x193xf32> to vector<2x128xf32>
    %121 = vector.extract_strided_slice %112 {offsets = [0, 128], sizes = [2, 32], strides = [1, 1]} : vector<2x193xf32> to vector<2x32xf32>
    %122 = vector.shape_cast %121 : vector<2x32xf32> to vector<2x1x32xf32>
    %123 = vector.broadcast %122 : vector<2x1x32xf32> to vector<2x8x32xf32>
    %124 = arith.addf %123, %18 : vector<2x8x32xf32>
    %125 = math.tanh %124 : vector<2x8x32xf32>
    %126 = vector.broadcast %31 : vector<1x1x32xf32> to vector<2x8x32xf32>
    %127 = arith.mulf %125, %126 : vector<2x8x32xf32>
    %cst_54 = arith.constant dense<0.000000e+00> : vector<2x8xf32>
    %128 = vector.multi_reduction <add>, %127, %cst_54 [2] : vector<2x8x32xf32> to vector<2x8xf32>
    %129 = vector.shape_cast %128 : vector<2x8xf32> to vector<2x8x1xf32>
    %130 = arith.addf %129, %42 : vector<2x8x1xf32>
    %cst_55 = arith.constant dense<0xFF800000> : vector<2x1xf32>
    %131 = vector.multi_reduction <maximumf>, %130, %cst_55 [1] : vector<2x8x1xf32> to vector<2x1xf32>
    %132 = vector.shape_cast %131 : vector<2x1xf32> to vector<2x1x1xf32>
    %133 = vector.broadcast %132 : vector<2x1x1xf32> to vector<2x8x1xf32>
    %134 = arith.subf %130, %133 : vector<2x8x1xf32>
    %135 = math.exp %134 : vector<2x8x1xf32>
    %cst_56 = arith.constant dense<0.000000e+00> : vector<2x1xf32>
    %136 = vector.multi_reduction <add>, %135, %cst_56 [1] : vector<2x8x1xf32> to vector<2x1xf32>
    %137 = vector.shape_cast %136 : vector<2x1xf32> to vector<2x1x1xf32>
    %138 = tpu.reciprocal %137 {approx = true} : vector<2x1x1xf32> -> vector<2x1x1xf32>
    %139 = vector.broadcast %138 : vector<2x1x1xf32> to vector<2x8x1xf32>
    %140 = arith.mulf %135, %139 : vector<2x8x1xf32>
    %141 = vector.broadcast %140 : vector<2x8x1xf32> to vector<2x8x32xf32>
    %142 = arith.mulf %141, %13 : vector<2x8x32xf32>
    %cst_57 = arith.constant dense<0.000000e+00> : vector<2x32xf32>
    %143 = vector.multi_reduction <add>, %142, %cst_57 [1] : vector<2x8x32xf32> to vector<2x32xf32>
    %144 = tpu.concatenate %143, %90 in 1 : vector<2x32xf32>, vector<2x32xf32> -> vector<2x64xf32>
    %145 = arith.truncf %144 : vector<2x64xf32> to vector<2x64xbf16>
    %cst_58 = arith.constant dense<0.000000e+00> : vector<2x161xf32>
    %146 = tpu.matmul %145, %33, %cst_58 {dimension_numbers = #tpu.dot_dimension_numbers<[1], [0], [0], [1], [0, 0, 1, 1], [], []>} : vector<2x64xbf16>, vector<64x161xbf16>, vector<2x161xf32> -> vector<2x161xf32>
    %147 = vector.extract_strided_slice %23 {offsets = [2, 0], sizes = [2, 128], strides = [1, 1]} : vector<12x161xf32> to vector<2x128xf32>
    %148 = vector.extract_strided_slice %146 {offsets = [0, 0], sizes = [2, 128], strides = [1, 1]} : vector<2x161xf32> to vector<2x128xf32>
    %149 = arith.addf %147, %148 : vector<2x128xf32>
    %150 = arith.addf %149, %30 : vector<2x128xf32>
    %151 = arith.negf %150 : vector<2x128xf32>
    %152 = math.exp %151 : vector<2x128xf32>
    %cst_59 = arith.constant 1.000000e+00 : f32
    %153 = vector.broadcast %cst_59 : f32 to vector<2x128xf32>
    %154 = arith.addf %153, %152 : vector<2x128xf32>
    %155 = arith.divf %153, %154 : vector<2x128xf32>
    %156 = math.tanh %150 : vector<2x128xf32>
    %157 = vector.extract_strided_slice %155 {offsets = [0, 0], sizes = [2, 32], strides = [1, 1]} : vector<2x128xf32> to vector<2x32xf32>
    %158 = vector.extract_strided_slice %155 {offsets = [0, 32], sizes = [2, 32], strides = [1, 1]} : vector<2x128xf32> to vector<2x32xf32>
    %159 = vector.extract_strided_slice %156 {offsets = [0, 64], sizes = [2, 32], strides = [1, 1]} : vector<2x128xf32> to vector<2x32xf32>
    %160 = vector.extract_strided_slice %155 {offsets = [0, 96], sizes = [2, 32], strides = [1, 1]} : vector<2x128xf32> to vector<2x32xf32>
    %161 = arith.mulf %158, %88 : vector<2x32xf32>
    %162 = arith.mulf %157, %159 : vector<2x32xf32>
    %163 = arith.addf %161, %162 : vector<2x32xf32>
    %164 = math.tanh %163 : vector<2x32xf32>
    %165 = arith.mulf %160, %164 : vector<2x32xf32>
    %166 = arith.truncf %165 : vector<2x32xf32> to vector<2x32xbf16>
    %cst_60 = arith.constant dense<0.000000e+00> : vector<2x128xf32>
    %167 = tpu.matmul %166, %34, %cst_60 {dimension_numbers = #tpu.dot_dimension_numbers<[1], [0], [0], [1], [0, 0, 1, 1], [], []>} : vector<2x32xbf16>, vector<32x128xbf16>, vector<2x128xf32> -> vector<2x128xf32>
    %168 = arith.addf %167, %120 : vector<2x128xf32>
    %169 = vector.broadcast %35 : vector<1x128xf32> to vector<2x128xf32>
    %170 = arith.addf %168, %169 : vector<2x128xf32>
    %171 = arith.negf %170 : vector<2x128xf32>
    %172 = math.exp %171 : vector<2x128xf32>
    %cst_61 = arith.constant 1.000000e+00 : f32
    %173 = vector.broadcast %cst_61 : f32 to vector<2x128xf32>
    %174 = arith.addf %173, %172 : vector<2x128xf32>
    %175 = arith.divf %173, %174 : vector<2x128xf32>
    %176 = math.tanh %170 : vector<2x128xf32>
    %177 = vector.extract_strided_slice %175 {offsets = [0, 0], sizes = [2, 32], strides = [1, 1]} : vector<2x128xf32> to vector<2x32xf32>
    %178 = vector.extract_strided_slice %175 {offsets = [0, 32], sizes = [2, 32], strides = [1, 1]} : vector<2x128xf32> to vector<2x32xf32>
    %179 = vector.extract_strided_slice %176 {offsets = [0, 64], sizes = [2, 32], strides = [1, 1]} : vector<2x128xf32> to vector<2x32xf32>
    %180 = vector.extract_strided_slice %175 {offsets = [0, 96], sizes = [2, 32], strides = [1, 1]} : vector<2x128xf32> to vector<2x32xf32>
    %181 = arith.mulf %178, %108 : vector<2x32xf32>
    %182 = arith.mulf %177, %179 : vector<2x32xf32>
    %183 = arith.addf %181, %182 : vector<2x32xf32>
    %184 = math.tanh %183 : vector<2x32xf32>
    %185 = arith.mulf %180, %184 : vector<2x32xf32>
    %186 = arith.truncf %185 : vector<2x32xf32> to vector<2x32xbf16>
    %cst_62 = arith.constant dense<0.000000e+00> : vector<2x193xf32>
    %187 = tpu.matmul %186, %32, %cst_62 {dimension_numbers = #tpu.dot_dimension_numbers<[1], [0], [0], [1], [0, 0, 1, 1], [], []>} : vector<2x32xbf16>, vector<32x193xbf16>, vector<2x193xf32> -> vector<2x193xf32>
    %188 = vector.extract_strided_slice %23 {offsets = [2, 128], sizes = [2, 33], strides = [1, 1]} : vector<12x161xf32> to vector<2x33xf32>
    %189 = vector.extract_strided_slice %146 {offsets = [0, 128], sizes = [2, 33], strides = [1, 1]} : vector<2x161xf32> to vector<2x33xf32>
    %190 = arith.addf %188, %189 : vector<2x33xf32>
    %191 = vector.extract_strided_slice %187 {offsets = [0, 160], sizes = [2, 33], strides = [1, 1]} : vector<2x193xf32> to vector<2x33xf32>
    %192 = arith.addf %190, %191 : vector<2x33xf32>
    %193 = vector.broadcast %36 : vector<1x33xf32> to vector<2x33xf32>
    %194 = arith.addf %192, %193 : vector<2x33xf32>
    %195 = vector.extract_strided_slice %187 {offsets = [0, 0], sizes = [2, 128], strides = [1, 1]} : vector<2x193xf32> to vector<2x128xf32>
    %196 = vector.extract_strided_slice %187 {offsets = [0, 128], sizes = [2, 32], strides = [1, 1]} : vector<2x193xf32> to vector<2x32xf32>
    %197 = vector.shape_cast %196 : vector<2x32xf32> to vector<2x1x32xf32>
    %198 = vector.broadcast %197 : vector<2x1x32xf32> to vector<2x8x32xf32>
    %199 = arith.addf %198, %18 : vector<2x8x32xf32>
    %200 = math.tanh %199 : vector<2x8x32xf32>
    %201 = vector.broadcast %31 : vector<1x1x32xf32> to vector<2x8x32xf32>
    %202 = arith.mulf %200, %201 : vector<2x8x32xf32>
    %cst_63 = arith.constant dense<0.000000e+00> : vector<2x8xf32>
    %203 = vector.multi_reduction <add>, %202, %cst_63 [2] : vector<2x8x32xf32> to vector<2x8xf32>
    %204 = vector.shape_cast %203 : vector<2x8xf32> to vector<2x8x1xf32>
    %205 = arith.addf %204, %42 : vector<2x8x1xf32>
    %cst_64 = arith.constant dense<0xFF800000> : vector<2x1xf32>
    %206 = vector.multi_reduction <maximumf>, %205, %cst_64 [1] : vector<2x8x1xf32> to vector<2x1xf32>
    %207 = vector.shape_cast %206 : vector<2x1xf32> to vector<2x1x1xf32>
    %208 = vector.broadcast %207 : vector<2x1x1xf32> to vector<2x8x1xf32>
    %209 = arith.subf %205, %208 : vector<2x8x1xf32>
    %210 = math.exp %209 : vector<2x8x1xf32>
    %cst_65 = arith.constant dense<0.000000e+00> : vector<2x1xf32>
    %211 = vector.multi_reduction <add>, %210, %cst_65 [1] : vector<2x8x1xf32> to vector<2x1xf32>
    %212 = vector.shape_cast %211 : vector<2x1xf32> to vector<2x1x1xf32>
    %213 = tpu.reciprocal %212 {approx = true} : vector<2x1x1xf32> -> vector<2x1x1xf32>
    %214 = vector.broadcast %213 : vector<2x1x1xf32> to vector<2x8x1xf32>
    %215 = arith.mulf %210, %214 : vector<2x8x1xf32>
    %216 = vector.broadcast %215 : vector<2x8x1xf32> to vector<2x8x32xf32>
    %217 = arith.mulf %216, %13 : vector<2x8x32xf32>
    %cst_66 = arith.constant dense<0.000000e+00> : vector<2x32xf32>
    %218 = vector.multi_reduction <add>, %217, %cst_66 [1] : vector<2x8x32xf32> to vector<2x32xf32>
    %219 = tpu.concatenate %218, %165 in 1 : vector<2x32xf32>, vector<2x32xf32> -> vector<2x64xf32>
    %220 = arith.truncf %219 : vector<2x64xf32> to vector<2x64xbf16>
    %cst_67 = arith.constant dense<0.000000e+00> : vector<2x161xf32>
    %221 = tpu.matmul %220, %33, %cst_67 {dimension_numbers = #tpu.dot_dimension_numbers<[1], [0], [0], [1], [0, 0, 1, 1], [], []>} : vector<2x64xbf16>, vector<64x161xbf16>, vector<2x161xf32> -> vector<2x161xf32>
    %222 = vector.extract_strided_slice %23 {offsets = [4, 0], sizes = [2, 128], strides = [1, 1]} : vector<12x161xf32> to vector<2x128xf32>
    %223 = vector.extract_strided_slice %221 {offsets = [0, 0], sizes = [2, 128], strides = [1, 1]} : vector<2x161xf32> to vector<2x128xf32>
    %224 = arith.addf %222, %223 : vector<2x128xf32>
    %225 = arith.addf %224, %30 : vector<2x128xf32>
    %226 = arith.negf %225 : vector<2x128xf32>
    %227 = math.exp %226 : vector<2x128xf32>
    %cst_68 = arith.constant 1.000000e+00 : f32
    %228 = vector.broadcast %cst_68 : f32 to vector<2x128xf32>
    %229 = arith.addf %228, %227 : vector<2x128xf32>
    %230 = arith.divf %228, %229 : vector<2x128xf32>
    %231 = math.tanh %225 : vector<2x128xf32>
    %232 = vector.extract_strided_slice %230 {offsets = [0, 0], sizes = [2, 32], strides = [1, 1]} : vector<2x128xf32> to vector<2x32xf32>
    %233 = vector.extract_strided_slice %230 {offsets = [0, 32], sizes = [2, 32], strides = [1, 1]} : vector<2x128xf32> to vector<2x32xf32>
    %234 = vector.extract_strided_slice %231 {offsets = [0, 64], sizes = [2, 32], strides = [1, 1]} : vector<2x128xf32> to vector<2x32xf32>
    %235 = vector.extract_strided_slice %230 {offsets = [0, 96], sizes = [2, 32], strides = [1, 1]} : vector<2x128xf32> to vector<2x32xf32>
    %236 = arith.mulf %233, %163 : vector<2x32xf32>
    %237 = arith.mulf %232, %234 : vector<2x32xf32>
    %238 = arith.addf %236, %237 : vector<2x32xf32>
    %239 = math.tanh %238 : vector<2x32xf32>
    %240 = arith.mulf %235, %239 : vector<2x32xf32>
    %241 = arith.truncf %240 : vector<2x32xf32> to vector<2x32xbf16>
    %cst_69 = arith.constant dense<0.000000e+00> : vector<2x128xf32>
    %242 = tpu.matmul %241, %34, %cst_69 {dimension_numbers = #tpu.dot_dimension_numbers<[1], [0], [0], [1], [0, 0, 1, 1], [], []>} : vector<2x32xbf16>, vector<32x128xbf16>, vector<2x128xf32> -> vector<2x128xf32>
    %243 = arith.addf %242, %195 : vector<2x128xf32>
    %244 = vector.broadcast %35 : vector<1x128xf32> to vector<2x128xf32>
    %245 = arith.addf %243, %244 : vector<2x128xf32>
    %246 = arith.negf %245 : vector<2x128xf32>
    %247 = math.exp %246 : vector<2x128xf32>
    %cst_70 = arith.constant 1.000000e+00 : f32
    %248 = vector.broadcast %cst_70 : f32 to vector<2x128xf32>
    %249 = arith.addf %248, %247 : vector<2x128xf32>
    %250 = arith.divf %248, %249 : vector<2x128xf32>
    %251 = math.tanh %245 : vector<2x128xf32>
    %252 = vector.extract_strided_slice %250 {offsets = [0, 0], sizes = [2, 32], strides = [1, 1]} : vector<2x128xf32> to vector<2x32xf32>
    %253 = vector.extract_strided_slice %250 {offsets = [0, 32], sizes = [2, 32], strides = [1, 1]} : vector<2x128xf32> to vector<2x32xf32>
    %254 = vector.extract_strided_slice %251 {offsets = [0, 64], sizes = [2, 32], strides = [1, 1]} : vector<2x128xf32> to vector<2x32xf32>
    %255 = vector.extract_strided_slice %250 {offsets = [0, 96], sizes = [2, 32], strides = [1, 1]} : vector<2x128xf32> to vector<2x32xf32>
    %256 = arith.mulf %253, %183 : vector<2x32xf32>
    %257 = arith.mulf %252, %254 : vector<2x32xf32>
    %258 = arith.addf %256, %257 : vector<2x32xf32>
    %259 = math.tanh %258 : vector<2x32xf32>
    %260 = arith.mulf %255, %259 : vector<2x32xf32>
    %261 = arith.truncf %260 : vector<2x32xf32> to vector<2x32xbf16>
    %cst_71 = arith.constant dense<0.000000e+00> : vector<2x193xf32>
    %262 = tpu.matmul %261, %32, %cst_71 {dimension_numbers = #tpu.dot_dimension_numbers<[1], [0], [0], [1], [0, 0, 1, 1], [], []>} : vector<2x32xbf16>, vector<32x193xbf16>, vector<2x193xf32> -> vector<2x193xf32>
    %263 = vector.extract_strided_slice %23 {offsets = [4, 128], sizes = [2, 33], strides = [1, 1]} : vector<12x161xf32> to vector<2x33xf32>
    %264 = vector.extract_strided_slice %221 {offsets = [0, 128], sizes = [2, 33], strides = [1, 1]} : vector<2x161xf32> to vector<2x33xf32>
    %265 = arith.addf %263, %264 : vector<2x33xf32>
    %266 = vector.extract_strided_slice %262 {offsets = [0, 160], sizes = [2, 33], strides = [1, 1]} : vector<2x193xf32> to vector<2x33xf32>
    %267 = arith.addf %265, %266 : vector<2x33xf32>
    %268 = vector.broadcast %36 : vector<1x33xf32> to vector<2x33xf32>
    %269 = arith.addf %267, %268 : vector<2x33xf32>
    %270 = vector.extract_strided_slice %262 {offsets = [0, 0], sizes = [2, 128], strides = [1, 1]} : vector<2x193xf32> to vector<2x128xf32>
    %271 = vector.extract_strided_slice %262 {offsets = [0, 128], sizes = [2, 32], strides = [1, 1]} : vector<2x193xf32> to vector<2x32xf32>
    %272 = vector.shape_cast %271 : vector<2x32xf32> to vector<2x1x32xf32>
    %273 = vector.broadcast %272 : vector<2x1x32xf32> to vector<2x8x32xf32>
    %274 = arith.addf %273, %18 : vector<2x8x32xf32>
    %275 = math.tanh %274 : vector<2x8x32xf32>
    %276 = vector.broadcast %31 : vector<1x1x32xf32> to vector<2x8x32xf32>
    %277 = arith.mulf %275, %276 : vector<2x8x32xf32>
    %cst_72 = arith.constant dense<0.000000e+00> : vector<2x8xf32>
    %278 = vector.multi_reduction <add>, %277, %cst_72 [2] : vector<2x8x32xf32> to vector<2x8xf32>
    %279 = vector.shape_cast %278 : vector<2x8xf32> to vector<2x8x1xf32>
    %280 = arith.addf %279, %42 : vector<2x8x1xf32>
    %cst_73 = arith.constant dense<0xFF800000> : vector<2x1xf32>
    %281 = vector.multi_reduction <maximumf>, %280, %cst_73 [1] : vector<2x8x1xf32> to vector<2x1xf32>
    %282 = vector.shape_cast %281 : vector<2x1xf32> to vector<2x1x1xf32>
    %283 = vector.broadcast %282 : vector<2x1x1xf32> to vector<2x8x1xf32>
    %284 = arith.subf %280, %283 : vector<2x8x1xf32>
    %285 = math.exp %284 : vector<2x8x1xf32>
    %cst_74 = arith.constant dense<0.000000e+00> : vector<2x1xf32>
    %286 = vector.multi_reduction <add>, %285, %cst_74 [1] : vector<2x8x1xf32> to vector<2x1xf32>
    %287 = vector.shape_cast %286 : vector<2x1xf32> to vector<2x1x1xf32>
    %288 = tpu.reciprocal %287 {approx = true} : vector<2x1x1xf32> -> vector<2x1x1xf32>
    %289 = vector.broadcast %288 : vector<2x1x1xf32> to vector<2x8x1xf32>
    %290 = arith.mulf %285, %289 : vector<2x8x1xf32>
    %291 = vector.broadcast %290 : vector<2x8x1xf32> to vector<2x8x32xf32>
    %292 = arith.mulf %291, %13 : vector<2x8x32xf32>
    %cst_75 = arith.constant dense<0.000000e+00> : vector<2x32xf32>
    %293 = vector.multi_reduction <add>, %292, %cst_75 [1] : vector<2x8x32xf32> to vector<2x32xf32>
    %294 = tpu.concatenate %293, %240 in 1 : vector<2x32xf32>, vector<2x32xf32> -> vector<2x64xf32>
    %295 = arith.truncf %294 : vector<2x64xf32> to vector<2x64xbf16>
    %cst_76 = arith.constant dense<0.000000e+00> : vector<2x161xf32>
    %296 = tpu.matmul %295, %33, %cst_76 {dimension_numbers = #tpu.dot_dimension_numbers<[1], [0], [0], [1], [0, 0, 1, 1], [], []>} : vector<2x64xbf16>, vector<64x161xbf16>, vector<2x161xf32> -> vector<2x161xf32>
    %297 = vector.extract_strided_slice %23 {offsets = [6, 0], sizes = [2, 128], strides = [1, 1]} : vector<12x161xf32> to vector<2x128xf32>
    %298 = vector.extract_strided_slice %296 {offsets = [0, 0], sizes = [2, 128], strides = [1, 1]} : vector<2x161xf32> to vector<2x128xf32>
    %299 = arith.addf %297, %298 : vector<2x128xf32>
    %300 = arith.addf %299, %30 : vector<2x128xf32>
    %301 = arith.negf %300 : vector<2x128xf32>
    %302 = math.exp %301 : vector<2x128xf32>
    %cst_77 = arith.constant 1.000000e+00 : f32
    %303 = vector.broadcast %cst_77 : f32 to vector<2x128xf32>
    %304 = arith.addf %303, %302 : vector<2x128xf32>
    %305 = arith.divf %303, %304 : vector<2x128xf32>
    %306 = math.tanh %300 : vector<2x128xf32>
    %307 = vector.extract_strided_slice %305 {offsets = [0, 0], sizes = [2, 32], strides = [1, 1]} : vector<2x128xf32> to vector<2x32xf32>
    %308 = vector.extract_strided_slice %305 {offsets = [0, 32], sizes = [2, 32], strides = [1, 1]} : vector<2x128xf32> to vector<2x32xf32>
    %309 = vector.extract_strided_slice %306 {offsets = [0, 64], sizes = [2, 32], strides = [1, 1]} : vector<2x128xf32> to vector<2x32xf32>
    %310 = vector.extract_strided_slice %305 {offsets = [0, 96], sizes = [2, 32], strides = [1, 1]} : vector<2x128xf32> to vector<2x32xf32>
    %311 = arith.mulf %308, %238 : vector<2x32xf32>
    %312 = arith.mulf %307, %309 : vector<2x32xf32>
    %313 = arith.addf %311, %312 : vector<2x32xf32>
    %314 = math.tanh %313 : vector<2x32xf32>
    %315 = arith.mulf %310, %314 : vector<2x32xf32>
    %316 = arith.truncf %315 : vector<2x32xf32> to vector<2x32xbf16>
    %cst_78 = arith.constant dense<0.000000e+00> : vector<2x128xf32>
    %317 = tpu.matmul %316, %34, %cst_78 {dimension_numbers = #tpu.dot_dimension_numbers<[1], [0], [0], [1], [0, 0, 1, 1], [], []>} : vector<2x32xbf16>, vector<32x128xbf16>, vector<2x128xf32> -> vector<2x128xf32>
    %318 = arith.addf %317, %270 : vector<2x128xf32>
    %319 = vector.broadcast %35 : vector<1x128xf32> to vector<2x128xf32>
    %320 = arith.addf %318, %319 : vector<2x128xf32>
    %321 = arith.negf %320 : vector<2x128xf32>
    %322 = math.exp %321 : vector<2x128xf32>
    %cst_79 = arith.constant 1.000000e+00 : f32
    %323 = vector.broadcast %cst_79 : f32 to vector<2x128xf32>
    %324 = arith.addf %323, %322 : vector<2x128xf32>
    %325 = arith.divf %323, %324 : vector<2x128xf32>
    %326 = math.tanh %320 : vector<2x128xf32>
    %327 = vector.extract_strided_slice %325 {offsets = [0, 0], sizes = [2, 32], strides = [1, 1]} : vector<2x128xf32> to vector<2x32xf32>
    %328 = vector.extract_strided_slice %325 {offsets = [0, 32], sizes = [2, 32], strides = [1, 1]} : vector<2x128xf32> to vector<2x32xf32>
    %329 = vector.extract_strided_slice %326 {offsets = [0, 64], sizes = [2, 32], strides = [1, 1]} : vector<2x128xf32> to vector<2x32xf32>
    %330 = vector.extract_strided_slice %325 {offsets = [0, 96], sizes = [2, 32], strides = [1, 1]} : vector<2x128xf32> to vector<2x32xf32>
    %331 = arith.mulf %328, %258 : vector<2x32xf32>
    %332 = arith.mulf %327, %329 : vector<2x32xf32>
    %333 = arith.addf %331, %332 : vector<2x32xf32>
    %334 = math.tanh %333 : vector<2x32xf32>
    %335 = arith.mulf %330, %334 : vector<2x32xf32>
    %336 = arith.truncf %335 : vector<2x32xf32> to vector<2x32xbf16>
    %cst_80 = arith.constant dense<0.000000e+00> : vector<2x193xf32>
    %337 = tpu.matmul %336, %32, %cst_80 {dimension_numbers = #tpu.dot_dimension_numbers<[1], [0], [0], [1], [0, 0, 1, 1], [], []>} : vector<2x32xbf16>, vector<32x193xbf16>, vector<2x193xf32> -> vector<2x193xf32>
    %338 = vector.extract_strided_slice %23 {offsets = [6, 128], sizes = [2, 33], strides = [1, 1]} : vector<12x161xf32> to vector<2x33xf32>
    %339 = vector.extract_strided_slice %296 {offsets = [0, 128], sizes = [2, 33], strides = [1, 1]} : vector<2x161xf32> to vector<2x33xf32>
    %340 = arith.addf %338, %339 : vector<2x33xf32>
    %341 = vector.extract_strided_slice %337 {offsets = [0, 160], sizes = [2, 33], strides = [1, 1]} : vector<2x193xf32> to vector<2x33xf32>
    %342 = arith.addf %340, %341 : vector<2x33xf32>
    %343 = vector.broadcast %36 : vector<1x33xf32> to vector<2x33xf32>
    %344 = arith.addf %342, %343 : vector<2x33xf32>
    %345 = vector.extract_strided_slice %337 {offsets = [0, 0], sizes = [2, 128], strides = [1, 1]} : vector<2x193xf32> to vector<2x128xf32>
    %346 = vector.extract_strided_slice %337 {offsets = [0, 128], sizes = [2, 32], strides = [1, 1]} : vector<2x193xf32> to vector<2x32xf32>
    %347 = vector.shape_cast %346 : vector<2x32xf32> to vector<2x1x32xf32>
    %348 = vector.broadcast %347 : vector<2x1x32xf32> to vector<2x8x32xf32>
    %349 = arith.addf %348, %18 : vector<2x8x32xf32>
    %350 = math.tanh %349 : vector<2x8x32xf32>
    %351 = vector.broadcast %31 : vector<1x1x32xf32> to vector<2x8x32xf32>
    %352 = arith.mulf %350, %351 : vector<2x8x32xf32>
    %cst_81 = arith.constant dense<0.000000e+00> : vector<2x8xf32>
    %353 = vector.multi_reduction <add>, %352, %cst_81 [2] : vector<2x8x32xf32> to vector<2x8xf32>
    %354 = vector.shape_cast %353 : vector<2x8xf32> to vector<2x8x1xf32>
    %355 = arith.addf %354, %42 : vector<2x8x1xf32>
    %cst_82 = arith.constant dense<0xFF800000> : vector<2x1xf32>
    %356 = vector.multi_reduction <maximumf>, %355, %cst_82 [1] : vector<2x8x1xf32> to vector<2x1xf32>
    %357 = vector.shape_cast %356 : vector<2x1xf32> to vector<2x1x1xf32>
    %358 = vector.broadcast %357 : vector<2x1x1xf32> to vector<2x8x1xf32>
    %359 = arith.subf %355, %358 : vector<2x8x1xf32>
    %360 = math.exp %359 : vector<2x8x1xf32>
    %cst_83 = arith.constant dense<0.000000e+00> : vector<2x1xf32>
    %361 = vector.multi_reduction <add>, %360, %cst_83 [1] : vector<2x8x1xf32> to vector<2x1xf32>
    %362 = vector.shape_cast %361 : vector<2x1xf32> to vector<2x1x1xf32>
    %363 = tpu.reciprocal %362 {approx = true} : vector<2x1x1xf32> -> vector<2x1x1xf32>
    %364 = vector.broadcast %363 : vector<2x1x1xf32> to vector<2x8x1xf32>
    %365 = arith.mulf %360, %364 : vector<2x8x1xf32>
    %366 = vector.broadcast %365 : vector<2x8x1xf32> to vector<2x8x32xf32>
    %367 = arith.mulf %366, %13 : vector<2x8x32xf32>
    %cst_84 = arith.constant dense<0.000000e+00> : vector<2x32xf32>
    %368 = vector.multi_reduction <add>, %367, %cst_84 [1] : vector<2x8x32xf32> to vector<2x32xf32>
    %369 = tpu.concatenate %368, %315 in 1 : vector<2x32xf32>, vector<2x32xf32> -> vector<2x64xf32>
    %370 = arith.truncf %369 : vector<2x64xf32> to vector<2x64xbf16>
    %cst_85 = arith.constant dense<0.000000e+00> : vector<2x161xf32>
    %371 = tpu.matmul %370, %33, %cst_85 {dimension_numbers = #tpu.dot_dimension_numbers<[1], [0], [0], [1], [0, 0, 1, 1], [], []>} : vector<2x64xbf16>, vector<64x161xbf16>, vector<2x161xf32> -> vector<2x161xf32>
    %372 = vector.extract_strided_slice %23 {offsets = [8, 0], sizes = [2, 128], strides = [1, 1]} : vector<12x161xf32> to vector<2x128xf32>
    %373 = vector.extract_strided_slice %371 {offsets = [0, 0], sizes = [2, 128], strides = [1, 1]} : vector<2x161xf32> to vector<2x128xf32>
    %374 = arith.addf %372, %373 : vector<2x128xf32>
    %375 = arith.addf %374, %30 : vector<2x128xf32>
    %376 = arith.negf %375 : vector<2x128xf32>
    %377 = math.exp %376 : vector<2x128xf32>
    %cst_86 = arith.constant 1.000000e+00 : f32
    %378 = vector.broadcast %cst_86 : f32 to vector<2x128xf32>
    %379 = arith.addf %378, %377 : vector<2x128xf32>
    %380 = arith.divf %378, %379 : vector<2x128xf32>
    %381 = math.tanh %375 : vector<2x128xf32>
    %382 = vector.extract_strided_slice %380 {offsets = [0, 0], sizes = [2, 32], strides = [1, 1]} : vector<2x128xf32> to vector<2x32xf32>
    %383 = vector.extract_strided_slice %380 {offsets = [0, 32], sizes = [2, 32], strides = [1, 1]} : vector<2x128xf32> to vector<2x32xf32>
    %384 = vector.extract_strided_slice %381 {offsets = [0, 64], sizes = [2, 32], strides = [1, 1]} : vector<2x128xf32> to vector<2x32xf32>
    %385 = vector.extract_strided_slice %380 {offsets = [0, 96], sizes = [2, 32], strides = [1, 1]} : vector<2x128xf32> to vector<2x32xf32>
    %386 = arith.mulf %383, %313 : vector<2x32xf32>
    %387 = arith.mulf %382, %384 : vector<2x32xf32>
    %388 = arith.addf %386, %387 : vector<2x32xf32>
    %389 = math.tanh %388 : vector<2x32xf32>
    %390 = arith.mulf %385, %389 : vector<2x32xf32>
    %391 = arith.truncf %390 : vector<2x32xf32> to vector<2x32xbf16>
    %cst_87 = arith.constant dense<0.000000e+00> : vector<2x128xf32>
    %392 = tpu.matmul %391, %34, %cst_87 {dimension_numbers = #tpu.dot_dimension_numbers<[1], [0], [0], [1], [0, 0, 1, 1], [], []>} : vector<2x32xbf16>, vector<32x128xbf16>, vector<2x128xf32> -> vector<2x128xf32>
    %393 = arith.addf %392, %345 : vector<2x128xf32>
    %394 = vector.broadcast %35 : vector<1x128xf32> to vector<2x128xf32>
    %395 = arith.addf %393, %394 : vector<2x128xf32>
    %396 = arith.negf %395 : vector<2x128xf32>
    %397 = math.exp %396 : vector<2x128xf32>
    %cst_88 = arith.constant 1.000000e+00 : f32
    %398 = vector.broadcast %cst_88 : f32 to vector<2x128xf32>
    %399 = arith.addf %398, %397 : vector<2x128xf32>
    %400 = arith.divf %398, %399 : vector<2x128xf32>
    %401 = math.tanh %395 : vector<2x128xf32>
    %402 = vector.extract_strided_slice %400 {offsets = [0, 0], sizes = [2, 32], strides = [1, 1]} : vector<2x128xf32> to vector<2x32xf32>
    %403 = vector.extract_strided_slice %400 {offsets = [0, 32], sizes = [2, 32], strides = [1, 1]} : vector<2x128xf32> to vector<2x32xf32>
    %404 = vector.extract_strided_slice %401 {offsets = [0, 64], sizes = [2, 32], strides = [1, 1]} : vector<2x128xf32> to vector<2x32xf32>
    %405 = vector.extract_strided_slice %400 {offsets = [0, 96], sizes = [2, 32], strides = [1, 1]} : vector<2x128xf32> to vector<2x32xf32>
    %406 = arith.mulf %403, %333 : vector<2x32xf32>
    %407 = arith.mulf %402, %404 : vector<2x32xf32>
    %408 = arith.addf %406, %407 : vector<2x32xf32>
    %409 = math.tanh %408 : vector<2x32xf32>
    %410 = arith.mulf %405, %409 : vector<2x32xf32>
    %411 = arith.truncf %410 : vector<2x32xf32> to vector<2x32xbf16>
    %cst_89 = arith.constant dense<0.000000e+00> : vector<2x193xf32>
    %412 = tpu.matmul %411, %32, %cst_89 {dimension_numbers = #tpu.dot_dimension_numbers<[1], [0], [0], [1], [0, 0, 1, 1], [], []>} : vector<2x32xbf16>, vector<32x193xbf16>, vector<2x193xf32> -> vector<2x193xf32>
    %413 = vector.extract_strided_slice %23 {offsets = [8, 128], sizes = [2, 33], strides = [1, 1]} : vector<12x161xf32> to vector<2x33xf32>
    %414 = vector.extract_strided_slice %371 {offsets = [0, 128], sizes = [2, 33], strides = [1, 1]} : vector<2x161xf32> to vector<2x33xf32>
    %415 = arith.addf %413, %414 : vector<2x33xf32>
    %416 = vector.extract_strided_slice %412 {offsets = [0, 160], sizes = [2, 33], strides = [1, 1]} : vector<2x193xf32> to vector<2x33xf32>
    %417 = arith.addf %415, %416 : vector<2x33xf32>
    %418 = vector.broadcast %36 : vector<1x33xf32> to vector<2x33xf32>
    %419 = arith.addf %417, %418 : vector<2x33xf32>
    %420 = vector.extract_strided_slice %412 {offsets = [0, 0], sizes = [2, 128], strides = [1, 1]} : vector<2x193xf32> to vector<2x128xf32>
    %421 = vector.extract_strided_slice %412 {offsets = [0, 128], sizes = [2, 32], strides = [1, 1]} : vector<2x193xf32> to vector<2x32xf32>
    %422 = vector.shape_cast %421 : vector<2x32xf32> to vector<2x1x32xf32>
    %423 = vector.broadcast %422 : vector<2x1x32xf32> to vector<2x8x32xf32>
    %424 = arith.addf %423, %18 : vector<2x8x32xf32>
    %425 = math.tanh %424 : vector<2x8x32xf32>
    %426 = vector.broadcast %31 : vector<1x1x32xf32> to vector<2x8x32xf32>
    %427 = arith.mulf %425, %426 : vector<2x8x32xf32>
    %cst_90 = arith.constant dense<0.000000e+00> : vector<2x8xf32>
    %428 = vector.multi_reduction <add>, %427, %cst_90 [2] : vector<2x8x32xf32> to vector<2x8xf32>
    %429 = vector.shape_cast %428 : vector<2x8xf32> to vector<2x8x1xf32>
    %430 = arith.addf %429, %42 : vector<2x8x1xf32>
    %cst_91 = arith.constant dense<0xFF800000> : vector<2x1xf32>
    %431 = vector.multi_reduction <maximumf>, %430, %cst_91 [1] : vector<2x8x1xf32> to vector<2x1xf32>
    %432 = vector.shape_cast %431 : vector<2x1xf32> to vector<2x1x1xf32>
    %433 = vector.broadcast %432 : vector<2x1x1xf32> to vector<2x8x1xf32>
    %434 = arith.subf %430, %433 : vector<2x8x1xf32>
    %435 = math.exp %434 : vector<2x8x1xf32>
    %cst_92 = arith.constant dense<0.000000e+00> : vector<2x1xf32>
    %436 = vector.multi_reduction <add>, %435, %cst_92 [1] : vector<2x8x1xf32> to vector<2x1xf32>
    %437 = vector.shape_cast %436 : vector<2x1xf32> to vector<2x1x1xf32>
    %438 = tpu.reciprocal %437 {approx = true} : vector<2x1x1xf32> -> vector<2x1x1xf32>
    %439 = vector.broadcast %438 : vector<2x1x1xf32> to vector<2x8x1xf32>
    %440 = arith.mulf %435, %439 : vector<2x8x1xf32>
    %441 = vector.broadcast %440 : vector<2x8x1xf32> to vector<2x8x32xf32>
    %442 = arith.mulf %441, %13 : vector<2x8x32xf32>
    %cst_93 = arith.constant dense<0.000000e+00> : vector<2x32xf32>
    %443 = vector.multi_reduction <add>, %442, %cst_93 [1] : vector<2x8x32xf32> to vector<2x32xf32>
    %444 = tpu.concatenate %443, %390 in 1 : vector<2x32xf32>, vector<2x32xf32> -> vector<2x64xf32>
    %445 = arith.truncf %444 : vector<2x64xf32> to vector<2x64xbf16>
    %cst_94 = arith.constant dense<0.000000e+00> : vector<2x161xf32>
    %446 = tpu.matmul %445, %33, %cst_94 {dimension_numbers = #tpu.dot_dimension_numbers<[1], [0], [0], [1], [0, 0, 1, 1], [], []>} : vector<2x64xbf16>, vector<64x161xbf16>, vector<2x161xf32> -> vector<2x161xf32>
    %447 = vector.extract_strided_slice %23 {offsets = [10, 0], sizes = [2, 128], strides = [1, 1]} : vector<12x161xf32> to vector<2x128xf32>
    %448 = vector.extract_strided_slice %446 {offsets = [0, 0], sizes = [2, 128], strides = [1, 1]} : vector<2x161xf32> to vector<2x128xf32>
    %449 = arith.addf %447, %448 : vector<2x128xf32>
    %450 = arith.addf %449, %30 : vector<2x128xf32>
    %451 = arith.negf %450 : vector<2x128xf32>
    %452 = math.exp %451 : vector<2x128xf32>
    %cst_95 = arith.constant 1.000000e+00 : f32
    %453 = vector.broadcast %cst_95 : f32 to vector<2x128xf32>
    %454 = arith.addf %453, %452 : vector<2x128xf32>
    %455 = arith.divf %453, %454 : vector<2x128xf32>
    %456 = math.tanh %450 : vector<2x128xf32>
    %457 = vector.extract_strided_slice %455 {offsets = [0, 0], sizes = [2, 32], strides = [1, 1]} : vector<2x128xf32> to vector<2x32xf32>
    %458 = vector.extract_strided_slice %455 {offsets = [0, 32], sizes = [2, 32], strides = [1, 1]} : vector<2x128xf32> to vector<2x32xf32>
    %459 = vector.extract_strided_slice %456 {offsets = [0, 64], sizes = [2, 32], strides = [1, 1]} : vector<2x128xf32> to vector<2x32xf32>
    %460 = vector.extract_strided_slice %455 {offsets = [0, 96], sizes = [2, 32], strides = [1, 1]} : vector<2x128xf32> to vector<2x32xf32>
    %461 = arith.mulf %458, %388 : vector<2x32xf32>
    %462 = arith.mulf %457, %459 : vector<2x32xf32>
    %463 = arith.addf %461, %462 : vector<2x32xf32>
    %464 = math.tanh %463 : vector<2x32xf32>
    %465 = arith.mulf %460, %464 : vector<2x32xf32>
    %466 = arith.truncf %465 : vector<2x32xf32> to vector<2x32xbf16>
    %cst_96 = arith.constant dense<0.000000e+00> : vector<2x128xf32>
    %467 = tpu.matmul %466, %34, %cst_96 {dimension_numbers = #tpu.dot_dimension_numbers<[1], [0], [0], [1], [0, 0, 1, 1], [], []>} : vector<2x32xbf16>, vector<32x128xbf16>, vector<2x128xf32> -> vector<2x128xf32>
    %468 = arith.addf %467, %420 : vector<2x128xf32>
    %469 = vector.broadcast %35 : vector<1x128xf32> to vector<2x128xf32>
    %470 = arith.addf %468, %469 : vector<2x128xf32>
    %471 = arith.negf %470 : vector<2x128xf32>
    %472 = math.exp %471 : vector<2x128xf32>
    %cst_97 = arith.constant 1.000000e+00 : f32
    %473 = vector.broadcast %cst_97 : f32 to vector<2x128xf32>
    %474 = arith.addf %473, %472 : vector<2x128xf32>
    %475 = arith.divf %473, %474 : vector<2x128xf32>
    %476 = math.tanh %470 : vector<2x128xf32>
    %477 = vector.extract_strided_slice %475 {offsets = [0, 0], sizes = [2, 32], strides = [1, 1]} : vector<2x128xf32> to vector<2x32xf32>
    %478 = vector.extract_strided_slice %475 {offsets = [0, 32], sizes = [2, 32], strides = [1, 1]} : vector<2x128xf32> to vector<2x32xf32>
    %479 = vector.extract_strided_slice %476 {offsets = [0, 64], sizes = [2, 32], strides = [1, 1]} : vector<2x128xf32> to vector<2x32xf32>
    %480 = vector.extract_strided_slice %475 {offsets = [0, 96], sizes = [2, 32], strides = [1, 1]} : vector<2x128xf32> to vector<2x32xf32>
    %481 = arith.mulf %478, %408 : vector<2x32xf32>
    %482 = arith.mulf %477, %479 : vector<2x32xf32>
    %483 = arith.addf %481, %482 : vector<2x32xf32>
    %484 = math.tanh %483 : vector<2x32xf32>
    %485 = arith.mulf %480, %484 : vector<2x32xf32>
    %486 = arith.truncf %485 : vector<2x32xf32> to vector<2x32xbf16>
    %cst_98 = arith.constant dense<0.000000e+00> : vector<2x193xf32>
    %487 = tpu.matmul %486, %32, %cst_98 {dimension_numbers = #tpu.dot_dimension_numbers<[1], [0], [0], [1], [0, 0, 1, 1], [], []>} : vector<2x32xbf16>, vector<32x193xbf16>, vector<2x193xf32> -> vector<2x193xf32>
    %488 = vector.extract_strided_slice %23 {offsets = [10, 128], sizes = [2, 33], strides = [1, 1]} : vector<12x161xf32> to vector<2x33xf32>
    %489 = vector.extract_strided_slice %446 {offsets = [0, 128], sizes = [2, 33], strides = [1, 1]} : vector<2x161xf32> to vector<2x33xf32>
    %490 = arith.addf %488, %489 : vector<2x33xf32>
    %491 = vector.extract_strided_slice %487 {offsets = [0, 160], sizes = [2, 33], strides = [1, 1]} : vector<2x193xf32> to vector<2x33xf32>
    %492 = arith.addf %490, %491 : vector<2x33xf32>
    %493 = vector.broadcast %36 : vector<1x33xf32> to vector<2x33xf32>
    %494 = arith.addf %492, %493 : vector<2x33xf32>
    %495 = vector.shape_cast %110 : vector<2x32xf32> to vector<1x2x32xf32>
    %496 = vector.shape_cast %185 : vector<2x32xf32> to vector<1x2x32xf32>
    %497 = vector.shape_cast %260 : vector<2x32xf32> to vector<1x2x32xf32>
    %498 = vector.shape_cast %335 : vector<2x32xf32> to vector<1x2x32xf32>
    %499 = vector.shape_cast %410 : vector<2x32xf32> to vector<1x2x32xf32>
    %500 = vector.shape_cast %485 : vector<2x32xf32> to vector<1x2x32xf32>
    %501 = tpu.concatenate %495, %496, %497, %498, %499, %500 in 0 : vector<1x2x32xf32>, vector<1x2x32xf32>, vector<1x2x32xf32>, vector<1x2x32xf32>, vector<1x2x32xf32>, vector<1x2x32xf32> -> vector<6x2x32xf32>
    %502 = vector.shape_cast %119 : vector<2x33xf32> to vector<1x2x33xf32>
    %503 = vector.shape_cast %194 : vector<2x33xf32> to vector<1x2x33xf32>
    %504 = vector.shape_cast %269 : vector<2x33xf32> to vector<1x2x33xf32>
    %505 = vector.shape_cast %344 : vector<2x33xf32> to vector<1x2x33xf32>
    %506 = vector.shape_cast %419 : vector<2x33xf32> to vector<1x2x33xf32>
    %507 = vector.shape_cast %494 : vector<2x33xf32> to vector<1x2x33xf32>
    %508 = tpu.concatenate %502, %503, %504, %505, %506, %507 in 0 : vector<1x2x33xf32>, vector<1x2x33xf32>, vector<1x2x33xf32>, vector<1x2x33xf32>, vector<1x2x33xf32>, vector<1x2x33xf32> -> vector<6x2x33xf32>
    %509 = vector.extract_strided_slice %508 {offsets = [0, 0, 32], sizes = [6, 2, 1], strides = [1, 1, 1]} : vector<6x2x33xf32> to vector<6x2x1xf32>
    %510 = arith.negf %509 : vector<6x2x1xf32>
    %511 = math.exp %510 : vector<6x2x1xf32>
    %cst_99 = arith.constant 1.000000e+00 : f32
    %512 = vector.broadcast %cst_99 : f32 to vector<6x2x1xf32>
    %513 = arith.addf %512, %511 : vector<6x2x1xf32>
    %514 = arith.divf %512, %513 : vector<6x2x1xf32>
    %cst_100 = arith.constant 0.000000e+00 : f32
    %515 = vector.broadcast %cst_100 : f32 to vector<6x2x63xf32>
    %516 = vector.extract_strided_slice %508 {offsets = [0, 0, 0], sizes = [6, 2, 32], strides = [1, 1, 1]} : vector<6x2x33xf32> to vector<6x2x32xf32>
    %517 = tpu.concatenate %501, %516, %514, %515 in 2 : vector<6x2x32xf32>, vector<6x2x32xf32>, vector<6x2x1xf32>, vector<6x2x63xf32> -> vector<6x2x128xf32>
    %c0_101 = arith.constant 0 : index
    %c0_102 = arith.constant 0 : index
    %c0_103 = arith.constant 0 : index
    %518 = vector.load %arg17[%c0_101, %c0_102, %c0_103] : memref<6x2x128xf32, #tpu.memory_space<vmem>>, vector<6x2x128xf32>
    tpu.vector_store %arg17[%c0_101, %c0_102, %c0_103], %517 {strides = array<i32>} : memref<6x2x128xf32, #tpu.memory_space<vmem>>, vector<6x2x128xf32>,
    %519 = vector.shape_cast %65 : vector<2x8x1xf32> to vector<1x2x8x1xf32>
    %520 = vector.shape_cast %140 : vector<2x8x1xf32> to vector<1x2x8x1xf32>
    %521 = vector.shape_cast %215 : vector<2x8x1xf32> to vector<1x2x8x1xf32>
    %522 = vector.shape_cast %290 : vector<2x8x1xf32> to vector<1x2x8x1xf32>
    %523 = vector.shape_cast %365 : vector<2x8x1xf32> to vector<1x2x8x1xf32>
    %524 = vector.shape_cast %440 : vector<2x8x1xf32> to vector<1x2x8x1xf32>
    %525 = tpu.concatenate %519, %520, %521, %522, %523, %524 in 0 : vector<1x2x8x1xf32>, vector<1x2x8x1xf32>, vector<1x2x8x1xf32>, vector<1x2x8x1xf32>, vector<1x2x8x1xf32>, vector<1x2x8x1xf32> -> vector<6x2x8x1xf32>
    %c0_104 = arith.constant 0 : index
    %c0_105 = arith.constant 0 : index
    %c0_106 = arith.constant 0 : index
    %c0_107 = arith.constant 0 : index
    %526 = vector.load %arg18[%c0_104, %c0_105, %c0_106, %c0_107] : memref<6x2x8x1xf32, #tpu.memory_space<vmem>>, vector<6x2x8x1xf32>
    tpu.vector_store %arg18[%c0_104, %c0_105, %c0_106, %c0_107], %525 {strides = array<i32>} : memref<6x2x8x1xf32, #tpu.memory_space<vmem>>, vector<6x2x8x1xf32>,
    %527 = tpu.concatenate %465, %485, %463, %483 in 1 : vector<2x32xf32>, vector<2x32xf32>, vector<2x32xf32>, vector<2x32xf32> -> vector<2x128xf32>
    %c0_108 = arith.constant 0 : index
    %c0_109 = arith.constant 0 : index
    %528 = vector.load %arg19[%c0_108, %c0_109] : memref<2x128xf32, #tpu.memory_space<vmem>>, vector<2x128xf32>
    tpu.vector_store %arg19[%c0_108, %c0_109], %527 {strides = array<i32>} : memref<2x128xf32, #tpu.memory_space<vmem>>, vector<2x128xf32>,
    return
  }
}

</mosaic_0001>

<bundles_post_ra>
// kernel: tpu_custom_call.1
= control target key start
LH: loop header
LB: loop body
LE: loop exit
PB: predicated region body
PF: predicated region fallthrough
CT: control target
= control target key end

     0   :  { %s4579_s0 = inlined_call_operand.hbm [shape: f32[6,2,16], index: 0, kind: input, shape index: {}]   ;;  %s4580_s1 = inlined_call_operand.hbm [shape: f32[2,8,32], index: 1, kind: input, shape index: {}]   ;;  %s4581_s2 = inlined_call_operand.vmem [shape: f32[2,8,1], index: 2, kind: input, shape index: {}]   ;;  %s4582_s3 = inlined_call_operand.hbm [shape: f32[4,2,48], index: 3, kind: input, shape index: {}]   ;;  %s4583_s4 = inlined_call_operand.hbm [shape: f32[2,16], index: 4, kind: input, shape index: {}]   ;;  %s4584_s5 = inlined_call_operand.vmem [shape: bf16[48,32], index: 5, kind: input, shape index: {}]   ;;  %s4585_s6 = inlined_call_operand.vmem [shape: f32[1,32], index: 6, kind: input, shape index: {}]   ;;  %s4586_s7 = inlined_call_operand.hbm [shape: bf16[32,32], index: 7, kind: input, shape index: {}]   ;;  %s4587_s8 = inlined_call_operand.hbm [shape: f32[1,1,32], index: 8, kind: input, shape index: {}]   ;;  %s4588_s9 = inlined_call_operand.hbm [shape: bf16[32,193], index: 9, kind: input, shape index: {}]   ;;  %s4589_s10 = inlined_call_operand.vmem [shape: bf16[64,161], index: 10, kind: input, shape index: {}]   ;;  %s4590_s11 = inlined_call_operand.hbm [shape: bf16[16,128], index: 11, kind: input, shape index: {}]   ;;  %s4591_s12 = inlined_call_operand.hbm [shape: f32[1,128], index: 12, kind: input, shape index: {}]   ;;  %s4592_s13 = inlined_call_operand.vmem [shape: bf16[32,128], index: 13, kind: input, shape index: {}]   ;;  %s4593_s14 = inlined_call_operand.vmem [shape: f32[1,128], index: 14, kind: input, shape index: {}]   ;;  %s4594_s15 = inlined_call_operand.vmem [shape: f32[1,33], index: 15, kind: input, shape index: {}]   ;;  %s4595_s16 = inlined_call_operand.hbm [shape: bf16[16,161], index: 16, kind: input, shape index: {}]   ;;  %s4596_s17 = inlined_call_operand.hbm [shape: f32[6,2,128], index: 17, kind: output, shape index: {0}]   ;;  %s4597_s18 = inlined_call_operand.vmem [shape: f32[6,2,8,1], index: 18, kind: output, shape index: {1}]   ;;  %s4598_s19 = inlined_call_operand.hbm [shape: f32[2,128], index: 19, kind: output, shape index: {2}]  }
   0x1   :  { %4606 = sst [smem:[#allocation31_spill]] %s4579_s0 }
   0x2   :  { %4607 = sst [smem:[#allocation32_spill]] %s4580_s1 }
   0x3   :  { %4608 = sst [smem:[#allocation33_spill]] %s4581_s2 }
   0x4   :  { %4609 = sst [smem:[#allocation34_spill]] %s4582_s3 }
   0x5   :  { %25 = vsyncpa [#allocation3], 0 }
   0x6   :  { %26 = vsyncpa [#allocation6], 0 }
   0x7   :  { %27 = vsyncpa [#allocation9], 0 }
   0x8   :  { %28 = vsyncpa [#allocation12], 0 }
   0x9   :  { %29 = vsyncpa [#allocation15], 0 }
   0xa   :  { %30 = vsyncpa [#allocation18], 0 }
   0xb   :  { %31 = vsyncpa [#allocation4], 0 }
   0xc   :  { %32 = vsyncpa [#allocation21], 0  ;;  %s3560_s0 = smov [#allocation5]  }
   0xd   :  { %s50_s30 = sshll.u32 %s3560_s0, 4  ;;  %s51_s30 = int_to_ptr.vmem [resolvable:$true] %s50_s30 }
   0xe   :  { %s3312_s20 = scalar_lea.vmem %s51_s30, 256  ;;  %p3317_p1 = scmp.lt.s32.totalorder %s51_s30, %s51_s30 }
   0xf   :  { %p3313_p0 = scmp.ne.s32.totalorder %s51_s30, %s3312_s20  ;;  %p3318_p2 = scmp.lt.s32.totalorder %s3312_s20, %s3312_s20 }
  0x11   :  { %p3319_p3 = por %p3318_p2, %p3317_p1 }
  0x13   :  { %p3320_p4 = pnand %p3319_p3, %p3313_p0 }
  0x15   :  { %3323 = shalt.err (!%p3320_p4)
}
  0x16   :  { %s3561_s21 = smov 128   ;;  %s3562_s1 = smov 8  }
  0x17   :  { %s4610_s23 = sld [smem:[#allocation32_spill]]  ;;  %s3563_s24 = smov [#allocation8]  }
  0x18   :  { %s77_s25 = sshll.u32 %s3563_s24, 4  ;;  %s3564_s3 = smov [#allocation11]   ;;  %s78_s25 = int_to_ptr.vmem [resolvable:$true] %s77_s25 }
  0x19   :  { %s103_s26 = sshll.u32 %s3564_s3, 4  ;;  %s3332_s27 = scalar_lea.vmem %s78_s25, 32  ;;  %s104_s26 = int_to_ptr.vmem [resolvable:$true] %s103_s26 }
  0x1a   :  { %p3333_p5 = scmp.ne.s32.totalorder %s78_s25, %s3332_s27  ;;  %p3337_p6 = scmp.lt.s32.totalorder %s78_s25, %s78_s25 }
  0x1b   :  { %p3338_p7 = scmp.lt.s32.totalorder %s3332_s27, %s3332_s27 }
  0x1d   :  { %56 = dma.hbm_to_vmem [thread:$0]  %s4610_s23, 256, %s51_s30, [#allocation6], %s3561_s21, %s3561_s21, %s3562_s1  }
  0x1e   :  { %p3339_p8 = por %p3338_p7, %p3337_p6 }
  0x20   :  { %p3340_p9 = pnand %p3339_p8, %p3333_p5 }
  0x22   :  { %3343 = shalt.err (!%p3340_p9)
}
  0x23   :  { %80 = dma.hbm_to_vmem [thread:$0]  %s4583_s4, 32, %s78_s25, [#allocation9]  }
  0x24   :  { %s3352_s0 = scalar_lea.vmem %s104_s26, 16  ;;  %s3356_s30 = scalar_lea.vmem %s104_s26, 32 }
  0x25   :  { %p3353_p10 = scmp.ne.s32.totalorder %s104_s26, %s3352_s0  ;;  %p3357_p11 = scmp.lt.s32.totalorder %s104_s26, %s104_s26 }
  0x26   :  { %p3358_p12 = scmp.lt.s32.totalorder %s3356_s30, %s3352_s0 }
  0x28   :  { %p3359_p13 = por %p3358_p12, %p3357_p11 }
  0x2a   :  { %p3360_p0 = pnand %p3359_p13, %p3353_p10 }
  0x2c   :  { %3363 = shalt.err (!%p3360_p0)
}
  0x2d   :  { %106 = dma.hbm_to_vmem [thread:$0]  %s4587_s8, 16, %s104_s26, [#allocation12]  }
  0x2e   :  { %s3565_s2 = smov [#allocation14]   ;;  %s3566_s24 = smov [#allocation2]  }
  0x2f   :  { %s126_s23 = sshll.u32 %s3565_s2, 4  ;;  %s38_s3 = sshll.u32 %s3566_s24, 4  ;;  %s127_s23 = int_to_ptr.vmem [resolvable:$true] %s126_s23  ;;  %s39_s3 = int_to_ptr.vmem [resolvable:$true] %s38_s3 }
  0x30   :  { %s3372_s27 = scalar_lea.vmem %s127_s23, 128  ;;  %p3377_p2 = scmp.lt.s32.totalorder %s127_s23, %s127_s23 }
  0x31   :  { %p3373_p1 = scmp.ne.s32.totalorder %s127_s23, %s3372_s27  ;;  %p3378_p3 = scmp.lt.s32.totalorder %s3372_s27, %s3372_s27 }
  0x33   :  { %p3379_p4 = por %p3378_p3, %p3377_p2 }
  0x35   :  { %p3380_p5 = pnand %p3379_p4, %p3373_p1 }
  0x37   :  { %3383 = shalt.err (!%p3380_p5)
}
  0x38   :  { %s3567_s4 = smov 64   ;;  %s3568_s25 = smov 4  }
  0x39   :  { %132 = dma.hbm_to_vmem [thread:$0]  %s4590_s11, 128, %s127_s23, [#allocation15], %s3567_s4, %s3567_s4, %s3568_s25  }
  0x3a   :  { %s3392_s8 = scalar_lea.vmem %s39_s3, 192  ;;  %p3397_p7 = scmp.lt.s32.totalorder %s39_s3, %s39_s3 }
  0x3b   :  { %p3393_p6 = scmp.ne.s32.totalorder %s39_s3, %s3392_s8  ;;  %p3398_p8 = scmp.lt.s32.totalorder %s3392_s8, %s3392_s8 }
  0x3d   :  { %p3399_p9 = por %p3398_p8, %p3397_p7 }
  0x3f   :  { %p3400_p10 = pnand %p3399_p9, %p3393_p6 }
  0x41   :  { %3403 = shalt.err (!%p3400_p10)
}
  0x42   :  { %s3569_s26 = smov 32   ;;  %s3570_s0 = smov 2  }
  0x43   :  { %s4611_s22 = sld [smem:[#allocation31_spill]]  ;;  %s3571_s2 = smov [#allocation7]  }
  0x44   :  { %s64_s24 = sshll.u32 %s3571_s2, 4  ;;  %s3572_s11 = smov [#allocation10]   ;;  %s65_s24 = int_to_ptr.vmem [resolvable:$true] %s64_s24 }
  0x45   :  { %s90_s23 = sshll.u32 %s3572_s11, 4  ;;  %s3412_s27 = scalar_lea.vmem %s65_s24, 128  ;;  %s91_s23 = int_to_ptr.vmem [resolvable:$true] %s90_s23 }
  0x46   :  { %p3413_p11 = scmp.ne.s32.totalorder %s65_s24, %s3412_s27  ;;  %p3417_p12 = scmp.lt.s32.totalorder %s65_s24, %s65_s24 }
  0x47   :  { %p3418_p13 = scmp.lt.s32.totalorder %s3412_s27, %s3412_s27 }
  0x49   :  { %44 = dma.hbm_to_vmem [thread:$0]  %s4611_s22, 192, %s39_s3, [#allocation3], %s3569_s26, %s3569_s26, %s3570_s0  }
  0x4a   :  { %p3419_p0 = por %p3418_p13, %p3417_p12 }
  0x4c   :  { %p3420_p1 = pnand %p3419_p0, %p3413_p11 }
  0x4e   :  { %3423 = shalt.err (!%p3420_p1)
}
  0x4f   :  { %s4612_s8 = sld [smem:[#allocation34_spill]]  ;;  %s3432_s3 = scalar_lea.vmem %s91_s23, 256 }
  0x50   :  { %p3433_p2 = scmp.ne.s32.totalorder %s91_s23, %s3432_s3  ;;  %p3437_p3 = scmp.lt.s32.totalorder %s91_s23, %s91_s23 }
  0x51   :  { %p3438_p4 = scmp.lt.s32.totalorder %s3432_s3, %s3432_s3 }
  0x53   :  { %p3439_p5 = por %p3438_p4, %p3437_p3 }
  0x55   :  { %70 = dma.hbm_to_vmem [thread:$0]  %s4612_s8, 128, %s65_s24, [#allocation6], %s3569_s26, %s3569_s26, %s3570_s0  }
  0x56   :  { %p3440_p6 = pnand %p3439_p5, %p3433_p2 }
  0x58   :  { %3443 = shalt.err (!%p3440_p6)
}
  0x59   :  { %96 = dma.hbm_to_vmem [thread:$0]  %s4586_s7, 256, %s91_s23, [#allocation9], %s3567_s4, %s3567_s4, %s3568_s25  }
  0x5a   :  { %s3573_s22 = smov [#allocation13]   ;;  %s3574_s11 = smov [#allocation16]  }
  0x5b   :  { %s112_s2 = sshll.u32 %s3573_s22, 4  ;;  %s139_s24 = sshll.u32 %s3574_s11, 4  ;;  %s113_s2 = int_to_ptr.vmem [resolvable:$true] %s112_s2  ;;  %s140_s24 = int_to_ptr.vmem [resolvable:$true] %s139_s24 }
  0x5c   :  { %s3452_s27 = scalar_lea.vmem %s113_s2, 512  ;;  %p3457_p8 = scmp.lt.s32.totalorder %s113_s2, %s113_s2 }
  0x5d   :  { %p3453_p7 = scmp.ne.s32.totalorder %s113_s2, %s3452_s27  ;;  %p3458_p9 = scmp.lt.s32.totalorder %s3452_s27, %s3452_s27 }
  0x5f   :  { %p3459_p10 = por %p3458_p9, %p3457_p8 }
  0x61   :  { %p3460_p11 = pnand %p3459_p10, %p3453_p7 }
  0x63   :  { %3463 = shalt.err (!%p3460_p11)
}
  0x64   :  { %118 = dma.hbm_to_vmem [thread:$0]  %s4588_s9, 512, %s113_s2, [#allocation12], %s3561_s21, %s3561_s21, %s3562_s1  }
  0x65   :  { %s3472_s7 = scalar_lea.vmem %s140_s24, 16  ;;  %s3476_s25 = scalar_lea.vmem %s140_s24, 32 }
  0x66   :  { %p3473_p12 = scmp.ne.s32.totalorder %s140_s24, %s3472_s7  ;;  %p3477_p13 = scmp.lt.s32.totalorder %s140_s24, %s140_s24 }
  0x67   :  { %p3478_p0 = scmp.lt.s32.totalorder %s3476_s25, %s3472_s7 }
  0x69   :  { %p3479_p1 = por %p3478_p0, %p3477_p13 }
  0x6b   :  { %p3480_p2 = pnand %p3479_p1, %p3473_p12 }
  0x6d   :  { %3483 = shalt.err (!%p3480_p2)
}
  0x6e   :  { %142 = dma.hbm_to_vmem [thread:$0]  %s4591_s12, 16, %s140_s24, [#allocation15]  }
  0x6f   :  { %s3575_s3 = smov [#allocation17]  }
  0x70   :  { %s154_s30 = sshll.u32 %s3575_s3, 4  ;;  %s155_s30 = int_to_ptr.vmem [resolvable:$true] %s154_s30 }
  0x71   :  { %s3492_s20 = scalar_lea.vmem %s155_s30, 256  ;;  %p3497_p4 = scmp.lt.s32.totalorder %s155_s30, %s155_s30 }
  0x72   :  { %p3493_p3 = scmp.ne.s32.totalorder %s155_s30, %s3492_s20  ;;  %p3498_p5 = scmp.lt.s32.totalorder %s3492_s20, %s3492_s20 }
  0x74   :  { %p3499_p6 = por %p3498_p5, %p3497_p4 }
  0x76   :  { %p3500_p7 = pnand %p3499_p6, %p3493_p3 }
  0x78   :  { %3503 = shalt.err (!%p3500_p7)
}
  0x79   :  { %160 = dma.hbm_to_vmem [thread:$0]  %s4595_s16, 256, %s155_s30, [#allocation18], %s3561_s21, %s3561_s21, %s3562_s1  }
  0x7a   :  { %3544 = dma.done.wait [#allocation3], 192  }
  0x7b   :  { %3545 = vsyncadd [#allocation3], 4294967104 }
  0x7c   :  { %3546 = dma.done.wait [#allocation6], 384  }
  0x7d   :  { %3547 = vsyncadd [#allocation6], 4294966912 }
  0x7e   :  { %3548 = dma.done.wait [#allocation9], 288  }
  0x7f   :  { %3549 = vsyncadd [#allocation9], 4294967008 }
  0x80   :  { %3550 = dma.done.wait [#allocation12], 528  }
  0x81   :  { %3551 = vsyncadd [#allocation12], 4294966768 }
  0x82   :  { %3552 = dma.done.wait [#allocation15], 144  }
  0x83   :  { %3553 = vsyncadd [#allocation15], 4294967152 }
  0x84   :  { %3554 = dma.done.wait [#allocation18], 256  }
  0x85   :  { %3555 = vsyncadd [#allocation18], 4294967040  ;;  %v4601_v0 = vmov 0.0   ;;  %vm3577_vm0 = vmmov 0   ;;  %v3578_v1 = vmov 1983009808   ;;  %v205_v3 = vlaneseq }
  0x86   :  { %2960 = vmatprep.subr.bf16.mxu0 %v4601_v0  ;;  %2966 = vmatprep.mubr.msk.bf16.mxu0 %vm3577_vm0, %v4601_v0  ;;  %v203_v2 = vunpack.c.l.s4 %v3578_v1  ;;  %v3058_v6 = vld [vmem:[%s4584_s5 + $0x10] sm:$0xff]   ;;  %v3059_v7 = vld [vmem:[%s4584_s5 + $0x8] sm:$0xff]   ;;  %v192_v9 = vld [vmem:[#allocation7] sm:$0x3]  ;;  %vm250_vm1 = vcmask 392192   ;;  %vm314_vm2 = vcmask 261120  }
  0x87   :  { %2970 = vmatprep.subr.bf16.mxu1 %v4601_v0  ;;  %2974 = vmatprep.mubr.msk.bf16.mxu1 %vm3577_vm0, %v4601_v0  ;;  %v3741_v5 = vshrl.u32 %v205_v3, 7  ;;  %v193_v10 = vld [vmem:[#allocation7 + $0x2] sm:$0x3]  ;;  %v194_v11 = vld [vmem:[#allocation7 + $0x4] sm:$0x3]  ;;  %v3061_v15 = vld [vmem:[#allocation10 + $0x8] sm:$0xff]  }
  0x88   :  { %v204_v4 = vunpack.c.0.s8 %v203_v2  ;;  %2961 = vmatpush3.bf16.msra.mxu0 %v3058_v6  ;;  %v195_v12 = vld [vmem:[#allocation7 + $0x6] sm:$0x3]  ;;  %v200_v13 = vcombine.low %v192_v9, %v193_v10  ;;  %v3062_v18 = vld [vmem:[#allocation10] sm:$0xff]   ;;  %2971 = vmatpush3.bf16.msra.mxu1 %v3061_v15  ;;  %v3757_v21 = vld [vmem:[#allocation5 + $0x8] sm:$0xff]  ;;  %v4603_v40 = vmov 0   ;;  %vm411_vm3 = vcmask 130048  }
  0x89   :  { %2962 = vmatprep.subr.bf16.mxu0 %v4601_v0  ;;  %v201_v14 = vcombine.low %v194_v11, %v195_v12  ;;  %v3060_v16 = vld [vmem:[%s4584_s5] sm:$0xff]   ;;  %v3754_v19 = vld [vmem:[#allocation5] sm:$0xff]  ;;  %2972 = vmatprep.subr.bf16.mxu1 %v4601_v0  ;;  %v363_v30 = vld [vmem:[#allocation2 + $0x8] sm:$0x3]  ;;  %v3580_v61 = vmov 1966171168  }
  0x8a   :  { %v207_v8 = vsub.s32 %v204_v4, %v3741_v5  ;;  %v297_v23 = vpack.c.bf16 %v3757_v21, %v3754_v19  ;;  %v359_v25 = vld [vmem:[#allocation2] sm:$0x3]  ;;  %v360_v26 = vld [vmem:[#allocation2 + $0x2] sm:$0x3]  ;;  %v361_v27 = vld [vmem:[#allocation2 + $0x4] sm:$0x3]  ;;  %3056 = vset.pattern.permute.xlu1 %v4603_v40  ;;  %3057 = vset.pattern.permute.xlu0 %v4603_v40  ;;  %v612_v62 = vunpack.c.l.s4 %v3580_v61 }
  0x8b   :  { %v362_v28 = vld [vmem:[#allocation2 + $0x6] sm:$0x3]  ;;  %v371_v29 = vcombine.low %v359_v25, %v360_v26  ;;  %v364_v31 = vld [vmem:[#allocation2 + $0xa] sm:$0x3]  ;;  %v3767_v42 = vld [vmem:[#allocation13 + $0x14] ss:$8 sps:$4 sm:$0xff]  }
  0x8c   :  { %2963 = vmatpush3.bf16.msra.mxu0 %v3059_v7  ;;  %v208_v17 = vrot.slane %v200_v13, %v207_v8  ;;  %v215_v20 = vrot.slane %v201_v14, %v207_v8  ;;  %2973 = vmatpush3.bf16.msra.mxu1 %v3062_v18  ;;  %v372_v32 = vcombine.low %v361_v27, %v362_v28  ;;  %v3065_v33 = vld [vmem:[#allocation17 + $0x4] ss:$8 sps:$4 sm:$0xff]   ;;  %v3063_v36 = vld [vmem:[#allocation17] ss:$8 sps:$4 sm:$0xff]   ;;  %v2865_v46 = vld [vmem:[%s4585_s6] ss:$0 sm:$0xff]  ;;  %v613_v1 = vunpack.c.0.s8 %v612_v62 }
  0x8d   :  { %2964 = vmatprep.subr.bf16.mxu0 %v4601_v0  ;;  %v379_v34 = vrot.slane %v371_v29, %v207_v8  ;;  %v388_v35 = vcombine.low %v363_v30, %v364_v31  ;;  %429 = vmatprep.subr.bf16.mxu1 %v3065_v33  ;;  %v3769_v43 = vld [vmem:[#allocation13 + $0x10] ss:$8 sps:$4 sm:$0xff]   ;;  %v3772_v44 = vld [vmem:[#allocation13 + $0x4] ss:$8 sps:$4 sm:$0xff]   ;;  %v3778_v45 = vld [vmem:[#allocation13] ss:$8 sps:$4 sm:$0xff]  }
  0x8e   :  { %v216_v22 = vcombine.low %v208_v17, %v215_v20  ;;  %v386_v37 = vrot.slane %v372_v32, %v207_v8  ;;  %v3807_v3 = vsub.s32 %v613_v1, %v3741_v5  ;;  %v3812_v7 = vsub.s32 0, %v3741_v5  ;;  %v3821_v5 = vld [vmem:[#allocation11] ss:$0 sm:$0xff]  ;;  %v3072_v27 = vld [vmem:[#allocation14] sm:$0xff]   ;;  %s4614_s28 = sld [smem:[#allocation33_spill]]  ;;  %s3583_s30 = smov [#allocation20]  }
  0x8f   :  { %2975 = vmatmul.mubr.msk.bf16.vlgmr.msra.gmra.mxu1 %vm314_vm2, %v297_v23  ;;  %v395_v38 = vrot.slane %v388_v35, %v207_v8  ;;  %vm663_vm6 = vcmask 7168   ;;  %vm730_vm7 = vcmask 1041409   ;;  %vm779_vm8 = vcmask 523264   ;;  %s2845_s20 = sshll.u32 %s3583_s30, 4  ;;  %s2846_s20 = int_to_ptr.vmem [resolvable:$true] %s2845_s20 }
  0x90   :  { %2965 = vmatpush3.bf16.msra.mxu0 %v3060_v16  ;;  %v218_v24 = vpack.c.bf16 %v216_v22, %v216_v22  ;;  %430 = vmatpush1.bf16.msra.mxu1 %v3063_v36  ;;  %v387_v39 = vcombine.low %v379_v34, %v386_v37  ;;  %vm2778_vm9 = vcmask 531456   ;;  %vm2822_vm10 = vcmask 785408  }
  0x91   :  { %2978 = vmatprep.subr.bf16.mxu0 %v4601_v0  ;;  %447 = vmatprep.mubr.bf16.mxu1 %v4603_v40 }
  0x92   :  { %v398_v41 = vpack.c.bf16 %v395_v38, %v387_v39  ;;  %581 = vmatprep.subr.bf16.mxu1 %v3767_v42 }
  0x93   :  { %2967 = vmatmul.mubr.msk.bf16.vlgmr.msra.gmra.mxu0 %vm250_vm1, %v218_v24 }
  0x94   :  { %2980 = vmatprep.mubr.msk.bf16.mxu0 %vm3577_vm0, %v4601_v0  ;;  %2979 = vmatpush3.bf16.msra.mxu0 %v3072_v27  ;;  %v537_v28 = vld [vmem:[%s4614_s28] sm:$0xff]  ;;  %v538_v29 = vld [vmem:[%s4614_s28 + $0x8] sm:$0xff] }
  0x95   :  { %vm539_vm4 = vcmp.eq.f32.partialorder %v537_v28, 0.0  ;;  %vm540_vm5 = vcmp.eq.f32.partialorder %v538_v29, 0.0 }
  0x96   :  { %v3838_v30 = vsel %vm539_vm4, -1e+30, %v4601_v0  ;;  %v3842_v33 = vsel %vm540_vm5, -1e+30, %v4601_v0 }
  0x97   :  { %2875 = vmatmul.mubr.msk.bf16.vlgmr.msra.gmra.mxu1 %vm411_vm3, %v398_v41 }
  0x98   :  { %582 = vmatpush1.bf16.msra.mxu1 %v3769_v43  ;;  %601 = vmatprep.mubr.bf16.mxu1 %v4603_v40 }
  0x99   :  { %583 = vmatprep.subr.bf16.mxu1 %v3772_v44 }
  0x9c   :  { %584 = vmatpush1.bf16.msra.mxu1 %v3778_v45 }
  0x9d   :  { %2984 = vmatprep.subr.bf16.mxu1 %v4601_v0 }
 0x14f   :  { %v3787_v49 = vpop.f32.mrf.mxu1 }
 0x151   :  { %v2976_v51 = vpop.f32.mrf.mxu1 }
 0x153   :  { %v288_v47 = vpop.f32.mrf.mxu0  ;;  %v3789_v53 = vpop.f32.mrf.mxu1 }
 0x154   :  { %v289_v48 = vadd.f32 %v2865_v46, %v288_v47 }
 0x155   :  { %v2968_v50 = vpop.f32.mrf.mxu0  ;;  %v2977_v55 = vpop.f32.mrf.mxu1 }
 0x156   :  { %3087 = vtanh.f32 %v289_v48 }
 0x157   :  { %v291_v52 = vpop.f32.mrf.mxu0  ;;  %v3798_v59 = vpop.f32.mrf.mxu1 }
 0x159   :  { %v2969_v54 = vpop.f32.mrf.mxu0  ;;  %v3800_v60 = vpop.f32.mrf.mxu1 }
 0x15b   :  { %v3802_v63 = vpop.f32.mrf.mxu1 }
 0x15d   :  { %v3804_v2 = vpop.f32.mrf.mxu1 }
 0x15e   :  { %4613 = vst [vmem:[#allocation30_spill] sm:$0xff] %v3804_v2 }
 0x163   :  { %v3791_v56 = vpop.eup %3087 }
 0x164   :  { %v543_v57 = vpack.c.bf16 %v3791_v56, %v3791_v56  ;;  %v927_v26 = vrot.slane %v3791_v56, 6 }
 0x166   :  { %v545_v58 = vrot.slane %v543_v57, 1 }
 0x168   :  { %2883 = vmatmul.mubr.msk.bf16.vlgmr.msra.gmra.mxu1 %vm314_vm2, %v545_v58 }
 0x169   :  { %2988 = vmatprep.mubr.msk.bf16.mxu1 %vm3577_vm0, %v4601_v0 }
 0x228   :  { %v3809_v4 = vpop.f32.mrf.mxu1 }
 0x22a   :  { %v605_v6 = vpop.f32.mrf.mxu1 }
 0x22b   :  { %v617_v8 = vrot.slane %v605_v6, %v3807_v3 }
 0x22c   :  { %v607_v9 = vpop.f32.mrf.mxu1 }
 0x22d   :  { %v618_v10 = vcombine.high %v617_v8, %v617_v8  ;;  %v625_v11 = vrot.slane %v617_v8, %v3807_v3 }
 0x22e   :  { %v608_v12 = vpop.f32.mrf.mxu1 }
 0x22f   :  { %v632_v13 = vrot.slane %v618_v10, %v3807_v3  ;;  %v636_v14 = vrot.slane %v625_v11, %v3812_v7 }
 0x231   :  { %v640_v15 = vrot.slane %v632_v13, %v3812_v7  ;;  %v643_v16 = vadd.f32 %v636_v14, %v3787_v49 }
 0x233   :  { %v644_v17 = vadd.f32 %v640_v15, %v3789_v53  ;;  %3089 = vtanh.f32 %v643_v16 }
 0x235   :  { %3091 = vtanh.f32 %v644_v17 }
 0x240   :  { %v3090_v18 = vpop.eup %3089 }
 0x241   :  { %v653_v20 = vmul.f32 %v3090_v18, %v3821_v5 }
 0x242   :  { %v3092_v22 = vpop.eup %3091 }
 0x243   :  { %v655_v23 = vsel %vm314_vm2, %v653_v20, 0.0  ;;  %v654_v24 = vmul.f32 %v3092_v22, %v3821_v5 }
 0x244   :  { %656 = vadd.xlane.f32.xlu0 %v655_v23 }
 0x245   :  { %v658_v25 = vsel %vm314_vm2, %v654_v24, 0.0 }
 0x248   :  { %659 = vadd.xlane.f32.xlu0 %v658_v25  ;;  %v458_v25 = vld [vmem:[#allocation8] sm:$0x3] }
 0x25e   :  { %734 = vrot.lane.b32.xlu0 %v3791_v56, %s3569_s26 }
 0x262   :  { %928 = vrot.lane.b32.xlu0 %v927_v26, %s3569_s26  ;;  %v459_v26 = vpack.c.bf16 %v458_v25, %v458_v25 }
 0x264   :  { %2981 = vmatmul.mubr.msk.bf16.vlgmr.msra.gmra.mxu0 %vm411_vm3, %v459_v26 }
 0x265   :  { %815 = vmatprep.mubr.bf16.mxu0 %v4603_v40 }
 0x2cd   :  { %v657_v31 = vpop.xlane.xlu0 %656 }
 0x2ce   :  { %v661_v32 = vadd.f32 %v657_v31, %v3838_v30  ;;  %v3858_v31 = vld [vmem:[%s4589_s10 + $0x34] ss:$8 sps:$4 sm:$0xff]  }
 0x2cf   :  { %791 = vmatprep.subr.bf16.mxu0 %v3858_v31 }
 0x2d0   :  { %v664_v34 = vsel %vm663_vm6, %v661_v32, -inf }
 0x2d1   :  { %v665_v35 = vrot.slane %v664_v34, 4  ;;  %v660_v36 = vpop.xlane.xlu0 %659 }
 0x2d2   :  { %v662_v37 = vadd.f32 %v660_v36, %v3842_v33  ;;  %v3879_v36 = vld [vmem:[%s4589_s10 + $0x20] ss:$8 sps:$4 sm:$0xff]  }
 0x2d3   :  { %v666_v38 = vmax.f32 %v664_v34, %v665_v35  ;;  %v3863_v34 = vld [vmem:[%s4589_s10 + $0x30] ss:$8 sps:$4 sm:$0xff]   ;;  %v3874_v35 = vld [vmem:[%s4589_s10 + $0x24] ss:$8 sps:$4 sm:$0xff]  }
 0x2d4   :  { %v671_v39 = vsel %vm663_vm6, %v662_v37, -inf  ;;  %792 = vmatpush1.bf16.msra.mxu0 %v3863_v34 }
 0x2d5   :  { %v667_v41 = vrot.slane %v666_v38, 2  ;;  %v672_v46 = vrot.slane %v671_v39, 4  ;;  %793 = vmatprep.subr.bf16.mxu0 %v3874_v35 }
 0x2d7   :  { %v668_v47 = vmax.f32 %v666_v38, %v667_v41  ;;  %v673_v48 = vmax.f32 %v671_v39, %v672_v46  ;;  %v3891_v38 = vld [vmem:[%s4589_s10 + $0x10] ss:$8 sps:$4 sm:$0xff]   ;;  %v3898_v39 = vld [vmem:[%s4589_s10 + $0x4] ss:$8 sps:$4 sm:$0xff]   ;;  %v3903_v41 = vld [vmem:[%s4589_s10] ss:$8 sps:$4 sm:$0xff]  }
 0x2d8   :  { %794 = vmatpush1.bf16.msra.mxu0 %v3879_v36 }
 0x2d9   :  { %v669_v50 = vrot.slane %v668_v47, 1  ;;  %v674_v51 = vrot.slane %v673_v48, 2 }
 0x2db   :  { %v670_v52 = vmax.f32 %v668_v47, %v669_v50  ;;  %v675_v54 = vmax.f32 %v673_v48, %v674_v51 }
 0x2dd   :  { %v678_v55 = vsub.f32 %v661_v32, %v670_v52  ;;  %v676_v57 = vrot.slane %v675_v54, 1 }
 0x2df   :  { %v680_v58 = vmul.f32 1.442695, %v678_v55  ;;  %v677_v61 = vmax.f32 %v675_v54, %v676_v57 }
 0x2e1   :  { %3093 = vpow2.f32 %v680_v58  ;;  %v679_v62 = vsub.f32 %v662_v37, %v677_v61  ;;  %v3886_v37 = vld [vmem:[%s4589_s10 + $0x14] ss:$8 sps:$4 sm:$0xff]  }
 0x2e2   :  { %795 = vmatprep.subr.bf16.mxu0 %v3886_v37 }
 0x2e3   :  { %v682_v1 = vmul.f32 1.442695, %v679_v62  ;;  %796 = vmatpush1.bf16.msra.mxu0 %v3891_v38 }
 0x2e4   :  { %797 = vmatprep.subr.bf16.mxu0 %v3898_v39 }
 0x2e5   :  { %3095 = vpow2.f32 %v682_v1 }
 0x2e7   :  { %798 = vmatpush1.bf16.msra.mxu0 %v3903_v41 }
 0x2e8   :  { %1140 = vmatprep.subr.bf16.mxu0 %v3858_v31 }
 0x2ee   :  { %v3094_v6 = vpop.eup %3093 }
 0x2ef   :  { %v684_v8 = vsel %vm663_vm6, %v3094_v6, 0.0 }
 0x2f0   :  { %v685_v9 = vrot.slane %v684_v8, 4 }
 0x2f2   :  { %v3096_v10 = vpop.eup %3095  ;;  %v686_v11 = vadd.f32 %v685_v9, %v684_v8 }
 0x2f3   :  { %v691_v12 = vsel %vm663_vm6, %v3096_v10, 0.0 }
 0x2f4   :  { %v692_v13 = vrot.slane %v691_v12, 4  ;;  %v687_v14 = vrot.slane %v686_v11, 2 }
 0x2f6   :  { %v693_v15 = vadd.f32 %v692_v13, %v691_v12  ;;  %v688_v16 = vadd.f32 %v687_v14, %v686_v11  ;;  %v735_v12 = vpop.permute.xlu0 %734 }
 0x2f8   :  { %v694_v17 = vrot.slane %v693_v15, 2  ;;  %v689_v18 = vrot.slane %v688_v16, 1 }
 0x2fa   :  { %v690_v20 = vadd.f32 %v689_v18, %v688_v16  ;;  %v695_v22 = vadd.f32 %v694_v17, %v693_v15 }
 0x2fc   :  { %3097 = vrcp.f32 %v690_v20  ;;  %v696_v23 = vrot.slane %v695_v22, 1 }
 0x2fe   :  { %v697_v24 = vadd.f32 %v696_v23, %v695_v22  ;;  %v2876_v22 = vld [vmem:[#allocation16] ss:$0 sm:$0xff] }
 0x300   :  { %3099 = vrcp.f32 %v697_v24 }
 0x309   :  { %v3098_v27 = vpop.eup %3097 }
 0x30a   :  { %v700_v28 = vmul.f32 %v3098_v27, %v3094_v6 }
 0x30c   :  { %704 = vperm.xlu1 %3056, %v700_v28   ;;  %2791 = vst.msk [vmem:[%s4597_s18] sm:$0xff] %vm663_vm6, %v700_v28 }
 0x30d   :  { %v3100_v29 = vpop.eup %3099 }
 0x30e   :  { %v701_v32 = vmul.f32 %v3100_v29, %v3096_v10 }
 0x310   :  { %709 = vperm.xlu1 %3056, %v701_v32   ;;  %2792 = vst.msk [vmem:[%s4597_s18 + $0x8] sm:$0xff] %vm663_vm6, %v701_v32 }
 0x324   :  { %v512_v16 = vpop.f32.mrf.mxu0 }
 0x325   :  { %v3924_v24 = vadd.f32 %v2876_v22, %v512_v16 }
 0x326   :  { %v2982_v17 = vpop.f32.mrf.mxu0 }
 0x328   :  { %v515_v18 = vpop.f32.mrf.mxu0 }
 0x32a   :  { %v2983_v20 = vpop.f32.mrf.mxu0 }
 0x387   :  { %v705_v46 = vpop.permute.xlu1 %704 }
 0x388   :  { %v712_v47 = vmul.f32 %v705_v46, %v3754_v19  ;;  %v833_v46 = vrot.slane %v3791_v56, 4  ;;  %v3940_v56 = vld [vmem:[%s4592_s13 + $0x8] sm:$0xff]  }
 0x389   :  { %2985 = vmatpush3.bf16.msra.mxu1 %v3940_v56 }
 0x38a   :  { %v714_v48 = vsel %vm314_vm2, %v712_v47, 0.0  ;;  %2986 = vmatprep.subr.bf16.mxu1 %v4601_v0 }
 0x38b   :  { %v715_v50 = vrot.slane %v714_v48, 4  ;;  %v710_v51 = vpop.permute.xlu1 %709 }
 0x38c   :  { %v713_v52 = vmul.f32 %v710_v51, %v3757_v21 }
 0x38d   :  { %v716_v54 = vadd.f32 %v715_v50, %v714_v48 }
 0x38e   :  { %v721_v55 = vsel %vm314_vm2, %v713_v52, 0.0 }
 0x38f   :  { %v717_v57 = vrot.slane %v716_v54, 2  ;;  %v722_v58 = vrot.slane %v721_v55, 4 }
 0x391   :  { %v718_v61 = vadd.f32 %v717_v57, %v716_v54  ;;  %v723_v62 = vadd.f32 %v722_v58, %v721_v55 }
 0x393   :  { %v724_v1 = vrot.slane %v723_v62, 2  ;;  %v719_v6 = vrot.slane %v718_v61, 1 }
 0x395   :  { %v725_v8 = vadd.f32 %v724_v1, %v723_v62  ;;  %v720_v10 = vadd.f32 %v719_v6, %v718_v61  ;;  %v3946_v62 = vld [vmem:[%s4592_s13] sm:$0xff]  }
 0x396   :  { %2987 = vmatpush3.bf16.msra.mxu1 %v3946_v62 }
 0x397   :  { %v726_v9 = vrot.slane %v725_v8, 1  ;;  %967 = vmatprep.subr.bf16.mxu1 %v3767_v42 }
 0x399   :  { %v727_v11 = vadd.f32 %v726_v9, %v725_v8 }
 0x39b   :  { %v731_v13 = vsel %vm730_vm7, %v727_v11, %v720_v10  ;;  %v3966_v11 = vld [vmem:[%s4593_s14] ss:$0 sm:$0xff] }
 0x39c   :  { %v737_v14 = vsel %vm314_vm2, %v731_v13, %v735_v12 }
 0x39d   :  { %v738_v15 = vpack.c.bf16 %v737_v14, %v737_v14 }
 0x39f   :  { %2893 = vmatmul.mubr.msk.bf16.vlgmr.msra.gmra.mxu0 %vm779_vm8, %v738_v15 }
 0x3a0   :  { %1141 = vmatpush1.bf16.msra.mxu0 %v3863_v34  ;;  %1164 = vmatprep.mubr.bf16.mxu0 %v4603_v40 }
 0x3a1   :  { %1142 = vmatprep.subr.bf16.mxu0 %v3874_v35 }
 0x3a4   :  { %1143 = vmatpush1.bf16.msra.mxu0 %v3879_v36 }
 0x3a5   :  { %1144 = vmatprep.subr.bf16.mxu0 %v3886_v37 }
 0x3a8   :  { %1145 = vmatpush1.bf16.msra.mxu0 %v3891_v38 }
 0x3a9   :  { %1146 = vmatprep.subr.bf16.mxu0 %v3898_v39 }
 0x3ac   :  { %1147 = vmatpush1.bf16.msra.mxu0 %v3903_v41 }
 0x3ad   :  { %1472 = vmatprep.subr.bf16.mxu0 %v3858_v31 }
 0x45f   :  { %v817_v23 = vpop.f32.mrf.mxu0 }
 0x460   :  { %v824_v25 = vadd.f32 %v817_v23, %v3798_v59 }
 0x461   :  { %v3927_v26 = vpop.f32.mrf.mxu0 }
 0x462   :  { %v825_v27 = vadd.f32 %v824_v25, %v3924_v24 }
 0x463   :  { %v821_v28 = vpop.f32.mrf.mxu0 }
 0x464   :  { %3101 = vtanh.f32 %v825_v27  ;;  %v2894_v47 = vmul.f32 -1.442695, %v825_v27 }
 0x465   :  { %v822_v29 = vpop.f32.mrf.mxu0 }
 0x466   :  { %3103 = vpow2.f32 %v2894_v47 }
 0x471   :  { %v3102_v32 = vpop.eup %3101 }
 0x472   :  { %839 = vrot.lane.b32.xlu1 %v3102_v32, %s3567_s4 }
 0x473   :  { %v3104_v48 = vpop.eup %3103 }
 0x474   :  { %v829_v50 = vadd.f32 1.0, %v3104_v48 }
 0x476   :  { %834 = vrot.lane.b32.xlu1 %v833_v46, %s3569_s26  ;;  %3105 = vrcp.f32 %v829_v50 }
 0x483   :  { %v3106_v51 = vpop.eup %3105 }
 0x4e4   :  { %v840_v52 = vpop.permute.xlu1 %839 }
 0x4e5   :  { %v842_v54 = vmul.f32 %v3106_v51, %v840_v52 }
 0x4e7   :  { %844 = vrot.lane.b32.xlu1 %v842_v54, %s3569_s26 }
 0x4e8   :  { %v835_v55 = vpop.permute.xlu1 %834 }
 0x4e9   :  { %v837_v57 = vmul.f32 %v3106_v51, %v835_v55 }
 0x559   :  { %v845_v58 = vpop.permute.xlu1 %844 }
 0x55a   :  { %v3934_v61 = vadd.f32 %v845_v58, %v837_v57 }
 0x55c   :  { %3107 = vtanh.f32 %v3934_v61 }
 0x569   :  { %v3108_v1 = vpop.eup %3107 }
 0x56a   :  { %850 = vrot.lane.b32.xlu1 %v3108_v1, %s3567_s4 }
 0x5dc   :  { %v851_v6 = vpop.permute.xlu1 %850 }
 0x5dd   :  { %v3952_v8 = vmul.f32 %v3106_v51, %v851_v6 }
 0x5df   :  { %v854_v9 = vpack.c.bf16 %v3952_v8, %v3952_v8 }
 0x5e1   :  { %856 = vrot.lane.b32.xlu1 %v854_v9, %s3569_s26 }
 0x653   :  { %v857_v10 = vpop.permute.xlu1 %856 }
 0x654   :  { %2989 = vmatmul.mubr.msk.bf16.vlgmr.msra.gmra.mxu1 %vm314_vm2, %v857_v10 }
 0x655   :  { %968 = vmatpush1.bf16.msra.mxu1 %v3769_v43  ;;  %987 = vmatprep.mubr.bf16.mxu1 %v4603_v40 }
 0x656   :  { %969 = vmatprep.subr.bf16.mxu1 %v3772_v44 }
 0x659   :  { %970 = vmatpush1.bf16.msra.mxu1 %v3778_v45 }
 0x65a   :  { %2992 = vmatprep.subr.bf16.mxu1 %v4601_v0 }
 0x714   :  { %v907_v12 = vpop.f32.mrf.mxu1 }
 0x715   :  { %v908_v13 = vadd.f32 %v907_v12, %v3809_v4  ;;  %v929_v4 = vpop.permute.xlu0 %928 }
 0x716   :  { %v2990_v14 = vpop.f32.mrf.mxu1 }
 0x717   :  { %v919_v15 = vadd.f32 %v3966_v11, %v908_v13 }
 0x718   :  { %v910_v16 = vpop.f32.mrf.mxu1 }
 0x719   :  { %3109 = vtanh.f32 %v919_v15  ;;  %v2899_v20 = vmul.f32 -1.442695, %v919_v15 }
 0x71a   :  { %v2991_v17 = vpop.f32.mrf.mxu1 }
 0x71b   :  { %3111 = vpow2.f32 %v2899_v20 }
 0x726   :  { %v3110_v18 = vpop.eup %3109 }
 0x727   :  { %933 = vrot.lane.b32.xlu1 %v3110_v18, %s3567_s4 }
 0x728   :  { %v3112_v22 = vpop.eup %3111 }
 0x729   :  { %v923_v23 = vadd.f32 1.0, %v3112_v22 }
 0x72b   :  { %3113 = vrcp.f32 %v923_v23 }
 0x738   :  { %v3114_v25 = vpop.eup %3113 }
 0x739   :  { %v931_v29 = vmul.f32 %v3114_v25, %v929_v4 }
 0x799   :  { %v934_v27 = vpop.permute.xlu1 %933 }
 0x79a   :  { %v936_v28 = vmul.f32 %v3114_v25, %v934_v27 }
 0x79c   :  { %938 = vrot.lane.b32.xlu1 %v936_v28, %s3569_s26 }
 0x80e   :  { %v939_v32 = vpop.permute.xlu1 %938 }
 0x80f   :  { %v3972_v46 = vadd.f32 %v939_v32, %v931_v29 }
 0x811   :  { %3115 = vtanh.f32 %v3972_v46 }
 0x81e   :  { %v3116_v47 = vpop.eup %3115 }
 0x81f   :  { %944 = vrot.lane.b32.xlu0 %v3116_v47, %s3567_s4 }
 0x891   :  { %v945_v48 = vpop.permute.xlu0 %944 }
 0x892   :  { %v3976_v50 = vmul.f32 %v3114_v25, %v945_v48 }
 0x894   :  { %v948_v51 = vpack.c.bf16 %v3976_v50, %v3976_v50 }
 0x896   :  { %950 = vrot.lane.b32.xlu1 %v948_v51, %s3569_s26 }
 0x908   :  { %v951_v52 = vpop.permute.xlu1 %950 }
 0x909   :  { %2900 = vmatmul.mubr.msk.bf16.vlgmr.msra.gmra.mxu1 %vm314_vm2, %v951_v52 }
 0x90a   :  { %2993 = vmatpush3.bf16.msra.mxu1 %v3940_v56  ;;  %2996 = vmatprep.mubr.msk.bf16.mxu1 %vm3577_vm0, %v4601_v0 }
 0x90b   :  { %2994 = vmatprep.subr.bf16.mxu1 %v4601_v0 }
 0x90e   :  { %2995 = vmatpush3.bf16.msra.mxu1 %v3946_v62 }
 0x90f   :  { %1300 = vmatprep.subr.bf16.mxu1 %v3767_v42 }
 0x9c9   :  { %v3988_v54 = vpop.f32.mrf.mxu1 }
 0x9cb   :  { %v3990_v55 = vpop.f32.mrf.mxu1 }
 0x9cc   :  { %v1015_v57 = vrot.slane %v3990_v55, %v3807_v3 }
 0x9cd   :  { %v993_v58 = vpop.f32.mrf.mxu1 }
 0x9ce   :  { %v1016_v1 = vcombine.high %v1015_v57, %v1015_v57  ;;  %v1023_v6 = vrot.slane %v1015_v57, %v3807_v3 }
 0x9cf   :  { %v994_v9 = vpop.f32.mrf.mxu1 }
 0x9d0   :  { %v1030_v10 = vrot.slane %v1016_v1, %v3807_v3  ;;  %v1034_v12 = vrot.slane %v1023_v6, %v3812_v7 }
 0x9d2   :  { %v1038_v13 = vrot.slane %v1030_v10, %v3812_v7  ;;  %v1041_v14 = vadd.f32 %v1034_v12, %v3787_v49 }
 0x9d4   :  { %v1042_v15 = vadd.f32 %v1038_v13, %v3789_v53  ;;  %3117 = vtanh.f32 %v1041_v14 }
 0x9d6   :  { %3119 = vtanh.f32 %v1042_v15 }
 0x9e1   :  { %v3118_v16 = vpop.eup %3117 }
 0x9e2   :  { %v1045_v17 = vmul.f32 %v3118_v16, %v3821_v5 }
 0x9e3   :  { %v3120_v18 = vpop.eup %3119 }
 0x9e4   :  { %v1047_v20 = vsel %vm314_vm2, %v1045_v17, 0.0  ;;  %v1046_v22 = vmul.f32 %v3120_v18, %v3821_v5 }
 0x9e5   :  { %1048 = vadd.xlane.f32.xlu0 %v1047_v20 }
 0x9e6   :  { %v1050_v23 = vsel %vm314_vm2, %v1046_v22, 0.0 }
 0x9e7   :  { %1051 = vadd.xlane.f32.xlu1 %v1050_v23 }
 0xa6e   :  { %v1049_v25 = vpop.xlane.xlu0 %1048 }
 0xa6f   :  { %v1053_v27 = vadd.f32 %v1049_v25, %v3838_v30 }
 0xa70   :  { %v1052_v28 = vpop.xlane.xlu1 %1051 }
 0xa71   :  { %v1055_v4 = vsel %vm663_vm6, %v1053_v27, -inf  ;;  %v1054_v29 = vadd.f32 %v1052_v28, %v3842_v33 }
 0xa72   :  { %v1056_v32 = vrot.slane %v1055_v4, 4 }
 0xa73   :  { %v1062_v47 = vsel %vm663_vm6, %v1054_v29, -inf }
 0xa74   :  { %v1057_v48 = vmax.f32 %v1055_v4, %v1056_v32  ;;  %v1063_v51 = vrot.slane %v1062_v47, 4 }
 0xa76   :  { %v1058_v52 = vrot.slane %v1057_v48, 2  ;;  %v1064_v57 = vmax.f32 %v1062_v47, %v1063_v51 }
 0xa78   :  { %v1059_v58 = vmax.f32 %v1057_v48, %v1058_v52  ;;  %v1065_v1 = vrot.slane %v1064_v57, 2 }
 0xa7a   :  { %v1060_v6 = vrot.slane %v1059_v58, 1  ;;  %v1066_v9 = vmax.f32 %v1064_v57, %v1065_v1 }
 0xa7c   :  { %v1061_v10 = vmax.f32 %v1059_v58, %v1060_v6  ;;  %v1067_v12 = vrot.slane %v1066_v9, 1 }
 0xa7e   :  { %v1069_v13 = vsub.f32 %v1053_v27, %v1061_v10  ;;  %v1068_v14 = vmax.f32 %v1066_v9, %v1067_v12 }
 0xa80   :  { %v1071_v15 = vmul.f32 1.442695, %v1069_v13  ;;  %v1070_v16 = vsub.f32 %v1054_v29, %v1068_v14 }
 0xa82   :  { %3121 = vpow2.f32 %v1071_v15  ;;  %v1073_v17 = vmul.f32 1.442695, %v1070_v16 }
 0xa84   :  { %3123 = vpow2.f32 %v1073_v17 }
 0xa8f   :  { %v3122_v18 = vpop.eup %3121 }
 0xa90   :  { %v1075_v20 = vsel %vm663_vm6, %v3122_v18, 0.0 }
 0xa91   :  { %v3124_v22 = vpop.eup %3123  ;;  %v1076_v23 = vrot.slane %v1075_v20, 4 }
 0xa92   :  { %v1082_v25 = vsel %vm663_vm6, %v3124_v22, 0.0 }
 0xa93   :  { %v1077_v28 = vadd.f32 %v1076_v23, %v1075_v20  ;;  %v1083_v4 = vrot.slane %v1082_v25, 4 }
 0xa95   :  { %v1078_v32 = vrot.slane %v1077_v28, 2  ;;  %v1084_v47 = vadd.f32 %v1083_v4, %v1082_v25 }
 0xa97   :  { %v1085_v48 = vrot.slane %v1084_v47, 2  ;;  %v1079_v51 = vadd.f32 %v1078_v32, %v1077_v28 }
 0xa99   :  { %v1080_v27 = vrot.slane %v1079_v51, 1  ;;  %v1086_v52 = vadd.f32 %v1085_v48, %v1084_v47 }
 0xa9b   :  { %v1081_v57 = vadd.f32 %v1080_v27, %v1079_v51  ;;  %v1087_v29 = vrot.slane %v1086_v52, 1 }
 0xa9d   :  { %3125 = vrcp.f32 %v1081_v57  ;;  %v1088_v58 = vadd.f32 %v1087_v29, %v1086_v52 }
 0xa9f   :  { %3127 = vrcp.f32 %v1088_v58 }
 0xaaa   :  { %v3126_v1 = vpop.eup %3125 }
 0xaab   :  { %v1091_v6 = vmul.f32 %v3126_v1, %v3122_v18 }
 0xaac   :  { %v3128_v9 = vpop.eup %3127 }
 0xaad   :  { %1095 = vperm.xlu0 %3057, %v1091_v6   ;;  %2793 = vst.msk [vmem:[%s4597_s18 + $0x10] sm:$0xff] %vm663_vm6, %v1091_v6  ;;  %v1092_v10 = vmul.f32 %v3128_v9, %v3124_v22  ;;  %v4600_v6 = vrot.slane %v3924_v24, 6 }
 0xaaf   :  { %1100 = vperm.xlu1 %3056, %v1092_v10   ;;  %2794 = vst.msk [vmem:[%s4597_s18 + $0x18] sm:$0xff] %vm663_vm6, %v1092_v10 }
 0xab3   :  { %1124 = vrot.lane.b32.xlu1 %v3952_v8, %s3567_s4 }
 0xb28   :  { %v1096_v12 = vpop.permute.xlu0 %1095 }
 0xb29   :  { %v1103_v13 = vmul.f32 %v1096_v12, %v3754_v19 }
 0xb2a   :  { %v1101_v14 = vpop.permute.xlu1 %1100 }
 0xb2b   :  { %v1105_v15 = vsel %vm314_vm2, %v1103_v13, 0.0  ;;  %v1104_v16 = vmul.f32 %v1101_v14, %v3757_v21 }
 0xb2c   :  { %v1106_v17 = vrot.slane %v1105_v15, 4 }
 0xb2d   :  { %v1112_v18 = vsel %vm314_vm2, %v1104_v16, 0.0 }
 0xb2e   :  { %v1107_v20 = vadd.f32 %v1106_v17, %v1105_v15  ;;  %v1113_v22 = vrot.slane %v1112_v18, 4  ;;  %v1125_v27 = vpop.permute.xlu1 %1124 }
 0xb30   :  { %v1108_v23 = vrot.slane %v1107_v20, 2  ;;  %v1114_v25 = vadd.f32 %v1113_v22, %v1112_v18  ;;  %v1189_v22 = vrot.slane %v3934_v61, 6 }
 0xb32   :  { %v1109_v28 = vadd.f32 %v1108_v23, %v1107_v20  ;;  %v1115_v4 = vrot.slane %v1114_v25, 2 }
 0xb34   :  { %v1110_v32 = vrot.slane %v1109_v28, 1  ;;  %v1116_v47 = vadd.f32 %v1115_v4, %v1114_v25 }
 0xb36   :  { %v1117_v8 = vrot.slane %v1116_v47, 1  ;;  %v1111_v48 = vadd.f32 %v1110_v32, %v1109_v28 }
 0xb38   :  { %v1118_v51 = vadd.f32 %v1117_v8, %v1116_v47 }
 0xb3a   :  { %v1121_v19 = vsel %vm730_vm7, %v1118_v51, %v1111_v48 }
 0xb3b   :  { %v1127_v52 = vsel %vm314_vm2, %v1121_v19, %v1125_v27 }
 0xb3c   :  { %v1128_v21 = vpack.c.bf16 %v1127_v52, %v1127_v52 }
 0xb3e   :  { %2902 = vmatmul.mubr.msk.bf16.vlgmr.msra.gmra.mxu0 %vm779_vm8, %v1128_v21 }
 0xb3f   :  { %1473 = vmatpush1.bf16.msra.mxu0 %v3863_v34  ;;  %1496 = vmatprep.mubr.bf16.mxu0 %v4603_v40 }
 0xb40   :  { %1474 = vmatprep.subr.bf16.mxu0 %v3874_v35 }
 0xb43   :  { %1475 = vmatpush1.bf16.msra.mxu0 %v3879_v36 }
 0xb44   :  { %1476 = vmatprep.subr.bf16.mxu0 %v3886_v37 }
 0xb47   :  { %1477 = vmatpush1.bf16.msra.mxu0 %v3891_v38 }
 0xb48   :  { %1478 = vmatprep.subr.bf16.mxu0 %v3898_v39 }
 0xb4b   :  { %1479 = vmatpush1.bf16.msra.mxu0 %v3903_v41 }
 0xb4c   :  { %1803 = vmatprep.subr.bf16.mxu0 %v3858_v31 }
 0xbfe   :  { %v1166_v57 = vpop.f32.mrf.mxu0 }
 0xbff   :  { %v1174_v29 = vrot.slane %v1166_v57, 6 }
 0xc00   :  { %v4036_v58 = vpop.f32.mrf.mxu0 }
 0xc01   :  { %v1176_v1 = vadd.f32 %v1174_v29, %v3798_v59 }
 0xc02   :  { %v1170_v9 = vpop.f32.mrf.mxu0 }
 0xc03   :  { %v1180_v10 = vadd.f32 %v4600_v6, %v1176_v1 }
 0xc04   :  { %v1171_v12 = vpop.f32.mrf.mxu0 }
 0xc05   :  { %3129 = vtanh.f32 %v1180_v10  ;;  %v2903_v14 = vmul.f32 -1.442695, %v1180_v10 }
 0xc07   :  { %3131 = vpow2.f32 %v2903_v14 }
 0xc12   :  { %v3130_v13 = vpop.eup %3129 }
 0xc13   :  { %1193 = vrot.lane.b32.xlu1 %v3130_v13, %s3567_s4 }
 0xc14   :  { %v3132_v15 = vpop.eup %3131 }
 0xc15   :  { %v1184_v16 = vadd.f32 1.0, %v3132_v15 }
 0xc17   :  { %3133 = vrcp.f32 %v1184_v16 }
 0xc24   :  { %v3134_v17 = vpop.eup %3133 }
 0xc25   :  { %v1191_v23 = vmul.f32 %v3134_v17, %v1189_v22 }
 0xc85   :  { %v1194_v18 = vpop.permute.xlu1 %1193 }
 0xc86   :  { %v1196_v20 = vmul.f32 %v3134_v17, %v1194_v18 }
 0xc88   :  { %1198 = vrot.lane.b32.xlu1 %v1196_v20, %s3569_s26 }
 0xcfa   :  { %v1199_v25 = vpop.permute.xlu1 %1198 }
 0xcfb   :  { %v4045_v28 = vadd.f32 %v1199_v25, %v1191_v23 }
 0xcfd   :  { %3135 = vtanh.f32 %v4045_v28 }
 0xd0a   :  { %v3136_v4 = vpop.eup %3135 }
 0xd0b   :  { %1204 = vrot.lane.b32.xlu1 %v3136_v4, %s3567_s4 }
 0xd7d   :  { %v1205_v32 = vpop.permute.xlu1 %1204 }
 0xd7e   :  { %v4049_v47 = vmul.f32 %v3134_v17, %v1205_v32 }
 0xd80   :  { %v1208_v8 = vpack.c.bf16 %v4049_v47, %v4049_v47 }
 0xd82   :  { %v1210_v48 = vrot.slane %v1208_v8, 1 }
 0xd84   :  { %1211 = vrot.lane.b32.xlu1 %v1210_v48, %s3569_s26 }
 0xdf6   :  { %v1212_v51 = vpop.permute.xlu1 %1211 }
 0xdf7   :  { %2997 = vmatmul.mubr.msk.bf16.vlgmr.msra.gmra.mxu1 %vm314_vm2, %v1212_v51 }
 0xdf8   :  { %1301 = vmatpush1.bf16.msra.mxu1 %v3769_v43  ;;  %1320 = vmatprep.mubr.bf16.mxu1 %v4603_v40 }
 0xdf9   :  { %1302 = vmatprep.subr.bf16.mxu1 %v3772_v44 }
 0xdfc   :  { %1303 = vmatpush1.bf16.msra.mxu1 %v3778_v45 }
 0xdfd   :  { %3000 = vmatprep.subr.bf16.mxu1 %v4601_v0 }
 0xeb7   :  { %v1250_v61 = vpop.f32.mrf.mxu1 }
 0xeb8   :  { %v1251_v19 = vadd.f32 %v1250_v61, %v3988_v54 }
 0xeb9   :  { %v2998_v27 = vpop.f32.mrf.mxu1 }
 0xeba   :  { %v1256_v52 = vadd.f32 %v3966_v11, %v1251_v19 }
 0xebb   :  { %v1253_v21 = vpop.f32.mrf.mxu1 }
 0xebc   :  { %3137 = vtanh.f32 %v1256_v52  ;;  %v2905_v43 = vmul.f32 -1.442695, %v1256_v52 }
 0xebd   :  { %v2999_v57 = vpop.f32.mrf.mxu1 }
 0xebe   :  { %3139 = vpow2.f32 %v2905_v43 }
 0xec9   :  { %v3138_v29 = vpop.eup %3137 }
 0xeca   :  { %1266 = vrot.lane.b32.xlu0 %v3138_v29, %s3567_s4 }
 0xecb   :  { %v3140_v1 = vpop.eup %3139 }
 0xecc   :  { %v1260_v44 = vadd.f32 1.0, %v3140_v1 }
 0xece   :  { %3141 = vrcp.f32 %v1260_v44 }
 0xedb   :  { %v3142_v45 = vpop.eup %3141 }
 0xedc   :  { %v1264_v54 = vmul.f32 %v3142_v45, %v3972_v46 }
 0xf3c   :  { %v1267_v9 = vpop.permute.xlu0 %1266 }
 0xf3d   :  { %v1269_v10 = vmul.f32 %v3142_v45, %v1267_v9 }
 0xf3f   :  { %1271 = vrot.lane.b32.xlu1 %v1269_v10, %s3569_s26 }
 0xfb1   :  { %v1272_v12 = vpop.permute.xlu1 %1271 }
 0xfb2   :  { %v4065_v13 = vadd.f32 %v1272_v12, %v1264_v54 }
 0xfb4   :  { %3143 = vtanh.f32 %v4065_v13 }
 0xfc1   :  { %v3144_v14 = vpop.eup %3143 }
 0xfc2   :  { %1277 = vrot.lane.b32.xlu0 %v3144_v14, %s3567_s4 }
0x1034   :  { %v1278_v15 = vpop.permute.xlu0 %1277 }
0x1035   :  { %v4069_v16 = vmul.f32 %v3142_v45, %v1278_v15 }
0x1037   :  { %v1281_v17 = vpack.c.bf16 %v4069_v16, %v4069_v16 }
0x1039   :  { %1283 = vrot.lane.b32.xlu1 %v1281_v17, %s3569_s26 }
0x10ab   :  { %v1284_v18 = vpop.permute.xlu1 %1283 }
0x10ac   :  { %2906 = vmatmul.mubr.msk.bf16.vlgmr.msra.gmra.mxu1 %vm314_vm2, %v1284_v18 }
0x10ad   :  { %3001 = vmatpush3.bf16.msra.mxu1 %v3940_v56  ;;  %3004 = vmatprep.mubr.msk.bf16.mxu1 %vm3577_vm0, %v4601_v0 }
0x10ae   :  { %3002 = vmatprep.subr.bf16.mxu1 %v4601_v0 }
0x10b1   :  { %3003 = vmatpush3.bf16.msra.mxu1 %v3946_v62 }
0x10b2   :  { %1631 = vmatprep.subr.bf16.mxu1 %v3767_v42 }
0x116c   :  { %v4081_v46 = vpop.f32.mrf.mxu1 }
0x116e   :  { %v4083_v20 = vpop.f32.mrf.mxu1 }
0x116f   :  { %v1346_v22 = vrot.slane %v4083_v20, %v3807_v3 }
0x1170   :  { %v1326_v23 = vpop.f32.mrf.mxu1 }
0x1171   :  { %v1347_v25 = vcombine.high %v1346_v22, %v1346_v22  ;;  %v1354_v4 = vrot.slane %v1346_v22, %v3807_v3 }
0x1172   :  { %v1327_v32 = vpop.f32.mrf.mxu1 }
0x1173   :  { %v1361_v8 = vrot.slane %v1347_v25, %v3807_v3  ;;  %v1365_v48 = vrot.slane %v1354_v4, %v3812_v7 }
0x1175   :  { %v1369_v51 = vrot.slane %v1361_v8, %v3812_v7  ;;  %v1372_v42 = vadd.f32 %v1365_v48, %v3787_v49 }
0x1177   :  { %v1373_v61 = vadd.f32 %v1369_v51, %v3789_v53  ;;  %3145 = vtanh.f32 %v1372_v42 }
0x1179   :  { %3147 = vtanh.f32 %v1373_v61 }
0x1184   :  { %v3146_v19 = vpop.eup %3145 }
0x1185   :  { %v1376_v27 = vmul.f32 %v3146_v19, %v3821_v5 }
0x1186   :  { %v3148_v52 = vpop.eup %3147 }
0x1187   :  { %v1378_v21 = vsel %vm314_vm2, %v1376_v27, 0.0  ;;  %v1377_v57 = vmul.f32 %v3148_v52, %v3821_v5 }
0x1188   :  { %1379 = vadd.xlane.f32.xlu0 %v1378_v21 }
0x1189   :  { %v1381_v29 = vsel %vm314_vm2, %v1377_v57, 0.0 }
0x118a   :  { %1382 = vadd.xlane.f32.xlu1 %v1381_v29 }
0x1211   :  { %v1380_v43 = vpop.xlane.xlu0 %1379 }
0x1212   :  { %v1384_v1 = vadd.f32 %v1380_v43, %v3838_v30 }
0x1213   :  { %v1383_v44 = vpop.xlane.xlu1 %1382 }
0x1214   :  { %v1386_v45 = vsel %vm663_vm6, %v1384_v1, -inf  ;;  %v1385_v9 = vadd.f32 %v1383_v44, %v3842_v33 }
0x1215   :  { %v1387_v10 = vrot.slane %v1386_v45, 4 }
0x1216   :  { %v1393_v54 = vsel %vm663_vm6, %v1385_v9, -inf }
0x1217   :  { %v1388_v12 = vmax.f32 %v1386_v45, %v1387_v10  ;;  %v1394_v14 = vrot.slane %v1393_v54, 4 }
0x1219   :  { %v1389_v15 = vrot.slane %v1388_v12, 2  ;;  %v1395_v17 = vmax.f32 %v1393_v54, %v1394_v14 }
0x121b   :  { %v1390_v5 = vmax.f32 %v1388_v12, %v1389_v15  ;;  %v1396_v18 = vrot.slane %v1395_v17, 2 }
0x121d   :  { %v1391_v22 = vrot.slane %v1390_v5, 1  ;;  %v1397_v23 = vmax.f32 %v1395_v17, %v1396_v18 }
0x121f   :  { %v1392_v25 = vmax.f32 %v1390_v5, %v1391_v22  ;;  %v1398_v4 = vrot.slane %v1397_v23, 1  ;;  %v1455_v22 = vrot.slane %v4049_v47, 2 }
0x1221   :  { %v1400_v32 = vsub.f32 %v1384_v1, %v1392_v25  ;;  %v1399_v8 = vmax.f32 %v1397_v23, %v1398_v4  ;;  %v4113_v25 = vld [vmem:[#allocation5] sm:$0xff] }
0x1223   :  { %v1402_v48 = vmul.f32 1.442695, %v1400_v32  ;;  %v1401_v51 = vsub.f32 %v1385_v9, %v1399_v8 }
0x1225   :  { %3149 = vpow2.f32 %v1402_v48  ;;  %v1404_v42 = vmul.f32 1.442695, %v1401_v51  ;;  %v4117_v48 = vld [vmem:[#allocation5 + $0x8] sm:$0xff] }
0x1227   :  { %3151 = vpow2.f32 %v1404_v42 }
0x1232   :  { %v3150_v61 = vpop.eup %3149 }
0x1233   :  { %v1406_v19 = vsel %vm663_vm6, %v3150_v61, 0.0 }
0x1234   :  { %v3152_v27 = vpop.eup %3151  ;;  %v1407_v52 = vrot.slane %v1406_v19, 4 }
0x1235   :  { %v1413_v21 = vsel %vm663_vm6, %v3152_v27, 0.0 }
0x1236   :  { %v1408_v57 = vadd.f32 %v1407_v52, %v1406_v19  ;;  %v1414_v29 = vrot.slane %v1413_v21, 4 }
0x1238   :  { %v1409_v43 = vrot.slane %v1408_v57, 2  ;;  %v1415_v44 = vadd.f32 %v1414_v29, %v1413_v21 }
0x123a   :  { %v1416_v45 = vrot.slane %v1415_v44, 2  ;;  %v1410_v10 = vadd.f32 %v1409_v43, %v1408_v57 }
0x123c   :  { %v1411_v1 = vrot.slane %v1410_v10, 1  ;;  %v1417_v54 = vadd.f32 %v1416_v45, %v1415_v44 }
0x123e   :  { %v1412_v12 = vadd.f32 %v1411_v1, %v1410_v10  ;;  %v1418_v9 = vrot.slane %v1417_v54, 1 }
0x1240   :  { %3153 = vrcp.f32 %v1412_v12  ;;  %v1419_v14 = vadd.f32 %v1418_v9, %v1417_v54 }
0x1242   :  { %3155 = vrcp.f32 %v1419_v14 }
0x124d   :  { %v3154_v15 = vpop.eup %3153 }
0x124e   :  { %v1422_v17 = vmul.f32 %v3154_v15, %v3150_v61 }
0x124f   :  { %v3156_v5 = vpop.eup %3155 }
0x1250   :  { %1426 = vperm.xlu0 %3057, %v1422_v17   ;;  %2795 = vst.msk [vmem:[%s4597_s18 + $0x20] sm:$0xff] %vm663_vm6, %v1422_v17  ;;  %v1423_v18 = vmul.f32 %v3156_v5, %v3152_v27 }
0x1252   :  { %1431 = vperm.xlu1 %3056, %v1423_v18   ;;  %2796 = vst.msk [vmem:[%s4597_s18 + $0x28] sm:$0xff] %vm663_vm6, %v1423_v18 }
0x1254   :  { %1456 = vrot.lane.b32.xlu0 %v1455_v22, %s3567_s4 }
0x12cb   :  { %v1427_v23 = vpop.permute.xlu0 %1426 }
0x12cc   :  { %v1434_v4 = vmul.f32 %v4113_v25, %v1427_v23 }
0x12cd   :  { %v1432_v32 = vpop.permute.xlu1 %1431 }
0x12ce   :  { %v1436_v8 = vsel %vm314_vm2, %v1434_v4, 0.0  ;;  %v1435_v51 = vmul.f32 %v4117_v48, %v1432_v32  ;;  %v1520_v4 = vrot.slane %v4045_v28, 6  ;;  %v4150_v28 = vld [vmem:[#allocation13 + $0x10] ss:$8 sps:$4 sm:$0xff]  }
0x12cf   :  { %v1437_v42 = vrot.slane %v1436_v8, 4  ;;  %v1457_v1 = vpop.permute.xlu0 %1456 }
0x12d0   :  { %v1443_v61 = vsel %vm314_vm2, %v1435_v51, 0.0 }
0x12d1   :  { %v1438_v19 = vadd.f32 %v1437_v42, %v1436_v8  ;;  %v1444_v27 = vrot.slane %v1443_v61, 4 }
0x12d3   :  { %v1439_v47 = vrot.slane %v1438_v19, 2  ;;  %v1445_v52 = vadd.f32 %v1444_v27, %v1443_v61 }
0x12d5   :  { %v1440_v21 = vadd.f32 %v1439_v47, %v1438_v19  ;;  %v1446_v57 = vrot.slane %v1445_v52, 2 }
0x12d7   :  { %v1441_v29 = vrot.slane %v1440_v21, 1  ;;  %v1447_v43 = vadd.f32 %v1446_v57, %v1445_v52  ;;  %v4157_v57 = vld [vmem:[#allocation13] ss:$8 sps:$4 sm:$0xff]  }
0x12d9   :  { %v1448_v44 = vrot.slane %v1447_v43, 1  ;;  %v1442_v45 = vadd.f32 %v1441_v29, %v1440_v21  ;;  %v4154_v21 = vld [vmem:[#allocation13 + $0x4] ss:$8 sps:$4 sm:$0xff]  }
0x12db   :  { %v1449_v10 = vadd.f32 %v1448_v44, %v1447_v43 }
0x12dd   :  { %v1452_v54 = vsel %vm730_vm7, %v1449_v10, %v1442_v45 }
0x12de   :  { %v1459_v12 = vsel %vm314_vm2, %v1452_v54, %v1457_v1 }
0x12df   :  { %v1460_v9 = vpack.c.bf16 %v1459_v12, %v1459_v12 }
0x12e1   :  { %2907 = vmatmul.mubr.msk.bf16.vlgmr.msra.gmra.mxu0 %vm779_vm8, %v1460_v9 }
0x12e2   :  { %1804 = vmatpush1.bf16.msra.mxu0 %v3863_v34  ;;  %1827 = vmatprep.mubr.bf16.mxu0 %v4603_v40 }
0x12e3   :  { %1805 = vmatprep.subr.bf16.mxu0 %v3874_v35  ;;  %v1509_v35 = vrot.slane %v3924_v24, 4 }
0x12e6   :  { %1806 = vmatpush1.bf16.msra.mxu0 %v3879_v36 }
0x12e7   :  { %1807 = vmatprep.subr.bf16.mxu0 %v3886_v37 }
0x12ea   :  { %1808 = vmatpush1.bf16.msra.mxu0 %v3891_v38 }
0x12eb   :  { %1809 = vmatprep.subr.bf16.mxu0 %v3898_v39 }
0x12ee   :  { %1810 = vmatpush1.bf16.msra.mxu0 %v3903_v41 }
0x12ef   :  { %2134 = vmatprep.subr.bf16.mxu0 %v3858_v31 }
0x13a1   :  { %v1498_v14 = vpop.f32.mrf.mxu0 }
0x13a2   :  { %v1506_v15 = vrot.slane %v1498_v14, 4 }
0x13a3   :  { %v4133_v17 = vpop.f32.mrf.mxu0 }
0x13a4   :  { %v1508_v34 = vadd.f32 %v1506_v15, %v3798_v59 }
0x13a5   :  { %v1502_v5 = vpop.f32.mrf.mxu0 }
0x13a6   :  { %v1511_v36 = vadd.f32 %v1509_v35, %v1508_v34 }
0x13a7   :  { %v1503_v18 = vpop.f32.mrf.mxu0 }
0x13a8   :  { %3157 = vtanh.f32 %v1511_v36  ;;  %v2908_v38 = vmul.f32 -1.442695, %v1511_v36 }
0x13aa   :  { %3159 = vpow2.f32 %v2908_v38 }
0x13b5   :  { %v3158_v37 = vpop.eup %3157 }
0x13b6   :  { %1524 = vrot.lane.b32.xlu1 %v3158_v37, %s3567_s4 }
0x13b7   :  { %v3160_v39 = vpop.eup %3159 }
0x13b8   :  { %v1515_v41 = vadd.f32 1.0, %v3160_v39 }
0x13ba   :  { %3161 = vrcp.f32 %v1515_v41 }
0x13c7   :  { %v3162_v31 = vpop.eup %3161 }
0x13c8   :  { %v1522_v32 = vmul.f32 %v3162_v31, %v1520_v4 }
0x1428   :  { %v1525_v22 = vpop.permute.xlu1 %1524 }
0x1429   :  { %v1527_v23 = vmul.f32 %v3162_v31, %v1525_v22 }
0x142b   :  { %1529 = vrot.lane.b32.xlu0 %v1527_v23, %s3569_s26 }
0x149d   :  { %v1530_v8 = vpop.permute.xlu0 %1529 }
0x149e   :  { %v4140_v51 = vadd.f32 %v1530_v8, %v1522_v32 }
0x14a0   :  { %3163 = vtanh.f32 %v4140_v51 }
0x14ad   :  { %v3164_v42 = vpop.eup %3163 }
0x14ae   :  { %1535 = vrot.lane.b32.xlu1 %v3164_v42, %s3567_s4 }
0x1520   :  { %v1536_v61 = vpop.permute.xlu1 %1535 }
0x1521   :  { %v4144_v19 = vmul.f32 %v3162_v31, %v1536_v61 }
0x1523   :  { %v1539_v27 = vpack.c.bf16 %v4144_v19, %v4144_v19 }
0x1525   :  { %v1541_v47 = vrot.slane %v1539_v27, 2 }
0x1527   :  { %1542 = vrot.lane.b32.xlu0 %v1541_v47, %s3569_s26 }
0x1599   :  { %v1543_v52 = vpop.permute.xlu0 %1542 }
0x159a   :  { %3005 = vmatmul.mubr.msk.bf16.vlgmr.msra.gmra.mxu1 %vm314_vm2, %v1543_v52  ;;  %v4196_v52 = vld [vmem:[#allocation11] ss:$0 sm:$0xff] }
0x159b   :  { %1632 = vmatpush1.bf16.msra.mxu1 %v4150_v28  ;;  %1651 = vmatprep.mubr.bf16.mxu1 %v4603_v40 }
0x159c   :  { %1633 = vmatprep.subr.bf16.mxu1 %v4154_v21 }
0x159f   :  { %1634 = vmatpush1.bf16.msra.mxu1 %v4157_v57 }
0x15a0   :  { %3008 = vmatprep.subr.bf16.mxu1 %v4601_v0 }
0x165a   :  { %v1581_v29 = vpop.f32.mrf.mxu1 }
0x165b   :  { %v1582_v43 = vadd.f32 %v1581_v29, %v4081_v46 }
0x165c   :  { %v3006_v44 = vpop.f32.mrf.mxu1 }
0x165d   :  { %v1587_v45 = vadd.f32 %v3966_v11, %v1582_v43 }
0x165e   :  { %v1584_v10 = vpop.f32.mrf.mxu1 }
0x165f   :  { %3165 = vtanh.f32 %v1587_v45  ;;  %v2910_v12 = vmul.f32 -1.442695, %v1587_v45 }
0x1660   :  { %v3007_v1 = vpop.f32.mrf.mxu1 }
0x1661   :  { %3167 = vpow2.f32 %v2910_v12 }
0x166c   :  { %v3166_v54 = vpop.eup %3165 }
0x166d   :  { %1597 = vrot.lane.b32.xlu1 %v3166_v54, %s3567_s4 }
0x166e   :  { %v3168_v9 = vpop.eup %3167 }
0x166f   :  { %v1591_v14 = vadd.f32 1.0, %v3168_v9 }
0x1671   :  { %3169 = vrcp.f32 %v1591_v14 }
0x167e   :  { %v3170_v15 = vpop.eup %3169 }
0x167f   :  { %v1595_v46 = vmul.f32 %v3170_v15, %v4065_v13  ;;  %v4181_v13 = vld [vmem:[#allocation13 + $0x14] ss:$8 sps:$4 sm:$0xff]  }
0x16df   :  { %v1598_v34 = vpop.permute.xlu1 %1597 }
0x16e0   :  { %v1600_v35 = vmul.f32 %v3170_v15, %v1598_v34 }
0x16e2   :  { %1602 = vrot.lane.b32.xlu0 %v1600_v35, %s3569_s26 }
0x1754   :  { %v1603_v5 = vpop.permute.xlu0 %1602 }
0x1755   :  { %v4166_v11 = vadd.f32 %v1603_v5, %v1595_v46 }
0x1757   :  { %3171 = vtanh.f32 %v4166_v11 }
0x1764   :  { %v3172_v36 = vpop.eup %3171 }
0x1765   :  { %1608 = vrot.lane.b32.xlu1 %v3172_v36, %s3567_s4 }
0x17d7   :  { %v1609_v18 = vpop.permute.xlu1 %1608 }
0x17d8   :  { %v4170_v37 = vmul.f32 %v3170_v15, %v1609_v18 }
0x17da   :  { %v1612_v38 = vpack.c.bf16 %v4170_v37, %v4170_v37 }
0x17dc   :  { %1614 = vrot.lane.b32.xlu0 %v1612_v38, %s3569_s26 }
0x184e   :  { %v1615_v39 = vpop.permute.xlu0 %1614 }
0x184f   :  { %2911 = vmatmul.mubr.msk.bf16.vlgmr.msra.gmra.mxu1 %vm314_vm2, %v1615_v39 }
0x1850   :  { %3009 = vmatpush3.bf16.msra.mxu1 %v3940_v56  ;;  %3012 = vmatprep.mubr.msk.bf16.mxu1 %vm3577_vm0, %v4601_v0 }
0x1851   :  { %3010 = vmatprep.subr.bf16.mxu1 %v4601_v0 }
0x1854   :  { %3011 = vmatpush3.bf16.msra.mxu1 %v3946_v62 }
0x1855   :  { %1962 = vmatprep.subr.bf16.mxu1 %v4181_v13 }
0x190f   :  { %v4184_v41 = vpop.f32.mrf.mxu1 }
0x1911   :  { %v4186_v31 = vpop.f32.mrf.mxu1 }
0x1912   :  { %v1677_v22 = vrot.slane %v4186_v31, %v3807_v3 }
0x1913   :  { %v1657_v23 = vpop.f32.mrf.mxu1 }
0x1914   :  { %v1678_v56 = vcombine.high %v1677_v22, %v1677_v22  ;;  %v1685_v4 = vrot.slane %v1677_v22, %v3807_v3 }
0x1915   :  { %v1658_v32 = vpop.f32.mrf.mxu1 }
0x1916   :  { %v1692_v8 = vrot.slane %v1678_v56, %v3807_v3  ;;  %v1696_v62 = vrot.slane %v1685_v4, %v3812_v7 }
0x1918   :  { %v1700_v42 = vrot.slane %v1692_v8, %v3812_v7  ;;  %v1703_v61 = vadd.f32 %v1696_v62, %v3787_v49 }
0x191a   :  { %v1704_v27 = vadd.f32 %v1700_v42, %v3789_v53  ;;  %3173 = vtanh.f32 %v1703_v61 }
0x191c   :  { %3175 = vtanh.f32 %v1704_v27 }
0x1927   :  { %v3174_v47 = vpop.eup %3173 }
0x1928   :  { %v1707_v29 = vmul.f32 %v4196_v52, %v3174_v47 }
0x1929   :  { %v3176_v43 = vpop.eup %3175 }
0x192a   :  { %v1709_v44 = vsel %vm314_vm2, %v1707_v29, 0.0  ;;  %v1708_v45 = vmul.f32 %v4196_v52, %v3176_v43 }
0x192b   :  { %1710 = vadd.xlane.f32.xlu1 %v1709_v44 }
0x192c   :  { %v1712_v10 = vsel %vm314_vm2, %v1708_v45, 0.0 }
0x192d   :  { %1713 = vadd.xlane.f32.xlu0 %v1712_v10 }
0x19b4   :  { %v1711_v1 = vpop.xlane.xlu1 %1710 }
0x19b5   :  { %v1715_v54 = vadd.f32 %v1711_v1, %v3838_v30 }
0x19b6   :  { %v1714_v12 = vpop.xlane.xlu0 %1713 }
0x19b7   :  { %v1717_v9 = vsel %vm663_vm6, %v1715_v54, -inf  ;;  %v1716_v14 = vadd.f32 %v1714_v12, %v3842_v33 }
0x19b8   :  { %v1718_v15 = vrot.slane %v1717_v9, 4 }
0x19b9   :  { %v1724_v34 = vsel %vm663_vm6, %v1716_v14, -inf }
0x19ba   :  { %v1719_v35 = vmax.f32 %v1717_v9, %v1718_v15  ;;  %v1725_v46 = vrot.slane %v1724_v34, 4 }
0x19bc   :  { %v1720_v5 = vrot.slane %v1719_v35, 2  ;;  %v1726_v36 = vmax.f32 %v1724_v34, %v1725_v46 }
0x19be   :  { %v1721_v18 = vmax.f32 %v1719_v35, %v1720_v5  ;;  %v1727_v38 = vrot.slane %v1726_v36, 2 }
0x19c0   :  { %v1722_v39 = vrot.slane %v1721_v18, 1  ;;  %v1728_v22 = vmax.f32 %v1726_v36, %v1727_v38  ;;  %v1786_v38 = vrot.slane %v4144_v19, 4 }
0x19c2   :  { %v1723_v23 = vmax.f32 %v1721_v18, %v1722_v39  ;;  %v1729_v56 = vrot.slane %v1728_v22, 1 }
0x19c4   :  { %v1731_v4 = vsub.f32 %v1715_v54, %v1723_v23  ;;  %v1730_v32 = vmax.f32 %v1728_v22, %v1729_v56 }
0x19c6   :  { %v1733_v8 = vmul.f32 1.442695, %v1731_v4  ;;  %v1732_v62 = vsub.f32 %v1716_v14, %v1730_v32 }
0x19c8   :  { %3177 = vpow2.f32 %v1733_v8  ;;  %v1735_v42 = vmul.f32 1.442695, %v1732_v62 }
0x19ca   :  { %3179 = vpow2.f32 %v1735_v42 }
0x19d5   :  { %v3178_v61 = vpop.eup %3177 }
0x19d6   :  { %v1737_v27 = vsel %vm663_vm6, %v3178_v61, 0.0 }
0x19d7   :  { %v3180_v47 = vpop.eup %3179  ;;  %v1738_v29 = vrot.slane %v1737_v27, 4 }
0x19d8   :  { %v1744_v43 = vsel %vm663_vm6, %v3180_v47, 0.0 }
0x19d9   :  { %v1739_v44 = vadd.f32 %v1738_v29, %v1737_v27  ;;  %v1745_v45 = vrot.slane %v1744_v43, 4 }
0x19db   :  { %v1740_v10 = vrot.slane %v1739_v44, 2  ;;  %v1746_v1 = vadd.f32 %v1745_v45, %v1744_v43 }
0x19dd   :  { %v1747_v12 = vrot.slane %v1746_v1, 2  ;;  %v1741_v9 = vadd.f32 %v1740_v10, %v1739_v44 }
0x19df   :  { %v1742_v54 = vrot.slane %v1741_v9, 1  ;;  %v1748_v15 = vadd.f32 %v1747_v12, %v1746_v1 }
0x19e1   :  { %v1743_v34 = vadd.f32 %v1742_v54, %v1741_v9  ;;  %v1749_v14 = vrot.slane %v1748_v15, 1 }
0x19e3   :  { %3181 = vrcp.f32 %v1743_v34  ;;  %v1750_v35 = vadd.f32 %v1749_v14, %v1748_v15  ;;  %v4228_v15 = vld [vmem:[%s4589_s10 + $0x30] ss:$8 sps:$4 sm:$0xff]   ;;  %v4235_v34 = vld [vmem:[%s4589_s10 + $0x24] ss:$8 sps:$4 sm:$0xff]   ;;  %v4241_v14 = vld [vmem:[%s4589_s10 + $0x20] ss:$8 sps:$4 sm:$0xff]  }
0x19e5   :  { %3183 = vrcp.f32 %v1750_v35  ;;  %v4247_v35 = vld [vmem:[%s4589_s10 + $0x14] ss:$8 sps:$4 sm:$0xff]  }
0x19f0   :  { %v3182_v46 = vpop.eup %3181 }
0x19f1   :  { %v1753_v5 = vmul.f32 %v3182_v46, %v3178_v61  ;;  %v4253_v46 = vld [vmem:[%s4589_s10 + $0x10] ss:$8 sps:$4 sm:$0xff]  }
0x19f2   :  { %v3184_v36 = vpop.eup %3183 }
0x19f3   :  { %2797 = vst.msk [vmem:[%s4597_s18 + $0x30] sm:$0xff] %vm663_vm6, %v1753_v5  ;;  %1757 = vperm.xlu0 %3057, %v1753_v5   ;;  %v1754_v18 = vmul.f32 %v3184_v36, %v3180_v47  ;;  %v4259_v5 = vld [vmem:[%s4589_s10 + $0x4] ss:$8 sps:$4 sm:$0xff]   ;;  %v4265_v36 = vld [vmem:[%s4589_s10] ss:$8 sps:$4 sm:$0xff]  }
0x19f5   :  { %1762 = vperm.xlu1 %3056, %v1754_v18   ;;  %2798 = vst.msk [vmem:[%s4597_s18 + $0x38] sm:$0xff] %vm663_vm6, %v1754_v18  ;;  %v3295_v18 = vld [vmem:[%s4589_s10 + $0x34] ss:$8 sps:$4 sm:$0xff]  }
0x19f9   :  { %1787 = vrot.lane.b32.xlu1 %v1786_v38, %s3567_s4 }
0x1a6e   :  { %v1758_v39 = vpop.permute.xlu0 %1757 }
0x1a6f   :  { %v1765_v22 = vmul.f32 %v4113_v25, %v1758_v39 }
0x1a70   :  { %v1763_v23 = vpop.permute.xlu1 %1762 }
0x1a71   :  { %v1767_v56 = vsel %vm314_vm2, %v1765_v22, 0.0  ;;  %v1766_v4 = vmul.f32 %v4117_v48, %v1763_v23 }
0x1a72   :  { %v1768_v32 = vrot.slane %v1767_v56, 4 }
0x1a73   :  { %v1774_v8 = vsel %vm314_vm2, %v1766_v4, 0.0 }
0x1a74   :  { %v1769_v62 = vadd.f32 %v1768_v32, %v1767_v56  ;;  %v1775_v42 = vrot.slane %v1774_v8, 4  ;;  %v1788_v1 = vpop.permute.xlu1 %1787  ;;  %v1840_v56 = vrot.slane %v3924_v24, 2 }
0x1a76   :  { %v1770_v61 = vrot.slane %v1769_v62, 2  ;;  %v1776_v27 = vadd.f32 %v1775_v42, %v1774_v8 }
0x1a78   :  { %v1771_v47 = vadd.f32 %v1770_v61, %v1769_v62  ;;  %v1777_v29 = vrot.slane %v1776_v27, 2 }
0x1a7a   :  { %v1772_v19 = vrot.slane %v1771_v47, 1  ;;  %v1778_v43 = vadd.f32 %v1777_v29, %v1776_v27 }
0x1a7c   :  { %v1779_v44 = vrot.slane %v1778_v43, 1  ;;  %v1773_v45 = vadd.f32 %v1772_v19, %v1771_v47 }
0x1a7e   :  { %v1780_v10 = vadd.f32 %v1779_v44, %v1778_v43 }
0x1a80   :  { %v1783_v12 = vsel %vm730_vm7, %v1780_v10, %v1773_v45 }
0x1a81   :  { %v1790_v9 = vsel %vm314_vm2, %v1783_v12, %v1788_v1 }
0x1a82   :  { %v1791_v54 = vpack.c.bf16 %v1790_v9, %v1790_v9 }
0x1a84   :  { %2912 = vmatmul.mubr.msk.bf16.vlgmr.msra.gmra.mxu0 %vm779_vm8, %v1791_v54 }
0x1a85   :  { %2135 = vmatpush1.bf16.msra.mxu0 %v4228_v15  ;;  %2158 = vmatprep.mubr.bf16.mxu0 %v4603_v40 }
0x1a86   :  { %2136 = vmatprep.subr.bf16.mxu0 %v4235_v34 }
0x1a89   :  { %2137 = vmatpush1.bf16.msra.mxu0 %v4241_v14 }
0x1a8a   :  { %2138 = vmatprep.subr.bf16.mxu0 %v4247_v35 }
0x1a8d   :  { %2139 = vmatpush1.bf16.msra.mxu0 %v4253_v46 }
0x1a8e   :  { %2140 = vmatprep.subr.bf16.mxu0 %v4259_v5 }
0x1a91   :  { %2141 = vmatpush1.bf16.msra.mxu0 %v4265_v36 }
0x1a92   :  { %2454 = vmatprep.subr.bf16.mxu0 %v3295_v18 }
0x1b44   :  { %v1829_v38 = vpop.f32.mrf.mxu0 }
0x1b45   :  { %v1837_v39 = vrot.slane %v1829_v38, 2 }
0x1b46   :  { %v4271_v22 = vpop.f32.mrf.mxu0 }
0x1b47   :  { %v1839_v23 = vadd.f32 %v1837_v39, %v3798_v59  ;;  %v1851_v59 = vrot.slane %v4140_v51, 6 }
0x1b48   :  { %v1833_v4 = vpop.f32.mrf.mxu0 }
0x1b49   :  { %v1842_v32 = vadd.f32 %v1840_v56, %v1839_v23  ;;  %v4297_v23 = vld [vmem:[%s4593_s14] ss:$0 sm:$0xff] }
0x1b4a   :  { %v1834_v8 = vpop.f32.mrf.mxu0 }
0x1b4b   :  { %3185 = vtanh.f32 %v1842_v32  ;;  %v2913_v42 = vmul.f32 -1.442695, %v1842_v32 }
0x1b4d   :  { %3187 = vpow2.f32 %v2913_v42 }
0x1b58   :  { %v3186_v62 = vpop.eup %3185 }
0x1b59   :  { %1855 = vrot.lane.b32.xlu0 %v3186_v62, %s3567_s4 }
0x1b5a   :  { %v3188_v61 = vpop.eup %3187 }
0x1b5b   :  { %v1846_v27 = vadd.f32 1.0, %v3188_v61 }
0x1b5d   :  { %3189 = vrcp.f32 %v1846_v27 }
0x1b6a   :  { %v3190_v47 = vpop.eup %3189 }
0x1b6b   :  { %v1853_v43 = vmul.f32 %v3190_v47, %v1851_v59 }
0x1bcb   :  { %v1856_v29 = vpop.permute.xlu0 %1855 }
0x1bcc   :  { %v1858_v19 = vmul.f32 %v3190_v47, %v1856_v29 }
0x1bce   :  { %1860 = vrot.lane.b32.xlu1 %v1858_v19, %s3569_s26 }
0x1c40   :  { %v1861_v44 = vpop.permute.xlu1 %1860 }
0x1c41   :  { %v4278_v45 = vadd.f32 %v1861_v44, %v1853_v43 }
0x1c43   :  { %3191 = vtanh.f32 %v4278_v45 }
0x1c50   :  { %v3192_v10 = vpop.eup %3191 }
0x1c51   :  { %1866 = vrot.lane.b32.xlu0 %v3192_v10, %s3567_s4 }
0x1cc3   :  { %v1867_v1 = vpop.permute.xlu0 %1866 }
0x1cc4   :  { %v4282_v12 = vmul.f32 %v3190_v47, %v1867_v1 }
0x1cc6   :  { %v1870_v9 = vpack.c.bf16 %v4282_v12, %v4282_v12 }
0x1cc8   :  { %v1872_v54 = vrot.slane %v1870_v9, 3 }
0x1cca   :  { %1873 = vrot.lane.b32.xlu1 %v1872_v54, %s3569_s26  ;;  %v4325_v54 = vld [vmem:[%s4592_s13] sm:$0xff]  }
0x1d3c   :  { %v1874_v18 = vpop.permute.xlu1 %1873 }
0x1d3d   :  { %3013 = vmatmul.mubr.msk.bf16.vlgmr.msra.gmra.mxu1 %vm314_vm2, %v1874_v18 }
0x1d3e   :  { %1963 = vmatpush1.bf16.msra.mxu1 %v4150_v28  ;;  %1982 = vmatprep.mubr.bf16.mxu1 %v4603_v40 }
0x1d3f   :  { %1964 = vmatprep.subr.bf16.mxu1 %v4154_v21 }
0x1d42   :  { %1965 = vmatpush1.bf16.msra.mxu1 %v4157_v57 }
0x1d43   :  { %3016 = vmatprep.subr.bf16.mxu1 %v4601_v0 }
0x1dfd   :  { %v1912_v51 = vpop.f32.mrf.mxu1 }
0x1dfe   :  { %v1913_v38 = vadd.f32 %v1912_v51, %v4184_v41 }
0x1dff   :  { %v3014_v39 = vpop.f32.mrf.mxu1 }
0x1e00   :  { %v1918_v56 = vadd.f32 %v4297_v23, %v1913_v38 }
0x1e01   :  { %v1915_v4 = vpop.f32.mrf.mxu1 }
0x1e02   :  { %3193 = vtanh.f32 %v1918_v56  ;;  %v2915_v62 = vmul.f32 -1.442695, %v1918_v56 }
0x1e03   :  { %v3015_v32 = vpop.f32.mrf.mxu1 }
0x1e04   :  { %3195 = vpow2.f32 %v2915_v62 }
0x1e0f   :  { %v3194_v8 = vpop.eup %3193 }
0x1e10   :  { %1928 = vrot.lane.b32.xlu0 %v3194_v8, %s3567_s4 }
0x1e11   :  { %v3196_v42 = vpop.eup %3195 }
0x1e12   :  { %v1922_v61 = vadd.f32 1.0, %v3196_v42 }
0x1e14   :  { %3197 = vrcp.f32 %v1922_v61 }
0x1e21   :  { %v3198_v41 = vpop.eup %3197 }
0x1e22   :  { %v1926_v29 = vmul.f32 %v3198_v41, %v4166_v11  ;;  %v4316_v11 = vld [vmem:[%s4592_s13 + $0x8] sm:$0xff]  }
0x1e82   :  { %v1929_v27 = vpop.permute.xlu0 %1928 }
0x1e83   :  { %v1931_v47 = vmul.f32 %v3198_v41, %v1929_v27 }
0x1e85   :  { %1933 = vrot.lane.b32.xlu1 %v1931_v47, %s3569_s26 }
0x1ef7   :  { %v1934_v19 = vpop.permute.xlu1 %1933 }
0x1ef8   :  { %v4303_v59 = vadd.f32 %v1934_v19, %v1926_v29 }
0x1efa   :  { %3199 = vtanh.f32 %v4303_v59 }
0x1f07   :  { %v3200_v43 = vpop.eup %3199 }
0x1f08   :  { %1939 = vrot.lane.b32.xlu0 %v3200_v43, %s3567_s4 }
0x1f7a   :  { %v1940_v44 = vpop.permute.xlu0 %1939 }
0x1f7b   :  { %v4307_v10 = vmul.f32 %v3198_v41, %v1940_v44 }
0x1f7d   :  { %v1943_v1 = vpack.c.bf16 %v4307_v10, %v4307_v10 }
0x1f7f   :  { %1945 = vrot.lane.b32.xlu1 %v1943_v1, %s3569_s26 }
0x1ff1   :  { %v1946_v9 = vpop.permute.xlu1 %1945 }
0x1ff2   :  { %2916 = vmatmul.mubr.msk.bf16.vlgmr.msra.gmra.mxu1 %vm314_vm2, %v1946_v9 }
0x1ff3   :  { %3017 = vmatpush3.bf16.msra.mxu1 %v4316_v11  ;;  %3020 = vmatprep.mubr.msk.bf16.mxu1 %vm3577_vm0, %v4601_v0 }
0x1ff4   :  { %3018 = vmatprep.subr.bf16.mxu1 %v4601_v0 }
0x1ff7   :  { %3019 = vmatpush3.bf16.msra.mxu1 %v4325_v54 }
0x1ff8   :  { %2287 = vmatprep.subr.bf16.mxu1 %v4181_v13 }
0x20b2   :  { %v4329_v18 = vpop.f32.mrf.mxu1 }
0x20b4   :  { %v4331_v51 = vpop.f32.mrf.mxu1 }
0x20b5   :  { %v2008_v38 = vrot.slane %v4331_v51, %v3807_v3 }
0x20b6   :  { %v1988_v39 = vpop.f32.mrf.mxu1 }
0x20b7   :  { %v2009_v56 = vcombine.high %v2008_v38, %v2008_v38  ;;  %v2016_v4 = vrot.slane %v2008_v38, %v3807_v3 }
0x20b8   :  { %v1989_v32 = vpop.f32.mrf.mxu1 }
0x20b9   :  { %v2023_v8 = vrot.slane %v2009_v56, %v3807_v3  ;;  %v2027_v62 = vrot.slane %v2016_v4, %v3812_v7 }
0x20bb   :  { %v2031_v42 = vrot.slane %v2023_v8, %v3812_v7  ;;  %v2034_v61 = vadd.f32 %v2027_v62, %v3787_v49 }
0x20bd   :  { %v2035_v41 = vadd.f32 %v2031_v42, %v3789_v53  ;;  %3201 = vtanh.f32 %v2034_v61 }
0x20bf   :  { %3203 = vtanh.f32 %v2035_v41 }
0x20ca   :  { %v3202_v27 = vpop.eup %3201 }
0x20cb   :  { %v2038_v47 = vmul.f32 %v4196_v52, %v3202_v27 }
0x20cc   :  { %v3204_v29 = vpop.eup %3203 }
0x20cd   :  { %v2040_v19 = vsel %vm314_vm2, %v2038_v47, 0.0  ;;  %v2039_v43 = vmul.f32 %v4196_v52, %v3204_v29 }
0x20ce   :  { %2041 = vadd.xlane.f32.xlu0 %v2040_v19 }
0x20cf   :  { %v2043_v44 = vsel %vm314_vm2, %v2039_v43, 0.0 }
0x20d0   :  { %2044 = vadd.xlane.f32.xlu1 %v2043_v44 }
0x2157   :  { %v2042_v1 = vpop.xlane.xlu0 %2041 }
0x2158   :  { %v2046_v9 = vadd.f32 %v2042_v1, %v3838_v30 }
0x2159   :  { %v2045_v38 = vpop.xlane.xlu1 %2044 }
0x215a   :  { %v2048_v39 = vsel %vm663_vm6, %v2046_v9, -inf  ;;  %v2047_v56 = vadd.f32 %v2045_v38, %v3842_v33 }
0x215b   :  { %v2049_v4 = vrot.slane %v2048_v39, 4 }
0x215c   :  { %v2055_v32 = vsel %vm663_vm6, %v2047_v56, -inf }
0x215d   :  { %v2050_v8 = vmax.f32 %v2048_v39, %v2049_v4  ;;  %v2056_v62 = vrot.slane %v2055_v32, 4 }
0x215f   :  { %v2051_v42 = vrot.slane %v2050_v8, 2  ;;  %v2057_v61 = vmax.f32 %v2055_v32, %v2056_v62 }
0x2161   :  { %v2052_v41 = vmax.f32 %v2050_v8, %v2051_v42  ;;  %v2058_v27 = vrot.slane %v2057_v61, 2 }
0x2163   :  { %v2053_v47 = vrot.slane %v2052_v41, 1  ;;  %v2059_v29 = vmax.f32 %v2057_v61, %v2058_v27 }
0x2165   :  { %v2054_v19 = vmax.f32 %v2052_v41, %v2053_v47  ;;  %v2060_v43 = vrot.slane %v2059_v29, 1 }
0x2167   :  { %v2062_v44 = vsub.f32 %v2046_v9, %v2054_v19  ;;  %v2061_v1 = vmax.f32 %v2059_v29, %v2060_v43  ;;  %v2117_v43 = vrot.slane %v4282_v12, 6 }
0x2169   :  { %v2064_v6 = vmul.f32 1.442695, %v2062_v44  ;;  %v2063_v0 = vsub.f32 %v2047_v56, %v2061_v1 }
0x216b   :  { %3205 = vpow2.f32 %v2064_v6  ;;  %v2066_v40 = vmul.f32 1.442695, %v2063_v0 }
0x216d   :  { %3207 = vpow2.f32 %v2066_v40 }
0x2178   :  { %v3206_v38 = vpop.eup %3205 }
0x2179   :  { %v2068_v2 = vsel %vm663_vm6, %v3206_v38, 0.0 }
0x217a   :  { %v3208_v39 = vpop.eup %3207  ;;  %v2069_v4 = vrot.slane %v2068_v2, 4 }
0x217b   :  { %v2075_v32 = vsel %vm663_vm6, %v3208_v39, 0.0 }
0x217c   :  { %v2070_v8 = vadd.f32 %v2069_v4, %v2068_v2  ;;  %v2076_v62 = vrot.slane %v2075_v32, 4 }
0x217e   :  { %v2071_v42 = vrot.slane %v2070_v8, 2  ;;  %v2077_v61 = vadd.f32 %v2076_v62, %v2075_v32 }
0x2180   :  { %v2078_v41 = vrot.slane %v2077_v61, 2  ;;  %v2072_v27 = vadd.f32 %v2071_v42, %v2070_v8 }
0x2182   :  { %v2073_v9 = vrot.slane %v2072_v27, 1  ;;  %v2079_v47 = vadd.f32 %v2078_v41, %v2077_v61 }
0x2184   :  { %v2074_v29 = vadd.f32 %v2073_v9, %v2072_v27  ;;  %v2080_v56 = vrot.slane %v2079_v47, 1 }
0x2186   :  { %3209 = vrcp.f32 %v2074_v29  ;;  %v2081_v0 = vadd.f32 %v2080_v56, %v2079_v47 }
0x2188   :  { %3211 = vrcp.f32 %v2081_v0 }
0x2193   :  { %v3210_v40 = vpop.eup %3209 }
0x2194   :  { %v2084_v6 = vmul.f32 %v3210_v40, %v3206_v38 }
0x2195   :  { %v3212_v19 = vpop.eup %3211 }
0x2196   :  { %2088 = vperm.xlu0 %3057, %v2084_v6   ;;  %2799 = vst.msk [vmem:[%s4597_s18 + $0x40] sm:$0xff] %vm663_vm6, %v2084_v6  ;;  %v2085_v2 = vmul.f32 %v3212_v19, %v3208_v39  ;;  %v4615_v19 = vmov 0  }
0x2198   :  { %2093 = vperm.xlu1 %3056, %v2085_v2   ;;  %2800 = vst.msk [vmem:[%s4597_s18 + $0x48] sm:$0xff] %vm663_vm6, %v2085_v2 }
0x219a   :  { %2118 = vrot.lane.b32.xlu0 %v2117_v43, %s3567_s4 }
0x2211   :  { %v2089_v44 = vpop.permute.xlu0 %2088 }
0x2212   :  { %v2096_v1 = vmul.f32 %v4113_v25, %v2089_v44 }
0x2213   :  { %v2094_v38 = vpop.permute.xlu1 %2093 }
0x2214   :  { %v2098_v4 = vsel %vm314_vm2, %v2096_v1, 0.0  ;;  %v2097_v32 = vmul.f32 %v4117_v48, %v2094_v38 }
0x2215   :  { %v2099_v8 = vrot.slane %v2098_v4, 4  ;;  %v2119_v25 = vpop.permute.xlu0 %2118 }
0x2216   :  { %v2105_v39 = vsel %vm314_vm2, %v2097_v32, 0.0  ;;  %v2177_v32 = vrot.slane %v4278_v45, 6  ;;  %v4616_v45 = vmov 0.0  }
0x2217   :  { %v2100_v62 = vadd.f32 %v2099_v8, %v2098_v4  ;;  %v2106_v42 = vrot.slane %v2105_v39, 4 }
0x2219   :  { %v2101_v61 = vrot.slane %v2100_v62, 2  ;;  %v2107_v41 = vadd.f32 %v2106_v42, %v2105_v39 }
0x221b   :  { %v2102_v27 = vadd.f32 %v2101_v61, %v2100_v62  ;;  %v2108_v9 = vrot.slane %v2107_v41, 2 }
0x221d   :  { %v2103_v12 = vrot.slane %v2102_v27, 1  ;;  %v2109_v47 = vadd.f32 %v2108_v9, %v2107_v41 }
0x221f   :  { %v2110_v29 = vrot.slane %v2109_v47, 1  ;;  %v2104_v56 = vadd.f32 %v2103_v12, %v2102_v27 }
0x2221   :  { %v2111_v0 = vadd.f32 %v2110_v29, %v2109_v47 }
0x2223   :  { %v2114_v40 = vsel %vm730_vm7, %v2111_v0, %v2104_v56 }
0x2224   :  { %v2121_v6 = vsel %vm314_vm2, %v2114_v40, %v2119_v25 }
0x2225   :  { %v2122_v48 = vpack.c.bf16 %v2121_v6, %v2121_v6 }
0x2227   :  { %2917 = vmatmul.mubr.msk.bf16.vlgmr.msra.gmra.mxu0 %vm779_vm8, %v2122_v48 }
0x2228   :  { %2455 = vmatpush1.bf16.msra.mxu0 %v4228_v15  ;;  %2478 = vmatprep.mubr.bf16.mxu0 %v4615_v19 }
0x2229   :  { %2456 = vmatprep.subr.bf16.mxu0 %v4235_v34 }
0x222c   :  { %2457 = vmatpush1.bf16.msra.mxu0 %v4241_v14 }
0x222d   :  { %2458 = vmatprep.subr.bf16.mxu0 %v4247_v35 }
0x2230   :  { %2459 = vmatpush1.bf16.msra.mxu0 %v4253_v46 }
0x2231   :  { %2460 = vmatprep.subr.bf16.mxu0 %v4259_v5 }
0x2234   :  { %2461 = vmatpush1.bf16.msra.mxu0 %v4265_v36 }
0x22e7   :  { %v2160_v2 = vpop.f32.mrf.mxu0 }
0x22e8   :  { %v2167_v43 = vadd.f32 %v2160_v2, %v3802_v63 }
0x22e9   :  { %v4377_v44 = vpop.f32.mrf.mxu0 }
0x22ea   :  { %v2168_v15 = vadd.f32 %v2167_v43, %v3924_v24 }
0x22eb   :  { %v2164_v1 = vpop.f32.mrf.mxu0 }
0x22ec   :  { %3213 = vtanh.f32 %v2168_v15  ;;  %v2918_v14 = vmul.f32 -1.442695, %v2168_v15 }
0x22ed   :  { %v2165_v34 = vpop.f32.mrf.mxu0 }
0x22ee   :  { %3215 = vpow2.f32 %v2918_v14 }
0x22f9   :  { %v3214_v38 = vpop.eup %3213 }
0x22fa   :  { %2181 = vrot.lane.b32.xlu1 %v3214_v38, %s3567_s4 }
0x22fb   :  { %v3216_v35 = vpop.eup %3215 }
0x22fc   :  { %v2172_v46 = vadd.f32 1.0, %v3216_v35 }
0x22fe   :  { %3217 = vrcp.f32 %v2172_v46 }
0x230b   :  { %v3218_v5 = vpop.eup %3217 }
0x230c   :  { %v2179_v8 = vmul.f32 %v3218_v5, %v2177_v32 }
0x236c   :  { %v2182_v36 = vpop.permute.xlu1 %2181 }
0x236d   :  { %v2184_v4 = vmul.f32 %v3218_v5, %v2182_v36 }
0x236f   :  { %2186 = vrot.lane.b32.xlu0 %v2184_v4, %s3569_s26 }
0x23e1   :  { %v2187_v39 = vpop.permute.xlu0 %2186 }
0x23e2   :  { %v4383_v62 = vadd.f32 %v2187_v39, %v2179_v8 }
0x23e4   :  { %3219 = vtanh.f32 %v4383_v62 }
0x23f1   :  { %v3220_v42 = vpop.eup %3219 }
0x23f2   :  { %2192 = vrot.lane.b32.xlu1 %v3220_v42, %s3567_s4 }
0x2464   :  { %v2193_v61 = vpop.permute.xlu1 %2192 }
0x2465   :  { %v4387_v41 = vmul.f32 %v3218_v5, %v2193_v61 }
0x2467   :  { %v2196_v27 = vpack.c.bf16 %v4387_v41, %v4387_v41 }
0x2469   :  { %2198 = vrot.lane.b32.xlu0 %v2196_v27, %s3569_s26 }
0x24db   :  { %v2199_v9 = vpop.permute.xlu0 %2198 }
0x24dc   :  { %3021 = vmatmul.mubr.msk.bf16.vlgmr.msra.gmra.mxu1 %vm314_vm2, %v2199_v9 }
0x24dd   :  { %2288 = vmatpush1.bf16.msra.mxu1 %v4150_v28  ;;  %2307 = vmatprep.mubr.bf16.mxu1 %v4615_v19 }
0x24de   :  { %2289 = vmatprep.subr.bf16.mxu1 %v4154_v21 }
0x24e1   :  { %2290 = vmatpush1.bf16.msra.mxu1 %v4157_v57 }
0x24e2   :  { %3024 = vmatprep.subr.bf16.mxu1 %v4616_v45 }
0x259c   :  { %v2237_v12 = vpop.f32.mrf.mxu1 }
0x259d   :  { %v2238_v47 = vadd.f32 %v2237_v12, %v4329_v18 }
0x259e   :  { %v3022_v29 = vpop.f32.mrf.mxu1 }
0x259f   :  { %v2243_v56 = vadd.f32 %v4297_v23, %v2238_v47 }
0x25a0   :  { %v2240_v0 = vpop.f32.mrf.mxu1 }
0x25a1   :  { %3221 = vtanh.f32 %v2243_v56  ;;  %v2920_v28 = vmul.f32 -1.442695, %v2243_v56 }
0x25a2   :  { %v3023_v25 = vpop.f32.mrf.mxu1 }
0x25a3   :  { %3223 = vpow2.f32 %v2920_v28 }
0x25ae   :  { %v3222_v40 = vpop.eup %3221 }
0x25af   :  { %2253 = vrot.lane.b32.xlu1 %v3222_v40, %s3567_s4 }
0x25b0   :  { %v3224_v6 = vpop.eup %3223 }
0x25b1   :  { %v2247_v21 = vadd.f32 1.0, %v3224_v6 }
0x25b3   :  { %3225 = vrcp.f32 %v2247_v21 }
0x25c0   :  { %v3226_v57 = vpop.eup %3225 }
0x25c1   :  { %v2251_v18 = vmul.f32 %v3226_v57, %v4303_v59 }
0x2621   :  { %v2254_v48 = vpop.permute.xlu1 %2253 }
0x2622   :  { %v2256_v2 = vmul.f32 %v3226_v57, %v2254_v48 }
0x2624   :  { %2258 = vrot.lane.b32.xlu0 %v2256_v2, %s3569_s26 }
0x2696   :  { %v2259_v43 = vpop.permute.xlu0 %2258 }
0x2697   :  { %v4403_v15 = vadd.f32 %v2259_v43, %v2251_v18 }
0x2699   :  { %3227 = vtanh.f32 %v4403_v15 }
0x26a6   :  { %v3228_v1 = vpop.eup %3227 }
0x26a7   :  { %2264 = vrot.lane.b32.xlu1 %v3228_v1, %s3567_s4 }
0x2719   :  { %v2265_v34 = vpop.permute.xlu1 %2264 }
0x271a   :  { %v4407_v38 = vmul.f32 %v3226_v57, %v2265_v34 }
0x271c   :  { %v2268_v14 = vpack.c.bf16 %v4407_v38, %v4407_v38 }
0x271e   :  { %2270 = vrot.lane.b32.xlu0 %v2268_v14, %s3569_s26 }
0x2790   :  { %v2271_v35 = vpop.permute.xlu0 %2270 }
0x2791   :  { %2921 = vmatmul.mubr.msk.bf16.vlgmr.msra.gmra.mxu1 %vm314_vm2, %v2271_v35 }
0x2792   :  { %3025 = vmatpush3.bf16.msra.mxu1 %v4316_v11  ;;  %3028 = vmatprep.mubr.msk.bf16.mxu1 %vm3577_vm0, %v4616_v45 }
0x2793   :  { %3026 = vmatprep.subr.bf16.mxu1 %v4616_v45 }
0x2796   :  { %3027 = vmatpush3.bf16.msra.mxu1 %v4325_v54 }
0x2797   :  { %2611 = vmatprep.subr.bf16.mxu1 %v4181_v13 }
0x2851   :  { %v4419_v59 = vpop.f32.mrf.mxu1 }
0x2853   :  { %v4421_v46 = vpop.f32.mrf.mxu1 }
0x2854   :  { %v2329_v5 = vrot.slane %v4421_v46, %v3807_v3 }
0x2855   :  { %v2313_v36 = vpop.f32.mrf.mxu1 }
0x2856   :  { %v2330_v4 = vcombine.high %v2329_v5, %v2329_v5  ;;  %v2337_v11 = vrot.slane %v2329_v5, %v3807_v3 }
0x2857   :  { %v2314_v32 = vpop.f32.mrf.mxu1 }
0x2858   :  { %v2344_v8 = vrot.slane %v2330_v4, %v3807_v3  ;;  %v2348_v39 = vrot.slane %v2337_v11, %v3812_v7 }
0x285a   :  { %v2352_v54 = vrot.slane %v2344_v8, %v3812_v7  ;;  %v2355_v13 = vadd.f32 %v2348_v39, %v3787_v49 }
0x285c   :  { %v2356_v42 = vadd.f32 %v2352_v54, %v3789_v53  ;;  %3229 = vtanh.f32 %v2355_v13 }
0x285e   :  { %3231 = vtanh.f32 %v2356_v42 }
0x2869   :  { %v3230_v61 = vpop.eup %3229 }
0x286a   :  { %v2359_v27 = vmul.f32 %v4196_v52, %v3230_v61 }
0x286b   :  { %v3232_v9 = vpop.eup %3231 }
0x286c   :  { %v2361_v45 = vsel %vm314_vm2, %v2359_v27, 0.0  ;;  %v2360_v12 = vmul.f32 %v4196_v52, %v3232_v9 }
0x286d   :  { %2362 = vadd.xlane.f32.xlu1 %v2361_v45 }
0x286e   :  { %v2364_v3 = vsel %vm314_vm2, %v2360_v12, 0.0 }
0x286f   :  { %2365 = vadd.xlane.f32.xlu0 %v2364_v3 }
0x28f6   :  { %v2363_v47 = vpop.xlane.xlu1 %2362 }
0x28f7   :  { %v2367_v7 = vadd.f32 %v2363_v47, %v3838_v30 }
0x28f8   :  { %v2366_v49 = vpop.xlane.xlu0 %2365 }
0x28f9   :  { %v2369_v53 = vsel %vm663_vm6, %v2367_v7, -inf  ;;  %v2368_v29 = vadd.f32 %v2366_v49, %v3842_v33 }
0x28fa   :  { %v2370_v56 = vrot.slane %v2369_v53, 4 }
0x28fb   :  { %v2376_v0 = vsel %vm663_vm6, %v2368_v29, -inf }
0x28fc   :  { %v2371_v25 = vmax.f32 %v2369_v53, %v2370_v56  ;;  %v2377_v40 = vrot.slane %v2376_v0, 4  ;;  %v3299_v53 = vld [vmem:[#allocation5] sm:$0xff] }
0x28fe   :  { %v2372_v28 = vrot.slane %v2371_v25, 2  ;;  %v2378_v6 = vmax.f32 %v2376_v0, %v2377_v40 }
0x2900   :  { %v2373_v52 = vmax.f32 %v2371_v25, %v2372_v28  ;;  %v2379_v21 = vrot.slane %v2378_v6, 2  ;;  %v3300_v25 = vld [vmem:[#allocation5 + $0x8] sm:$0xff] }
0x2902   :  { %v2374_v57 = vrot.slane %v2373_v52, 1  ;;  %v2380_v48 = vmax.f32 %v2378_v6, %v2379_v21 }
0x2904   :  { %v2375_v2 = vmax.f32 %v2373_v52, %v2374_v57  ;;  %v2381_v18 = vrot.slane %v2380_v48, 1 }
0x2906   :  { %v2383_v43 = vsub.f32 %v2367_v7, %v2375_v2  ;;  %v2382_v30 = vmax.f32 %v2380_v48, %v2381_v18 }
0x2908   :  { %v2385_v1 = vmul.f32 1.442695, %v2383_v43  ;;  %v2384_v34 = vsub.f32 %v2368_v29, %v2382_v30 }
0x290a   :  { %3233 = vpow2.f32 %v2385_v1  ;;  %v2387_v14 = vmul.f32 1.442695, %v2384_v34 }
0x290c   :  { %3235 = vpow2.f32 %v2387_v14 }
0x2917   :  { %v3234_v33 = vpop.eup %3233 }
0x2918   :  { %v2389_v35 = vsel %vm663_vm6, %v3234_v33, 0.0 }
0x2919   :  { %v3236_v5 = vpop.eup %3235  ;;  %v2390_v36 = vrot.slane %v2389_v35, 4 }
0x291a   :  { %v2396_v4 = vsel %vm663_vm6, %v3236_v5, 0.0 }
0x291b   :  { %v2391_v11 = vadd.f32 %v2390_v36, %v2389_v35  ;;  %v2397_v32 = vrot.slane %v2396_v4, 4 }
0x291d   :  { %v2392_v8 = vrot.slane %v2391_v11, 2  ;;  %v2398_v39 = vadd.f32 %v2397_v32, %v2396_v4 }
0x291f   :  { %v2399_v54 = vrot.slane %v2398_v39, 2  ;;  %v2393_v13 = vadd.f32 %v2392_v8, %v2391_v11 }
0x2921   :  { %v2394_v42 = vrot.slane %v2393_v13, 1  ;;  %v2400_v61 = vadd.f32 %v2399_v54, %v2398_v39  ;;  %v4617_v39 = vrot.slane %v3924_v24, 6 }
0x2923   :  { %v2395_v27 = vadd.f32 %v2394_v42, %v2393_v13  ;;  %v2401_v9 = vrot.slane %v2400_v61, 1 }
0x2925   :  { %3237 = vrcp.f32 %v2395_v27  ;;  %v2402_v45 = vadd.f32 %v2401_v9, %v2400_v61 }
0x2927   :  { %3239 = vrcp.f32 %v2402_v45 }
0x2932   :  { %v3238_v12 = vpop.eup %3237 }
0x2933   :  { %v2405_v3 = vmul.f32 %v3238_v12, %v3234_v33 }
0x2934   :  { %v3240_v47 = vpop.eup %3239 }
0x2935   :  { %2801 = vst.msk [vmem:[%s4597_s18 + $0x50] sm:$0xff] %vm663_vm6, %v2405_v3  ;;  %2409 = vperm.xlu0 %3057, %v2405_v3   ;;  %v2406_v7 = vmul.f32 %v3240_v47, %v3236_v5 }
0x2937   :  { %2414 = vperm.xlu1 %3056, %v2406_v7   ;;  %2802 = vst.msk [vmem:[%s4597_s18 + $0x58] sm:$0xff] %vm663_vm6, %v2406_v7  ;;  %s3581_s18 = smov 96  }
0x293b   :  { %2438 = vrot.lane.b32.xlu1 %v4387_v41, %s3567_s4 }
0x29b0   :  { %v2410_v49 = vpop.permute.xlu0 %2409 }
0x29b1   :  { %v2417_v29 = vmul.f32 %v3299_v53, %v2410_v49 }
0x29b2   :  { %v2415_v56 = vpop.permute.xlu1 %2414 }
0x29b3   :  { %v2419_v0 = vsel %vm314_vm2, %v2417_v29, 0.0  ;;  %v2418_v40 = vmul.f32 %v3300_v25, %v2415_v56 }
0x29b4   :  { %v2420_v28 = vrot.slane %v2419_v0, 4 }
0x29b5   :  { %v2426_v6 = vsel %vm314_vm2, %v2418_v40, 0.0  ;;  %v3302_v40 = vld [vmem:[#allocation13 + $0x4] ss:$8 sps:$4 sm:$0xff]  }
0x29b6   :  { %v2421_v52 = vadd.f32 %v2420_v28, %v2419_v0  ;;  %v2427_v21 = vrot.slane %v2426_v6, 4  ;;  %v2439_v14 = vpop.permute.xlu1 %2438  ;;  %v3303_v28 = vld [vmem:[#allocation13] ss:$8 sps:$4 sm:$0xff]  }
0x29b8   :  { %v2422_v57 = vrot.slane %v2421_v52, 2  ;;  %v2428_v48 = vadd.f32 %v2427_v21, %v2426_v6 }
0x29ba   :  { %v2423_v2 = vadd.f32 %v2422_v57, %v2421_v52  ;;  %v2429_v18 = vrot.slane %v2428_v48, 2 }
0x29bc   :  { %v2424_v43 = vrot.slane %v2423_v2, 1  ;;  %v2430_v30 = vadd.f32 %v2429_v18, %v2428_v48 }
0x29be   :  { %v2431_v41 = vrot.slane %v2430_v30, 1  ;;  %v2425_v1 = vadd.f32 %v2424_v43, %v2423_v2 }
0x29c0   :  { %v2432_v34 = vadd.f32 %v2431_v41, %v2430_v30 }
0x29c2   :  { %v2435_v33 = vsel %vm730_vm7, %v2432_v34, %v2425_v1 }
0x29c3   :  { %v2441_v35 = vsel %vm314_vm2, %v2435_v33, %v2439_v14 }
0x29c4   :  { %v2442_v5 = vpack.c.bf16 %v2441_v35, %v2441_v35  ;;  %v1334_v35 = vrot.slane %v4083_v20, 6  ;;  %v1330_v20 = vrot.slane %v4036_v58, 6  ;;  %v996_v58 = vadd.f32 %v3927_v26, %v3800_v60 }
0x29c6   :  { %2922 = vmatmul.mubr.msk.bf16.vlgmr.msra.gmra.mxu0 %vm779_vm8, %v2442_v5  ;;  %v1996_v5 = vrot.slane %v4331_v51, 2  ;;  %v1992_v51 = vrot.slane %v4271_v22, 2 }
0x2a86   :  { %v2480_v36 = vpop.f32.mrf.mxu0 }
0x2a87   :  { %v2488_v4 = vrot.slane %v2480_v36, 6 }
0x2a88   :  { %v4456_v11 = vpop.f32.mrf.mxu0 }
0x2a89   :  { %v2490_v32 = vadd.f32 %v2488_v4, %v3802_v63  ;;  %v2500_v63 = vrot.slane %v4383_v62, 6  ;;  %v3301_v62 = vld [vmem:[#allocation13 + $0x10] ss:$8 sps:$4 sm:$0xff]   ;;  %v1332_v4 = vadd.f32 %v1330_v20, %v3800_v60 }
0x2a8a   :  { %v2484_v8 = vpop.f32.mrf.mxu0 }
0x2a8b   :  { %v2491_v54 = vadd.f32 %v2490_v32, %v4617_v39 }
0x2a8c   :  { %v2485_v13 = vpop.f32.mrf.mxu0 }
0x2a8d   :  { %3241 = vtanh.f32 %v2491_v54  ;;  %v2923_v61 = vmul.f32 -1.442695, %v2491_v54  ;;  %v4508_v13 = vld [vmem:[%s4594_s15] ss:$0 sm:$0xff]  ;;  %s3582_s15 = smov [#allocation19]  }
0x2a8f   :  { %3243 = vpow2.f32 %v2923_v61 }
0x2a9a   :  { %v3242_v42 = vpop.eup %3241 }
0x2a9b   :  { %2504 = vrot.lane.b32.xlu0 %v3242_v42, %s3567_s4 }
0x2a9c   :  { %v3244_v27 = vpop.eup %3243 }
0x2a9d   :  { %v2495_v9 = vadd.f32 1.0, %v3244_v27 }
0x2a9f   :  { %3245 = vrcp.f32 %v2495_v9 }
0x2aac   :  { %v3246_v45 = vpop.eup %3245 }
0x2aad   :  { %v2502_v47 = vmul.f32 %v3246_v45, %v2500_v63 }
0x2b0d   :  { %v2505_v12 = vpop.permute.xlu0 %2504 }
0x2b0e   :  { %v2507_v3 = vmul.f32 %v3246_v45, %v2505_v12 }
0x2b10   :  { %2509 = vrot.lane.b32.xlu1 %v2507_v3, %s3569_s26 }
0x2b82   :  { %v2510_v24 = vpop.permute.xlu1 %2509 }
0x2b83   :  { %v4464_v7 = vadd.f32 %v2510_v24, %v2502_v47 }
0x2b85   :  { %3247 = vtanh.f32 %v4464_v7 }
0x2b92   :  { %v3248_v49 = vpop.eup %3247 }
0x2b93   :  { %2515 = vrot.lane.b32.xlu0 %v3248_v49, %s3567_s4 }
0x2c05   :  { %v2516_v53 = vpop.permute.xlu0 %2515 }
0x2c06   :  { %v4468_v29 = vmul.f32 %v3246_v45, %v2516_v53 }
0x2c08   :  { %v2519_v56 = vpack.c.bf16 %v4468_v29, %v4468_v29 }
0x2c0a   :  { %v2521_v0 = vrot.slane %v2519_v56, 1 }
0x2c0c   :  { %2522 = vrot.lane.b32.xlu1 %v2521_v0, %s3569_s26 }
0x2c7e   :  { %v2523_v25 = vpop.permute.xlu1 %2522 }
0x2c7f   :  { %3029 = vmatmul.mubr.msk.bf16.vlgmr.msra.gmra.mxu1 %vm314_vm2, %v2523_v25 }
0x2c80   :  { %2612 = vmatpush1.bf16.msra.mxu1 %v3301_v62  ;;  %2631 = vmatprep.mubr.bf16.mxu1 %v4615_v19 }
0x2c81   :  { %2613 = vmatprep.subr.bf16.mxu1 %v3302_v40 }
0x2c84   :  { %2614 = vmatpush1.bf16.msra.mxu1 %v3303_v28 }
0x2d3f   :  { %v2561_v6 = vpop.f32.mrf.mxu1 }
0x2d40   :  { %v2562_v52 = vadd.f32 %v2561_v6, %v4419_v59 }
0x2d41   :  { %v3030_v21 = vpop.f32.mrf.mxu1 }
0x2d42   :  { %v2567_v57 = vadd.f32 %v4297_v23, %v2562_v52 }
0x2d43   :  { %v2564_v48 = vpop.f32.mrf.mxu1 }
0x2d44   :  { %3249 = vtanh.f32 %v2567_v57  ;;  %v2925_v43 = vmul.f32 -1.442695, %v2567_v57  ;;  %v2640_v57 = vrot.slane %v4456_v11, 6 }
0x2d45   :  { %v3031_v2 = vpop.f32.mrf.mxu1 }
0x2d46   :  { %3251 = vpow2.f32 %v2925_v43 }
0x2d51   :  { %v3250_v18 = vpop.eup %3249 }
0x2d52   :  { %2577 = vrot.lane.b32.xlu0 %v3250_v18, %s3567_s4  ;;  %v4618_v18 = vld [vmem:[#allocation30_spill] sm:$0xff] }
0x2d53   :  { %v3252_v30 = vpop.eup %3251  ;;  %v2642_v43 = vadd.f32 %v2640_v57, %v4618_v18 }
0x2d54   :  { %v2571_v19 = vadd.f32 1.0, %v3252_v30 }
0x2d56   :  { %3253 = vrcp.f32 %v2571_v19 }
0x2d63   :  { %v3254_v41 = vpop.eup %3253 }
0x2d64   :  { %v2575_v59 = vmul.f32 %v3254_v41, %v4403_v15 }
0x2dc4   :  { %v2578_v1 = vpop.permute.xlu0 %2577 }
0x2dc5   :  { %v2580_v34 = vmul.f32 %v3254_v41, %v2578_v1  ;;  %v2316_v1 = vadd.f32 %v4377_v44, %v4618_v18 }
0x2dc7   :  { %2582 = vrot.lane.b32.xlu1 %v2580_v34, %s3569_s26 }
0x2e39   :  { %v2583_v14 = vpop.permute.xlu1 %2582 }
0x2e3a   :  { %v4480_v23 = vadd.f32 %v2583_v14, %v2575_v59 }
0x2e3c   :  { %3255 = vtanh.f32 %v4480_v23 }
0x2e49   :  { %v3256_v33 = vpop.eup %3255 }
0x2e4a   :  { %2588 = vrot.lane.b32.xlu0 %v3256_v33, %s3567_s4 }
0x2e4e   :  { %1335 = vrot.lane.b32.xlu0 %v1334_v35, %s3581_s18 }
0x2e52   :  { %1997 = vrot.lane.b32.xlu0 %v1996_v5, %s3581_s18 }
0x2e56   :  { %998 = vrot.lane.b32.xlu0 %v3990_v55, %s3581_s18 }
0x2e5a   :  { %2704 = vrot.lane.b32.xlu0 %v3976_v50, %s3569_s26  ;;  %v1665_v50 = vrot.slane %v4186_v31, 4  ;;  %v1661_v31 = vrot.slane %v4133_v17, 4 }
0x2e5c   :  { %v1663_v27 = vadd.f32 %v1661_v31, %v3800_v60 }
0x2e5e   :  { %2708 = vrot.lane.b32.xlu0 %v4170_v37, %s3569_s26  ;;  %v1994_v37 = vadd.f32 %v1992_v51, %v3800_v60 }
0x2e62   :  { %2712 = vrot.lane.b32.xlu0 %v4407_v38, %s3569_s26 }
0x2ebc   :  { %v2589_v15 = vpop.permute.xlu0 %2588 }
0x2ebd   :  { %v2591_v36 = vmul.f32 %v3254_v41, %v2589_v15 }
0x2ebf   :  { %v2592_v32 = vpack.c.bf16 %v2591_v36, %v2591_v36  ;;  %v2807_v52 = vrot.slane %v2591_v36, 6 }
0x2ec0   :  { %v1336_v8 = vpop.permute.xlu0 %1335 }
0x2ec1   :  { %v1338_v55 = vadd.f32 %v1336_v8, %v1332_v4  ;;  %2594 = vrot.lane.b32.xlu1 %v2592_v32, %s3569_s26 }
0x2ec3   :  { %v1339_v3 = vadd.f32 %v4508_v13, %v1338_v55 }
0x2ec4   :  { %v1998_v39 = vpop.permute.xlu0 %1997 }
0x2ec5   :  { %v2000_v54 = vadd.f32 %v1998_v39, %v1994_v37  ;;  %1666 = vrot.lane.b32.xlu1 %v1665_v50, %s3581_s18  ;;  %v2651_v63 = vrot.slane %v1339_v3, 2 }
0x2ec7   :  { %v2001_v47 = vadd.f32 %v4508_v13, %v2000_v54  ;;  %v2928_v24 = vmul.f32 -1.442695, %v2651_v63 }
0x2ec8   :  { %v999_v38 = vpop.permute.xlu0 %998 }
0x2ec9   :  { %v1001_v22 = vadd.f32 %v999_v38, %v996_v58  ;;  %v2657_v49 = vrot.slane %v2001_v47, 6  ;;  %3257 = vpow2.f32 %v2928_v24 }
0x2ecb   :  { %v1008_v42 = vadd.f32 %v4508_v13, %v1001_v22  ;;  %v2930_v56 = vmul.f32 -1.442695, %v2657_v49 }
0x2ecd   :  { %2724 = vrot.lane.b32.xlu0 %v1008_v42, %s3569_s26  ;;  %3259 = vpow2.f32 %v2930_v56 }
0x2ed6   :  { %v3258_v62 = vpop.eup %3257 }
0x2ed7   :  { %v2681_v40 = vadd.f32 1.0, %v3258_v62 }
0x2ed9   :  { %3261 = vrcp.f32 %v2681_v40 }
0x2eda   :  { %v3260_v28 = vpop.eup %3259 }
0x2edb   :  { %v2683_v6 = vadd.f32 1.0, %v3260_v28 }
0x2edd   :  { %3263 = vrcp.f32 %v2683_v6 }
0x2f33   :  { %v2595_v61 = vpop.permute.xlu1 %2594 }
0x2f34   :  { %2926 = vmatmul.mubr.msk.bf16.vlgmr.msra.gmra.mxu1 %vm314_vm2, %v2595_v61 }
0x2f37   :  { %v1667_v9 = vpop.permute.xlu1 %1666 }
0x2f38   :  { %v1669_v26 = vadd.f32 %v1667_v9, %v1663_v27 }
0x2f3a   :  { %v1670_v45 = vadd.f32 %v4508_v13, %v1669_v26  ;;  %v2816_v26 = vrot.slane %v4480_v23, 6 }
0x2f3c   :  { %v2654_v12 = vrot.slane %v1670_v45, 4  ;;  %v2705_v45 = vpop.permute.xlu0 %2704 }
0x2f3e   :  { %2728 = vrot.lane.b32.xlu0 %v2654_v12, %s3569_s26  ;;  %v2929_v21 = vmul.f32 -1.442695, %v2654_v12 }
0x2f40   :  { %v2709_v12 = vpop.permute.xlu0 %2708 }
0x2f44   :  { %v2713_v3 = vpop.permute.xlu0 %2712 }
0x2ff4   :  { %v2633_v17 = vpop.f32.mrf.mxu1 }
0x2ff6   :  { %v2634_v53 = vpop.f32.mrf.mxu1 }
0x2ff7   :  { %v2644_v0 = vrot.slane %v2634_v53, 6 }
0x2ff8   :  { %v2636_v60 = vpop.f32.mrf.mxu1 }
0x2ff9   :  { %2645 = vrot.lane.b32.xlu1 %v2644_v0, %s3581_s18 }
0x2ffa   :  { %v2637_v25 = vpop.f32.mrf.mxu1 }
0x2ffd   :  { %2318 = vrot.lane.b32.xlu1 %v4421_v46, %s3581_s18  ;;  %v3262_v46 = vpop.eup %3261 }
0x3001   :  { %2706 = vrot.lane.b32.xlu1 %v4069_v16, %s3569_s26  ;;  %v3264_v16 = vpop.eup %3263 }
0x3005   :  { %2710 = vrot.lane.b32.xlu1 %v4307_v10, %s3569_s26  ;;  %v2927_v10 = vmul.f32 -1.442695, %v1008_v42 }
0x3007   :  { %3265 = vpow2.f32 %v2927_v10 }
0x3008   :  { %3267 = vpow2.f32 %v2929_v21 }
0x3009   :  { %2714 = vrot.lane.b32.xlu1 %v2591_v36, %s3569_s26 }
0x300d   :  { %2726 = vrot.lane.b32.xlu1 %v2651_v63, %s3569_s26  ;;  %v2725_v63 = vpop.permute.xlu0 %2724 }
0x300e   :  { %v2766_v17 = vsel %vm314_vm2, %v2705_v45, %v2725_v63 }
0x3011   :  { %2730 = vrot.lane.b32.xlu1 %v2657_v49, %s3569_s26  ;;  %v2729_v47 = vpop.permute.xlu0 %2728 }
0x3012   :  { %v2768_v0 = vsel %vm314_vm2, %v2709_v12, %v2729_v47 }
0x3014   :  { %v3266_v48 = vpop.eup %3265 }
0x3015   :  { %2808 = vrot.lane.b32.xlu1 %v2807_v52, %s3567_s4  ;;  %v2680_v2 = vadd.f32 1.0, %v3266_v48  ;;  %v3268_v30 = vpop.eup %3267 }
0x3016   :  { %v2682_v34 = vadd.f32 1.0, %v3268_v30 }
0x3017   :  { %3269 = vrcp.f32 %v2680_v2 }
0x3018   :  { %3271 = vrcp.f32 %v2682_v34 }
0x3019   :  { %2750 = vrot.lane.b32.xlu1 %v3262_v46, %s3569_s26 }
0x301d   :  { %2754 = vrot.lane.b32.xlu1 %v3264_v16, %s3569_s26 }
0x3024   :  { %v3270_v36 = vpop.eup %3269 }
0x3025   :  { %v3272_v4 = vpop.eup %3271 }
0x306b   :  { %v2646_v19 = vpop.permute.xlu1 %2645 }
0x306c   :  { %v2648_v41 = vadd.f32 %v2646_v19, %v2642_v43 }
0x306e   :  { %v2649_v59 = vadd.f32 %v4508_v13, %v2648_v41 }
0x306f   :  { %v2319_v14 = vpop.permute.xlu1 %2318 }
0x3070   :  { %v2660_v33 = vrot.slane %v2649_v59, 2  ;;  %v2321_v35 = vadd.f32 %v2319_v14, %v2316_v1 }
0x3072   :  { %v2932_v5 = vmul.f32 -1.442695, %v2660_v33  ;;  %2734 = vrot.lane.b32.xlu1 %v2660_v33, %s3569_s26  ;;  %v2322_v11 = vadd.f32 %v4508_v13, %v2321_v35 }
0x3073   :  { %v2707_v20 = vpop.permute.xlu1 %2706 }
0x3074   :  { %3273 = vpow2.f32 %v2932_v5  ;;  %2732 = vrot.lane.b32.xlu0 %v2322_v11, %s3569_s26  ;;  %v2931_v15 = vmul.f32 -1.442695, %v2322_v11 }
0x3076   :  { %3275 = vpow2.f32 %v2931_v15 }
0x3077   :  { %v2711_v44 = vpop.permute.xlu1 %2710 }
0x3078   :  { %2804 = vrot.lane.b32.xlu0 %v4468_v29, %s3569_s26 }
0x307b   :  { %v2715_v51 = vpop.permute.xlu1 %2714 }
0x307c   :  { %2748 = vrot.lane.b32.xlu0 %v3270_v36, %s3569_s26 }
0x307f   :  { %v2727_v32 = vpop.permute.xlu1 %2726 }
0x3080   :  { %2752 = vrot.lane.b32.xlu0 %v3272_v4, %s3569_s26  ;;  %v2767_v58 = vsel %vm314_vm2, %v2707_v20, %v2727_v32 }
0x3081   :  { %v3274_v8 = vpop.eup %3273 }
0x3082   :  { %v2685_v55 = vadd.f32 1.0, %v3274_v8 }
0x3083   :  { %v3276_v50 = vpop.eup %3275  ;;  %v2731_v37 = vpop.permute.xlu1 %2730 }
0x3084   :  { %3277 = vrcp.f32 %v2685_v55  ;;  %v2684_v39 = vadd.f32 1.0, %v3276_v50  ;;  %v2769_v13 = vsel %vm314_vm2, %v2711_v44, %v2731_v37 }
0x3086   :  { %3279 = vrcp.f32 %v2684_v39 }
0x3087   :  { %v2809_v54 = vpop.permute.xlu1 %2808 }
0x308b   :  { %v2751_v29 = vpop.permute.xlu1 %2750 }
0x308c   :  { %v2773_v38 = vsel %vm779_vm8, %v2767_v58, %v2751_v29 }
0x308d   :  { %v2780_v22 = vsel %vm2778_vm9, %v2773_v38, 0.0 }
0x308e   :  { %2786 = vst [vmem:[#allocation19 + $0x2] sm:$0x3] %v2780_v22 }
0x308f   :  { %v2755_v42 = vpop.permute.xlu1 %2754 }
0x3090   :  { %v2775_v31 = vsel %vm779_vm8, %v2769_v13, %v2755_v42 }
0x3091   :  { %v3278_v61 = vpop.eup %3277  ;;  %v2782_v27 = vsel %vm2778_vm9, %v2775_v31, 0.0 }
0x3092   :  { %2788 = vst [vmem:[#allocation19 + $0x6] sm:$0x3] %v2782_v27  ;;  %2758 = vrot.lane.b32.xlu1 %v3278_v61, %s3569_s26 }
0x3093   :  { %v3280_v9 = vpop.eup %3279 }
0x3094   :  { %2756 = vrot.lane.b32.xlu0 %v3280_v9, %s3569_s26 }
0x3096   :  { %2817 = vrot.lane.b32.xlu1 %v2816_v26, %s3567_s4  ;;  %s2830_s4 = sshll.u32 %s3582_s15, 4  ;;  %s2831_s4 = int_to_ptr.vmem [resolvable:$true] %s2830_s4 }
0x3097   :  { %s3504_s9 = scalar_lea.vmem %s2831_s4, 192  ;;  %p3509_p9 = scmp.lt.s32.totalorder %s2831_s4, %s2831_s4 }
0x3098   :  { %2812 = vrot.lane.b32.xlu0 %v4464_v7, %s3569_s26  ;;  %p3505_p8 = scmp.ne.s32.totalorder %s2831_s4, %s3504_s9  ;;  %p3510_p10 = scmp.lt.s32.totalorder %s3504_s9, %s3504_s9 }
0x309a   :  { %p3511_p11 = por %p3510_p10, %p3509_p9 }
0x309c   :  { %p3512_p12 = pnand %p3511_p11, %p3505_p8 }
0x30e4   :  { %v2735_v62 = vpop.permute.xlu1 %2734 }
0x30e5   :  { %v2771_v40 = vsel %vm314_vm2, %v2715_v51, %v2735_v62 }
0x30e6   :  { %v2733_v24 = vpop.permute.xlu0 %2732 }
0x30e7   :  { %v2770_v52 = vsel %vm314_vm2, %v2713_v3, %v2733_v24 }
0x30ea   :  { %v2805_v49 = vpop.permute.xlu0 %2804 }
0x30eb   :  { %v2820_v57 = vsel %vm314_vm2, %v2805_v49, %v2809_v54 }
0x30ee   :  { %v2749_v53 = vpop.permute.xlu0 %2748 }
0x30ef   :  { %v2772_v56 = vsel %vm779_vm8, %v2766_v17, %v2749_v53 }
0x30f0   :  { %v2779_v23 = vsel %vm2778_vm9, %v2772_v56, 0.0 }
0x30f1   :  { %2785 = vst [vmem:[#allocation19] sm:$0x3] %v2779_v23 }
0x30f2   :  { %v2753_v60 = vpop.permute.xlu0 %2752 }
0x30f3   :  { %v2774_v7 = vsel %vm779_vm8, %v2768_v0, %v2753_v60 }
0x30f4   :  { %v2781_v25 = vsel %vm2778_vm9, %v2774_v7, 0.0 }
0x30f5   :  { %2787 = vst [vmem:[#allocation19 + $0x4] sm:$0x3] %v2781_v25 }
0x3104   :  { %v2759_v28 = vpop.permute.xlu1 %2758 }
0x3105   :  { %v2777_v6 = vsel %vm779_vm8, %v2771_v40, %v2759_v28 }
0x3106   :  { %v2784_v46 = vsel %vm2778_vm9, %v2777_v6, 0.0  ;;  %v2757_v16 = vpop.permute.xlu0 %2756 }
0x3107   :  { %2790 = vst [vmem:[#allocation19 + $0xa] sm:$0x3] %v2784_v46  ;;  %v2776_v10 = vsel %vm779_vm8, %v2770_v52, %v2757_v16 }
0x3108   :  { %v2783_v21 = vsel %vm2778_vm9, %v2776_v10, 0.0 }
0x3109   :  { %2789 = vst [vmem:[#allocation19 + $0x8] sm:$0x3] %v2783_v21 }
0x310a   :  { %v2813_v48 = vpop.permute.xlu0 %2812 }
0x310b   :  { %3515 = shalt.err (!%p3512_p12)
}
0x310c   :  { %2836 = dma.vmem_to_hbm [thread:$0]  %s2831_s4, 192, %s4596_s17, [#allocation4], %s3569_s26, %s3569_s26, %s3570_s0   ;;  %v2818_v2 = vpop.permute.xlu1 %2817  ;;  %v2821_v18 = vsel %vm779_vm8, %v2820_v57, %v2813_v48 }
0x310d   :  { %v2823_v43 = vsel %vm2822_vm10, %v2821_v18, %v2818_v2  ;;  %s3524_s16 = scalar_lea.vmem %s2846_s20, 32  ;;  %p3529_p0 = scmp.lt.s32.totalorder %s2846_s20, %s2846_s20 }
0x310e   :  { %2824 = vst [vmem:[#allocation20 - $0x2] sm:$0xc] %v2823_v43  ;;  %p3525_p13 = scmp.ne.s32.totalorder %s2846_s20, %s3524_s16  ;;  %p3530_p1 = scmp.lt.s32.totalorder %s3524_s16, %s3524_s16 }
0x3110   :  { %p3531_p2 = por %p3530_p1, %p3529_p0 }
0x3112   :  { %p3532_p3 = pnand %p3531_p2, %p3525_p13 }
0x3114   :  { %3535 = shalt.err (!%p3532_p3)
}
0x3115   :  { %2848 = dma.vmem_to_hbm [thread:$0]  %s2846_s20, 32, %s4598_s19, [#allocation21]  }
0x3116   :  { %3556 = dma.done.wait [#allocation4], 192  }
0x3117   :  { %3557 = vsyncadd [#allocation4], 4294967104 }
0x3118   :  { %3558 = dma.done.wait [#allocation21], 32  }
0x3119   :  { %3559 = vsyncadd [#allocation21], 4294967264 }
0x311a   :  { %2857 = vsyncpa [#allocation3], 1 }
0x311b   :  { %2858 = vsyncpa [#allocation6], 1 }
0x311c   :  { %2859 = vsyncpa [#allocation9], 1 }
0x311d   :  { %2860 = vsyncpa [#allocation12], 1 }
0x311e   :  { %2861 = vsyncpa [#allocation15], 1 }
0x311f   :  { %2862 = vsyncpa [#allocation18], 1 }
0x3120   :  { %2863 = vsyncpa [#allocation4], 1 }
0x3121   :  { %2864 = vsyncpa [#allocation21], 1 }

</bundles_post_ra>
